<compile_context>
chip_gen: v5e
topology: v5e:2x2
jax: 0.10.0
libtpu: 0.0.40
codegen_flags: <defaults>
</compile_context>

<pallas_src>
import functools

import jax
import jax.numpy as jnp
from jax.experimental import pallas as pl
from jax.experimental.pallas import tpu as pltpu

RES_K = 21                 # residual-unit conv kernel size (fixed by the module)
RES_PAD = (RES_K - 1) // 2
N_UNITS = 3                # number of [ResidualUnit ; ELU] stages in the block


def _elu(v):
    # ELU(alpha=1); min() keeps the inactive exp branch finite.
    return jnp.where(v > 0, v, jnp.exp(jnp.minimum(v, 0.0)) - 1.0)


# ---------------------------------------------------------------------------
# Single fused kernel: input conv -> 3 x [ResidualUnit ; ELU] -> output conv.
# One grid step == one batch row; everything stays in VMEM / vregs.
# ---------------------------------------------------------------------------
def _encoder_block_kernel(xcol_ref, w_in_ref, b_in_ref,
                          w1_ref, b1_ref, w2_ref, b2_ref,
                          wout_ref, bout_ref,
                          o_ref, hpad_ref, *,
                          l1, c_hid, group, n_groups, k_out, l_dense):
    f32 = jnp.float32
    pad = RES_PAD
    k_padded = group * n_groups          # taps zero-padded to a group multiple
    total = l1 + k_padded - 1            # rows in the padded activation scratch
    cdt = w_in_ref.dtype                 # matmul compute dtype (f32 or bf16)

    # --- 1) strided input conv: single deep matmul over the im2col slab.
    h = jnp.dot(xcol_ref[0].astype(cdt), w_in_ref[...],
                preferred_element_type=f32) + b_in_ref[...]        # [l1, c_hid]

    # Zero the tap-padding tail rows once per step (their weights are zero,
    # but the rows must be finite so 0 * garbage can never produce NaN).
    tail = total - (l1 + 2 * pad)
    if tail > 0:
        hpad_ref[l1 + 2 * pad:total, :] = jnp.zeros((tail, c_hid), f32)

    # --- 2) three fused [ResidualUnit ; ELU] stages.
    for i in range(N_UNITS):
        # Valid rows + in-kernel reflect 'same' padding (20 single-row copies).
        hpad_ref[pad:pad + l1, :] = h
        for j in range(pad):
            hpad_ref[pad - 1 - j:pad - j, :] = h[j + 1:j + 2, :]
            hpad_ref[pad + l1 + j:pad + l1 + j + 1, :] = \
                h[l1 - 2 - j:l1 - 1 - j, :]

        hp = hpad_ref[...].astype(cdt)                 # [total, c_hid]

        # k=21 reflect-'same' conv: `group` consecutive taps lane-packed into a
        # (group*c_hid)-deep contraction -> n_groups MXU matmuls.
        acc = None
        for g in range(n_groups):
            base = g * group
            lhs = jnp.concatenate(
                [hp[base + j:base + j + l1, :] for j in range(group)], axis=1)
            part = jnp.dot(lhs, w1_ref[i * n_groups + g],
                           preferred_element_type=f32)
            acc = part if acc is None else acc + part
        t = _elu(acc + b1_ref[i])                      # ELU inside the unit

        # k=1 conv + residual add + the ELU that follows the unit.
        h = _elu(h + jnp.dot(t.astype(cdt), w2_ref[i],
                             preferred_element_type=f32) + b2_ref[i])

    # --- 3) output conv: computed dense (stride 1) as ONE (k_out*c_hid)-deep
    #        matmul; the wrapper keeps every stride-th row of this tiny slab.
    lhs = jnp.concatenate([h[k:k + l_dense, :] for k in range(k_out)],
                          axis=1).astype(cdt)
    y = jnp.dot(lhs, wout_ref[...], preferred_element_type=f32) + bout_ref[...]
    o_ref[0] = y.astype(o_ref.dtype)


# ---------------------------------------------------------------------------
# Wrapper: layout/packing of weights + the single pallas_call.
# ---------------------------------------------------------------------------
def encoder_block_forward(x_bcl, params, stride, compute_dtype=jnp.float32):
    """x_bcl: [B, C_in, L] (PyTorch layout). Returns [B, C_out, L_out]."""
    w_in, b_in = params["w_in"], params["b_in"]
    w_out, b_out = params["w_out"], params["b_out"]
    B, C_in, L = x_bcl.shape
    K_in, _, HID = w_in.shape
    K_out, _, C_out = w_out.shape

    L1 = (L - K_in) // stride + 1
    assert L1 > RES_PAD, "reflect 'same' padding needs conv1 output length > 10"
    L_dense = L1 - K_out + 1
    L2 = (L1 - K_out) // stride + 1
    assert L_dense >= 1 and L2 >= 1

    # Pack `group` consecutive residual-conv taps so the contraction is ~128.
    group = max(1, min(RES_K, 128 // HID))
    n_groups = -(-RES_K // group)
    k_padded = group * n_groups
    total = L1 + k_padded - 1

    x = jnp.transpose(x_bcl, (0, 2, 1))                       # [B, L, C_in]
    # im2col for the strided "valid" input conv (handles any L/K/stride).
    gidx = jnp.arange(L1)[:, None] * stride + jnp.arange(K_in)[None, :]
    xcol = x[:, gidx, :].reshape(B, L1, K_in * C_in)          # [B, L1, K*C_in]

    cdt = compute_dtype
    w_in_f = w_in.reshape(K_in * C_in, HID).astype(cdt)
    b_in_f = b_in.reshape(1, HID).astype(jnp.float32)

    w1 = jnp.stack([params[f"ru{i}_w1"] for i in range(N_UNITS)])  # [3,21,H,H]
    w1 = jnp.pad(w1, ((0, 0), (0, k_padded - RES_K), (0, 0), (0, 0)))
    w1 = w1.reshape(N_UNITS * n_groups, group * HID, HID).astype(cdt)
    b1 = jnp.stack([params[f"ru{i}_b1"] for i in range(N_UNITS)]
                   ).reshape(N_UNITS, 1, HID).astype(jnp.float32)
    w2 = jnp.stack([params[f"ru{i}_w2"] for i in range(N_UNITS)]).astype(cdt)
    b2 = jnp.stack([params[f"ru{i}_b2"] for i in range(N_UNITS)]
                   ).reshape(N_UNITS, 1, HID).astype(jnp.float32)

    w_out_f = w_out.reshape(K_out * HID, C_out).astype(cdt)
    b_out_f = b_out.reshape(1, C_out).astype(jnp.float32)

    kernel = functools.partial(
        _encoder_block_kernel, l1=L1, c_hid=HID, group=group,
        n_groups=n_groups, k_out=K_out, l_dense=L_dense)

    y_dense = pl.pallas_call(
        kernel,
        grid=(B,),
        in_specs=[
            pl.BlockSpec((1, L1, K_in * C_in), lambda b: (b, 0, 0)),
            pl.BlockSpec((K_in * C_in, HID), lambda b: (0, 0)),
            pl.BlockSpec((1, HID), lambda b: (0, 0)),
            pl.BlockSpec((N_UNITS * n_groups, group * HID, HID),
                         lambda b: (0, 0, 0)),
            pl.BlockSpec((N_UNITS, 1, HID), lambda b: (0, 0, 0)),
            pl.BlockSpec((N_UNITS, HID, HID), lambda b: (0, 0, 0)),
            pl.BlockSpec((N_UNITS, 1, HID), lambda b: (0, 0, 0)),
            pl.BlockSpec((K_out * HID, C_out), lambda b: (0, 0)),
            pl.BlockSpec((1, C_out), lambda b: (0, 0)),
        ],
        out_specs=pl.BlockSpec((1, L_dense, C_out), lambda b: (b, 0, 0)),
        out_shape=jax.ShapeDtypeStruct((B, L_dense, C_out), jnp.float32),
        scratch_shapes=[pltpu.VMEM((total, HID), jnp.float32)],
        compiler_params=pltpu.CompilerParams(
            dimension_semantics=("parallel",),
            vmem_limit_bytes=32 * 1024 * 1024),
    )(xcol, w_in_f, b_in_f, w1, b1, w2, b2, w_out_f, b_out_f)

    # Output conv was computed at stride 1 in-kernel; realise the true stride
    # by keeping every stride-th row of the tiny [B, L_dense, C_out] slab.
    y = y_dense[:, ::stride, :]
    assert y.shape[1] == L2
    return jnp.transpose(y, (0, 2, 1))                        # [B, C_out, L2]


# ---------------------------------------------------------------------------
# Pure-JAX reference (same math, no Pallas) for the numerical check.
# ---------------------------------------------------------------------------
def _conv1d_ref(x, w, b, stride):
    K = w.shape[0]
    L_out = (x.shape[1] - K) // stride + 1
    acc = jnp.zeros((x.shape[0], L_out, w.shape[2]), jnp.float32) + b
    for k in range(K):
        xs = x[:, k:k + (L_out - 1) * stride + 1:stride, :]
        acc += jnp.einsum("blc,cd->bld", xs, w[k])
    return acc


def encoder_block_ref(x_bcl, params, stride):
    x = jnp.transpose(x_bcl, (0, 2, 1))
    h = _conv1d_ref(x, params["w_in"], params["b_in"], stride)
    for i in range(N_UNITS):
        pad = (params[f"ru{i}_w1"].shape[0] - 1) // 2
        hp = jnp.pad(h, ((0, 0), (pad, pad), (0, 0)), mode="reflect")
        t = _elu(_conv1d_ref(hp, params[f"ru{i}_w1"], params[f"ru{i}_b1"], 1))
        t = jnp.einsum("blc,cd->bld", t, params[f"ru{i}_w2"]) + params[f"ru{i}_b2"]
        h = _elu(h + t)
    y = _conv1d_ref(h, params["w_out"], params["b_out"], stride)
    return jnp.transpose(y, (0, 2, 1))


if __name__ == "__main__":
    B, C_IN, HID, C_OUT, STRIDE, L = 2, 4, 32, 8, 2, 128

    key = jax.random.PRNGKey(0)
    keys = jax.random.split(key, 17)

    def conv_init(kw, kb, k_size, c_in, c_out):
        bound = 1.0 / float(c_in * k_size) ** 0.5    # PyTorch Conv1d default init
        w = jax.random.uniform(kw, (k_size, c_in, c_out), jnp.float32,
                               -bound, bound)
        b = jax.random.uniform(kb, (c_out,), jnp.float32, -bound, bound)
        return w, b

    params = {}
    params["w_in"], params["b_in"] = conv_init(keys[0], keys[1], 21, C_IN, HID)
    for i in range(3):
        params[f"ru{i}_w1"], params[f"ru{i}_b1"] = conv_init(
            keys[2 + 4 * i], keys[3 + 4 * i], 21, HID, HID)
        w2, b2 = conv_init(keys[4 + 4 * i], keys[5 + 4 * i], 1, HID, HID)
        params[f"ru{i}_w2"], params[f"ru{i}_b2"] = w2[0], b2
    params["w_out"], params["b_out"] = conv_init(keys[14], keys[15],
                                                 2 * STRIDE, HID, C_OUT)

    x = jax.random.normal(keys[16], (B, C_IN, L), jnp.float32)

    fwd = jax.jit(functools.partial(encoder_block_forward, stride=STRIDE))
    y = fwd(x, params)
    jax.block_until_ready(y)

    # Shape check against the PyTorch conv arithmetic.
    l1 = (L - 21) // STRIDE + 1
    l2 = (l1 - 2 * STRIDE) // STRIDE + 1
    assert y.shape == (B, C_OUT, l2), y.shape

    # Numerical check against the pure-JAX reference of the same forward pass.
    y_ref = encoder_block_ref(x, params, STRIDE)
    assert bool(jnp.all(jnp.isfinite(y)))
    assert jnp.allclose(y, y_ref, rtol=2e-3, atol=2e-3), \
        float(jnp.max(jnp.abs(y - y_ref)))

    print("KERNEL_OK")
</pallas_src>

<mosaic_0001>
module attributes {stable_mosaic.version = 11 : i64} {
  func.func @_encoder_block_kernel(%arg0: i32, %arg1: memref<1x54x84xf32, #tpu.memory_space<vmem>>, %arg2: memref<84x32xf32, #tpu.memory_space<vmem>>, %arg3: memref<1x32xf32, #tpu.memory_space<vmem>>, %arg4: memref<18x128x32xf32, #tpu.memory_space<vmem>>, %arg5: memref<3x1x32xf32, #tpu.memory_space<vmem>>, %arg6: memref<3x32x32xf32, #tpu.memory_space<vmem>>, %arg7: memref<3x1x32xf32, #tpu.memory_space<vmem>>, %arg8: memref<128x8xf32, #tpu.memory_space<vmem>>, %arg9: memref<1x8xf32, #tpu.memory_space<vmem>>, %arg10: memref<1x51x8xf32, #tpu.memory_space<vmem>>, %arg11: memref<77x32xf32, #tpu.memory_space<vmem>>) attributes {dimension_semantics = [#tpu.dimension_semantics<parallel>], iteration_bounds = array<i64: 2>, scalar_prefetch = 0 : i64, scratch_operands = 1 : i64, tpu.core_type = #tpu.core_type<tc>, window_params = [{transform_indices = @transform_0, window_bounds = array<i64: 1, 54, 84>}, {pipeline_mode = #tpu.pipeline_mode<synchronous>, transform_indices = @transform_1, window_bounds = array<i64: 84, 32>}, {pipeline_mode = #tpu.pipeline_mode<synchronous>, transform_indices = @transform_2, window_bounds = array<i64: 1, 32>}, {pipeline_mode = #tpu.pipeline_mode<synchronous>, transform_indices = @transform_3, window_bounds = array<i64: 18, 128, 32>}, {pipeline_mode = #tpu.pipeline_mode<synchronous>, transform_indices = @transform_4, window_bounds = array<i64: 3, 1, 32>}, {pipeline_mode = #tpu.pipeline_mode<synchronous>, transform_indices = @transform_5, window_bounds = array<i64: 3, 32, 32>}, {pipeline_mode = #tpu.pipeline_mode<synchronous>, transform_indices = @transform_6, window_bounds = array<i64: 3, 1, 32>}, {pipeline_mode = #tpu.pipeline_mode<synchronous>, transform_indices = @transform_7, window_bounds = array<i64: 128, 8>}, {pipeline_mode = #tpu.pipeline_mode<synchronous>, transform_indices = @transform_8, window_bounds = array<i64: 1, 8>}, {transform_indices = @transform_9, window_bounds = array<i64: 1, 51, 8>}]} {
    %c0 = arith.constant 0 : index
    %c0_0 = arith.constant 0 : index
    %c0_1 = arith.constant 0 : index
    %0 = vector.load %arg1[%c0, %c0_0, %c0_1] : memref<1x54x84xf32, #tpu.memory_space<vmem>>, vector<1x54x84xf32>
    %1 = vector.shape_cast %0 : vector<1x54x84xf32> to vector<54x84xf32>
    %c0_2 = arith.constant 0 : index
    %c0_3 = arith.constant 0 : index
    %2 = vector.load %arg2[%c0_2, %c0_3] : memref<84x32xf32, #tpu.memory_space<vmem>>, vector<84x32xf32>
    %cst = arith.constant dense<0.000000e+00> : vector<54x32xf32>
    %3 = tpu.matmul %1, %2, %cst {dimension_numbers = #tpu.dot_dimension_numbers<[1], [0], [0], [1], [0, 0, 1, 1], [], []>} : vector<54x84xf32>, vector<84x32xf32>, vector<54x32xf32> -> vector<54x32xf32>
    %c0_4 = arith.constant 0 : index
    %c0_5 = arith.constant 0 : index
    %4 = vector.load %arg3[%c0_4, %c0_5] : memref<1x32xf32, #tpu.memory_space<vmem>>, vector<1x32xf32>
    %5 = vector.broadcast %4 : vector<1x32xf32> to vector<54x32xf32>
    %6 = arith.addf %3, %5 : vector<54x32xf32>
    %cst_6 = arith.constant 0.000000e+00 : f32
    %7 = vector.broadcast %cst_6 : f32 to vector<3x32xf32>
    %c74 = arith.constant 74 : index
    %c0_7 = arith.constant 0 : index
    %8 = vector.load %arg11[%c74, %c0_7] : memref<77x32xf32, #tpu.memory_space<vmem>>, vector<3x32xf32>
    tpu.vector_store %arg11[%c74, %c0_7], %7 {strides = array<i32>} : memref<77x32xf32, #tpu.memory_space<vmem>>, vector<3x32xf32>,
    %c10 = arith.constant 10 : index
    %c0_8 = arith.constant 0 : index
    %9 = vector.load %arg11[%c10, %c0_8] : memref<77x32xf32, #tpu.memory_space<vmem>>, vector<54x32xf32>
    tpu.vector_store %arg11[%c10, %c0_8], %6 {strides = array<i32>} : memref<77x32xf32, #tpu.memory_space<vmem>>, vector<54x32xf32>,
    %10 = vector.extract_strided_slice %6 {offsets = [1, 0], sizes = [1, 32], strides = [1, 1]} : vector<54x32xf32> to vector<1x32xf32>
    %c9 = arith.constant 9 : index
    %c0_9 = arith.constant 0 : index
    %11 = vector.load %arg11[%c9, %c0_9] : memref<77x32xf32, #tpu.memory_space<vmem>>, vector<1x32xf32>
    tpu.vector_store %arg11[%c9, %c0_9], %10 {strides = array<i32>} : memref<77x32xf32, #tpu.memory_space<vmem>>, vector<1x32xf32>,
    %12 = vector.extract_strided_slice %6 {offsets = [52, 0], sizes = [1, 32], strides = [1, 1]} : vector<54x32xf32> to vector<1x32xf32>
    %c64 = arith.constant 64 : index
    %c0_10 = arith.constant 0 : index
    %13 = vector.load %arg11[%c64, %c0_10] : memref<77x32xf32, #tpu.memory_space<vmem>>, vector<1x32xf32>
    tpu.vector_store %arg11[%c64, %c0_10], %12 {strides = array<i32>} : memref<77x32xf32, #tpu.memory_space<vmem>>, vector<1x32xf32>,
    %14 = vector.extract_strided_slice %6 {offsets = [2, 0], sizes = [1, 32], strides = [1, 1]} : vector<54x32xf32> to vector<1x32xf32>
    %c8 = arith.constant 8 : index
    %c0_11 = arith.constant 0 : index
    %15 = vector.load %arg11[%c8, %c0_11] : memref<77x32xf32, #tpu.memory_space<vmem>>, vector<1x32xf32>
    tpu.vector_store %arg11[%c8, %c0_11], %14 {strides = array<i32>} : memref<77x32xf32, #tpu.memory_space<vmem>>, vector<1x32xf32>,
    %16 = vector.extract_strided_slice %6 {offsets = [51, 0], sizes = [1, 32], strides = [1, 1]} : vector<54x32xf32> to vector<1x32xf32>
    %c65 = arith.constant 65 : index
    %c0_12 = arith.constant 0 : index
    %17 = vector.load %arg11[%c65, %c0_12] : memref<77x32xf32, #tpu.memory_space<vmem>>, vector<1x32xf32>
    tpu.vector_store %arg11[%c65, %c0_12], %16 {strides = array<i32>} : memref<77x32xf32, #tpu.memory_space<vmem>>, vector<1x32xf32>,
    %18 = vector.extract_strided_slice %6 {offsets = [3, 0], sizes = [1, 32], strides = [1, 1]} : vector<54x32xf32> to vector<1x32xf32>
    %c7 = arith.constant 7 : index
    %c0_13 = arith.constant 0 : index
    %19 = vector.load %arg11[%c7, %c0_13] : memref<77x32xf32, #tpu.memory_space<vmem>>, vector<1x32xf32>
    tpu.vector_store %arg11[%c7, %c0_13], %18 {strides = array<i32>} : memref<77x32xf32, #tpu.memory_space<vmem>>, vector<1x32xf32>,
    %20 = vector.extract_strided_slice %6 {offsets = [50, 0], sizes = [1, 32], strides = [1, 1]} : vector<54x32xf32> to vector<1x32xf32>
    %c66 = arith.constant 66 : index
    %c0_14 = arith.constant 0 : index
    %21 = vector.load %arg11[%c66, %c0_14] : memref<77x32xf32, #tpu.memory_space<vmem>>, vector<1x32xf32>
    tpu.vector_store %arg11[%c66, %c0_14], %20 {strides = array<i32>} : memref<77x32xf32, #tpu.memory_space<vmem>>, vector<1x32xf32>,
    %22 = vector.extract_strided_slice %6 {offsets = [4, 0], sizes = [1, 32], strides = [1, 1]} : vector<54x32xf32> to vector<1x32xf32>
    %c6 = arith.constant 6 : index
    %c0_15 = arith.constant 0 : index
    %23 = vector.load %arg11[%c6, %c0_15] : memref<77x32xf32, #tpu.memory_space<vmem>>, vector<1x32xf32>
    tpu.vector_store %arg11[%c6, %c0_15], %22 {strides = array<i32>} : memref<77x32xf32, #tpu.memory_space<vmem>>, vector<1x32xf32>,
    %24 = vector.extract_strided_slice %6 {offsets = [49, 0], sizes = [1, 32], strides = [1, 1]} : vector<54x32xf32> to vector<1x32xf32>
    %c67 = arith.constant 67 : index
    %c0_16 = arith.constant 0 : index
    %25 = vector.load %arg11[%c67, %c0_16] : memref<77x32xf32, #tpu.memory_space<vmem>>, vector<1x32xf32>
    tpu.vector_store %arg11[%c67, %c0_16], %24 {strides = array<i32>} : memref<77x32xf32, #tpu.memory_space<vmem>>, vector<1x32xf32>,
    %26 = vector.extract_strided_slice %6 {offsets = [5, 0], sizes = [1, 32], strides = [1, 1]} : vector<54x32xf32> to vector<1x32xf32>
    %c5 = arith.constant 5 : index
    %c0_17 = arith.constant 0 : index
    %27 = vector.load %arg11[%c5, %c0_17] : memref<77x32xf32, #tpu.memory_space<vmem>>, vector<1x32xf32>
    tpu.vector_store %arg11[%c5, %c0_17], %26 {strides = array<i32>} : memref<77x32xf32, #tpu.memory_space<vmem>>, vector<1x32xf32>,
    %28 = vector.extract_strided_slice %6 {offsets = [48, 0], sizes = [1, 32], strides = [1, 1]} : vector<54x32xf32> to vector<1x32xf32>
    %c68 = arith.constant 68 : index
    %c0_18 = arith.constant 0 : index
    %29 = vector.load %arg11[%c68, %c0_18] : memref<77x32xf32, #tpu.memory_space<vmem>>, vector<1x32xf32>
    tpu.vector_store %arg11[%c68, %c0_18], %28 {strides = array<i32>} : memref<77x32xf32, #tpu.memory_space<vmem>>, vector<1x32xf32>,
    %30 = vector.extract_strided_slice %6 {offsets = [6, 0], sizes = [1, 32], strides = [1, 1]} : vector<54x32xf32> to vector<1x32xf32>
    %c4 = arith.constant 4 : index
    %c0_19 = arith.constant 0 : index
    %31 = vector.load %arg11[%c4, %c0_19] : memref<77x32xf32, #tpu.memory_space<vmem>>, vector<1x32xf32>
    tpu.vector_store %arg11[%c4, %c0_19], %30 {strides = array<i32>} : memref<77x32xf32, #tpu.memory_space<vmem>>, vector<1x32xf32>,
    %32 = vector.extract_strided_slice %6 {offsets = [47, 0], sizes = [1, 32], strides = [1, 1]} : vector<54x32xf32> to vector<1x32xf32>
    %c69 = arith.constant 69 : index
    %c0_20 = arith.constant 0 : index
    %33 = vector.load %arg11[%c69, %c0_20] : memref<77x32xf32, #tpu.memory_space<vmem>>, vector<1x32xf32>
    tpu.vector_store %arg11[%c69, %c0_20], %32 {strides = array<i32>} : memref<77x32xf32, #tpu.memory_space<vmem>>, vector<1x32xf32>,
    %34 = vector.extract_strided_slice %6 {offsets = [7, 0], sizes = [1, 32], strides = [1, 1]} : vector<54x32xf32> to vector<1x32xf32>
    %c3 = arith.constant 3 : index
    %c0_21 = arith.constant 0 : index
    %35 = vector.load %arg11[%c3, %c0_21] : memref<77x32xf32, #tpu.memory_space<vmem>>, vector<1x32xf32>
    tpu.vector_store %arg11[%c3, %c0_21], %34 {strides = array<i32>} : memref<77x32xf32, #tpu.memory_space<vmem>>, vector<1x32xf32>,
    %36 = vector.extract_strided_slice %6 {offsets = [46, 0], sizes = [1, 32], strides = [1, 1]} : vector<54x32xf32> to vector<1x32xf32>
    %c70 = arith.constant 70 : index
    %c0_22 = arith.constant 0 : index
    %37 = vector.load %arg11[%c70, %c0_22] : memref<77x32xf32, #tpu.memory_space<vmem>>, vector<1x32xf32>
    tpu.vector_store %arg11[%c70, %c0_22], %36 {strides = array<i32>} : memref<77x32xf32, #tpu.memory_space<vmem>>, vector<1x32xf32>,
    %38 = vector.extract_strided_slice %6 {offsets = [8, 0], sizes = [1, 32], strides = [1, 1]} : vector<54x32xf32> to vector<1x32xf32>
    %c2 = arith.constant 2 : index
    %c0_23 = arith.constant 0 : index
    %39 = vector.load %arg11[%c2, %c0_23] : memref<77x32xf32, #tpu.memory_space<vmem>>, vector<1x32xf32>
    tpu.vector_store %arg11[%c2, %c0_23], %38 {strides = array<i32>} : memref<77x32xf32, #tpu.memory_space<vmem>>, vector<1x32xf32>,
    %40 = vector.extract_strided_slice %6 {offsets = [45, 0], sizes = [1, 32], strides = [1, 1]} : vector<54x32xf32> to vector<1x32xf32>
    %c71 = arith.constant 71 : index
    %c0_24 = arith.constant 0 : index
    %41 = vector.load %arg11[%c71, %c0_24] : memref<77x32xf32, #tpu.memory_space<vmem>>, vector<1x32xf32>
    tpu.vector_store %arg11[%c71, %c0_24], %40 {strides = array<i32>} : memref<77x32xf32, #tpu.memory_space<vmem>>, vector<1x32xf32>,
    %42 = vector.extract_strided_slice %6 {offsets = [9, 0], sizes = [1, 32], strides = [1, 1]} : vector<54x32xf32> to vector<1x32xf32>
    %c1 = arith.constant 1 : index
    %c0_25 = arith.constant 0 : index
    %43 = vector.load %arg11[%c1, %c0_25] : memref<77x32xf32, #tpu.memory_space<vmem>>, vector<1x32xf32>
    tpu.vector_store %arg11[%c1, %c0_25], %42 {strides = array<i32>} : memref<77x32xf32, #tpu.memory_space<vmem>>, vector<1x32xf32>,
    %44 = vector.extract_strided_slice %6 {offsets = [44, 0], sizes = [1, 32], strides = [1, 1]} : vector<54x32xf32> to vector<1x32xf32>
    %c72 = arith.constant 72 : index
    %c0_26 = arith.constant 0 : index
    %45 = vector.load %arg11[%c72, %c0_26] : memref<77x32xf32, #tpu.memory_space<vmem>>, vector<1x32xf32>
    tpu.vector_store %arg11[%c72, %c0_26], %44 {strides = array<i32>} : memref<77x32xf32, #tpu.memory_space<vmem>>, vector<1x32xf32>,
    %46 = vector.extract_strided_slice %6 {offsets = [10, 0], sizes = [1, 32], strides = [1, 1]} : vector<54x32xf32> to vector<1x32xf32>
    %c0_27 = arith.constant 0 : index
    %c0_28 = arith.constant 0 : index
    %47 = vector.load %arg11[%c0_27, %c0_28] : memref<77x32xf32, #tpu.memory_space<vmem>>, vector<1x32xf32>
    tpu.vector_store %arg11[%c0_27, %c0_28], %46 {strides = array<i32>} : memref<77x32xf32, #tpu.memory_space<vmem>>, vector<1x32xf32>,
    %48 = vector.extract_strided_slice %6 {offsets = [43, 0], sizes = [1, 32], strides = [1, 1]} : vector<54x32xf32> to vector<1x32xf32>
    %c73 = arith.constant 73 : index
    %c0_29 = arith.constant 0 : index
    %49 = vector.load %arg11[%c73, %c0_29] : memref<77x32xf32, #tpu.memory_space<vmem>>, vector<1x32xf32>
    tpu.vector_store %arg11[%c73, %c0_29], %48 {strides = array<i32>} : memref<77x32xf32, #tpu.memory_space<vmem>>, vector<1x32xf32>,
    %c0_30 = arith.constant 0 : index
    %c0_31 = arith.constant 0 : index
    %50 = vector.load %arg11[%c0_30, %c0_31] : memref<77x32xf32, #tpu.memory_space<vmem>>, vector<77x32xf32>
    %51 = vector.extract_strided_slice %50 {offsets = [0, 0], sizes = [54, 32], strides = [1, 1]} : vector<77x32xf32> to vector<54x32xf32>
    %52 = vector.extract_strided_slice %50 {offsets = [1, 0], sizes = [54, 32], strides = [1, 1]} : vector<77x32xf32> to vector<54x32xf32>
    %53 = vector.extract_strided_slice %50 {offsets = [2, 0], sizes = [54, 32], strides = [1, 1]} : vector<77x32xf32> to vector<54x32xf32>
    %54 = vector.extract_strided_slice %50 {offsets = [3, 0], sizes = [54, 32], strides = [1, 1]} : vector<77x32xf32> to vector<54x32xf32>
    %55 = tpu.concatenate %51, %52, %53, %54 in 1 : vector<54x32xf32>, vector<54x32xf32>, vector<54x32xf32>, vector<54x32xf32> -> vector<54x128xf32>
    %c0_32 = arith.constant 0 : index
    %c0_33 = arith.constant 0 : index
    %c0_34 = arith.constant 0 : index
    %56 = vector.load %arg4[%c0_32, %c0_33, %c0_34] : memref<18x128x32xf32, #tpu.memory_space<vmem>>, vector<1x128x32xf32>
    %57 = vector.shape_cast %56 : vector<1x128x32xf32> to vector<128x32xf32>
    %cst_35 = arith.constant dense<0.000000e+00> : vector<54x32xf32>
    %58 = tpu.matmul %55, %57, %cst_35 {dimension_numbers = #tpu.dot_dimension_numbers<[1], [0], [0], [1], [0, 0, 1, 1], [], []>} : vector<54x128xf32>, vector<128x32xf32>, vector<54x32xf32> -> vector<54x32xf32>
    %59 = vector.extract_strided_slice %50 {offsets = [4, 0], sizes = [54, 32], strides = [1, 1]} : vector<77x32xf32> to vector<54x32xf32>
    %60 = vector.extract_strided_slice %50 {offsets = [5, 0], sizes = [54, 32], strides = [1, 1]} : vector<77x32xf32> to vector<54x32xf32>
    %61 = vector.extract_strided_slice %50 {offsets = [6, 0], sizes = [54, 32], strides = [1, 1]} : vector<77x32xf32> to vector<54x32xf32>
    %62 = vector.extract_strided_slice %50 {offsets = [7, 0], sizes = [54, 32], strides = [1, 1]} : vector<77x32xf32> to vector<54x32xf32>
    %63 = tpu.concatenate %59, %60, %61, %62 in 1 : vector<54x32xf32>, vector<54x32xf32>, vector<54x32xf32>, vector<54x32xf32> -> vector<54x128xf32>
    %c1_36 = arith.constant 1 : index
    %c0_37 = arith.constant 0 : index
    %c0_38 = arith.constant 0 : index
    %64 = vector.load %arg4[%c1_36, %c0_37, %c0_38] : memref<18x128x32xf32, #tpu.memory_space<vmem>>, vector<1x128x32xf32>
    %65 = vector.shape_cast %64 : vector<1x128x32xf32> to vector<128x32xf32>
    %cst_39 = arith.constant dense<0.000000e+00> : vector<54x32xf32>
    %66 = tpu.matmul %63, %65, %cst_39 {dimension_numbers = #tpu.dot_dimension_numbers<[1], [0], [0], [1], [0, 0, 1, 1], [], []>} : vector<54x128xf32>, vector<128x32xf32>, vector<54x32xf32> -> vector<54x32xf32>
    %67 = arith.addf %58, %66 : vector<54x32xf32>
    %68 = vector.extract_strided_slice %50 {offsets = [8, 0], sizes = [54, 32], strides = [1, 1]} : vector<77x32xf32> to vector<54x32xf32>
    %69 = vector.extract_strided_slice %50 {offsets = [9, 0], sizes = [54, 32], strides = [1, 1]} : vector<77x32xf32> to vector<54x32xf32>
    %70 = vector.extract_strided_slice %50 {offsets = [10, 0], sizes = [54, 32], strides = [1, 1]} : vector<77x32xf32> to vector<54x32xf32>
    %71 = vector.extract_strided_slice %50 {offsets = [11, 0], sizes = [54, 32], strides = [1, 1]} : vector<77x32xf32> to vector<54x32xf32>
    %72 = tpu.concatenate %68, %69, %70, %71 in 1 : vector<54x32xf32>, vector<54x32xf32>, vector<54x32xf32>, vector<54x32xf32> -> vector<54x128xf32>
    %c2_40 = arith.constant 2 : index
    %c0_41 = arith.constant 0 : index
    %c0_42 = arith.constant 0 : index
    %73 = vector.load %arg4[%c2_40, %c0_41, %c0_42] : memref<18x128x32xf32, #tpu.memory_space<vmem>>, vector<1x128x32xf32>
    %74 = vector.shape_cast %73 : vector<1x128x32xf32> to vector<128x32xf32>
    %cst_43 = arith.constant dense<0.000000e+00> : vector<54x32xf32>
    %75 = tpu.matmul %72, %74, %cst_43 {dimension_numbers = #tpu.dot_dimension_numbers<[1], [0], [0], [1], [0, 0, 1, 1], [], []>} : vector<54x128xf32>, vector<128x32xf32>, vector<54x32xf32> -> vector<54x32xf32>
    %76 = arith.addf %67, %75 : vector<54x32xf32>
    %77 = vector.extract_strided_slice %50 {offsets = [12, 0], sizes = [54, 32], strides = [1, 1]} : vector<77x32xf32> to vector<54x32xf32>
    %78 = vector.extract_strided_slice %50 {offsets = [13, 0], sizes = [54, 32], strides = [1, 1]} : vector<77x32xf32> to vector<54x32xf32>
    %79 = vector.extract_strided_slice %50 {offsets = [14, 0], sizes = [54, 32], strides = [1, 1]} : vector<77x32xf32> to vector<54x32xf32>
    %80 = vector.extract_strided_slice %50 {offsets = [15, 0], sizes = [54, 32], strides = [1, 1]} : vector<77x32xf32> to vector<54x32xf32>
    %81 = tpu.concatenate %77, %78, %79, %80 in 1 : vector<54x32xf32>, vector<54x32xf32>, vector<54x32xf32>, vector<54x32xf32> -> vector<54x128xf32>
    %c3_44 = arith.constant 3 : index
    %c0_45 = arith.constant 0 : index
    %c0_46 = arith.constant 0 : index
    %82 = vector.load %arg4[%c3_44, %c0_45, %c0_46] : memref<18x128x32xf32, #tpu.memory_space<vmem>>, vector<1x128x32xf32>
    %83 = vector.shape_cast %82 : vector<1x128x32xf32> to vector<128x32xf32>
    %cst_47 = arith.constant dense<0.000000e+00> : vector<54x32xf32>
    %84 = tpu.matmul %81, %83, %cst_47 {dimension_numbers = #tpu.dot_dimension_numbers<[1], [0], [0], [1], [0, 0, 1, 1], [], []>} : vector<54x128xf32>, vector<128x32xf32>, vector<54x32xf32> -> vector<54x32xf32>
    %85 = arith.addf %76, %84 : vector<54x32xf32>
    %86 = vector.extract_strided_slice %50 {offsets = [16, 0], sizes = [54, 32], strides = [1, 1]} : vector<77x32xf32> to vector<54x32xf32>
    %87 = vector.extract_strided_slice %50 {offsets = [17, 0], sizes = [54, 32], strides = [1, 1]} : vector<77x32xf32> to vector<54x32xf32>
    %88 = vector.extract_strided_slice %50 {offsets = [18, 0], sizes = [54, 32], strides = [1, 1]} : vector<77x32xf32> to vector<54x32xf32>
    %89 = vector.extract_strided_slice %50 {offsets = [19, 0], sizes = [54, 32], strides = [1, 1]} : vector<77x32xf32> to vector<54x32xf32>
    %90 = tpu.concatenate %86, %87, %88, %89 in 1 : vector<54x32xf32>, vector<54x32xf32>, vector<54x32xf32>, vector<54x32xf32> -> vector<54x128xf32>
    %c4_48 = arith.constant 4 : index
    %c0_49 = arith.constant 0 : index
    %c0_50 = arith.constant 0 : index
    %91 = vector.load %arg4[%c4_48, %c0_49, %c0_50] : memref<18x128x32xf32, #tpu.memory_space<vmem>>, vector<1x128x32xf32>
    %92 = vector.shape_cast %91 : vector<1x128x32xf32> to vector<128x32xf32>
    %cst_51 = arith.constant dense<0.000000e+00> : vector<54x32xf32>
    %93 = tpu.matmul %90, %92, %cst_51 {dimension_numbers = #tpu.dot_dimension_numbers<[1], [0], [0], [1], [0, 0, 1, 1], [], []>} : vector<54x128xf32>, vector<128x32xf32>, vector<54x32xf32> -> vector<54x32xf32>
    %94 = arith.addf %85, %93 : vector<54x32xf32>
    %95 = vector.extract_strided_slice %50 {offsets = [20, 0], sizes = [54, 32], strides = [1, 1]} : vector<77x32xf32> to vector<54x32xf32>
    %96 = vector.extract_strided_slice %50 {offsets = [21, 0], sizes = [54, 32], strides = [1, 1]} : vector<77x32xf32> to vector<54x32xf32>
    %97 = vector.extract_strided_slice %50 {offsets = [22, 0], sizes = [54, 32], strides = [1, 1]} : vector<77x32xf32> to vector<54x32xf32>
    %98 = vector.extract_strided_slice %50 {offsets = [23, 0], sizes = [54, 32], strides = [1, 1]} : vector<77x32xf32> to vector<54x32xf32>
    %99 = tpu.concatenate %95, %96, %97, %98 in 1 : vector<54x32xf32>, vector<54x32xf32>, vector<54x32xf32>, vector<54x32xf32> -> vector<54x128xf32>
    %c5_52 = arith.constant 5 : index
    %c0_53 = arith.constant 0 : index
    %c0_54 = arith.constant 0 : index
    %100 = vector.load %arg4[%c5_52, %c0_53, %c0_54] : memref<18x128x32xf32, #tpu.memory_space<vmem>>, vector<1x128x32xf32>
    %101 = vector.shape_cast %100 : vector<1x128x32xf32> to vector<128x32xf32>
    %cst_55 = arith.constant dense<0.000000e+00> : vector<54x32xf32>
    %102 = tpu.matmul %99, %101, %cst_55 {dimension_numbers = #tpu.dot_dimension_numbers<[1], [0], [0], [1], [0, 0, 1, 1], [], []>} : vector<54x128xf32>, vector<128x32xf32>, vector<54x32xf32> -> vector<54x32xf32>
    %103 = arith.addf %94, %102 : vector<54x32xf32>
    %c0_56 = arith.constant 0 : index
    %c0_57 = arith.constant 0 : index
    %c0_58 = arith.constant 0 : index
    %104 = vector.load %arg5[%c0_56, %c0_57, %c0_58] : memref<3x1x32xf32, #tpu.memory_space<vmem>>, vector<1x1x32xf32>
    %105 = vector.shape_cast %104 : vector<1x1x32xf32> to vector<1x32xf32>
    %106 = vector.broadcast %105 : vector<1x32xf32> to vector<54x32xf32>
    %107 = arith.addf %103, %106 : vector<54x32xf32>
    %cst_59 = arith.constant 0.000000e+00 : f32
    %108 = vector.broadcast %cst_59 : f32 to vector<54x32xf32>
    %109 = arith.cmpf ogt, %107, %108 : vector<54x32xf32>
    %cst_60 = arith.constant 0.000000e+00 : f32
    %110 = vector.broadcast %cst_60 : f32 to vector<54x32xf32>
    %111 = arith.minimumf %107, %110 : vector<54x32xf32>
    %112 = math.exp %111 : vector<54x32xf32>
    %cst_61 = arith.constant 1.000000e+00 : f32
    %113 = vector.broadcast %cst_61 : f32 to vector<54x32xf32>
    %114 = arith.subf %112, %113 : vector<54x32xf32>
    %115 = arith.select %109, %107, %114 : vector<54x32xi1>, vector<54x32xf32>
    %c0_62 = arith.constant 0 : index
    %c0_63 = arith.constant 0 : index
    %c0_64 = arith.constant 0 : index
    %116 = vector.load %arg6[%c0_62, %c0_63, %c0_64] : memref<3x32x32xf32, #tpu.memory_space<vmem>>, vector<1x32x32xf32>
    %117 = vector.shape_cast %116 : vector<1x32x32xf32> to vector<32x32xf32>
    %cst_65 = arith.constant dense<0.000000e+00> : vector<54x32xf32>
    %118 = tpu.matmul %115, %117, %cst_65 {dimension_numbers = #tpu.dot_dimension_numbers<[1], [0], [0], [1], [0, 0, 1, 1], [], []>} : vector<54x32xf32>, vector<32x32xf32>, vector<54x32xf32> -> vector<54x32xf32>
    %119 = arith.addf %6, %118 : vector<54x32xf32>
    %c0_66 = arith.constant 0 : index
    %c0_67 = arith.constant 0 : index
    %c0_68 = arith.constant 0 : index
    %120 = vector.load %arg7[%c0_66, %c0_67, %c0_68] : memref<3x1x32xf32, #tpu.memory_space<vmem>>, vector<1x1x32xf32>
    %121 = vector.shape_cast %120 : vector<1x1x32xf32> to vector<1x32xf32>
    %122 = vector.broadcast %121 : vector<1x32xf32> to vector<54x32xf32>
    %123 = arith.addf %119, %122 : vector<54x32xf32>
    %cst_69 = arith.constant 0.000000e+00 : f32
    %124 = vector.broadcast %cst_69 : f32 to vector<54x32xf32>
    %125 = arith.cmpf ogt, %123, %124 : vector<54x32xf32>
    %cst_70 = arith.constant 0.000000e+00 : f32
    %126 = vector.broadcast %cst_70 : f32 to vector<54x32xf32>
    %127 = arith.minimumf %123, %126 : vector<54x32xf32>
    %128 = math.exp %127 : vector<54x32xf32>
    %cst_71 = arith.constant 1.000000e+00 : f32
    %129 = vector.broadcast %cst_71 : f32 to vector<54x32xf32>
    %130 = arith.subf %128, %129 : vector<54x32xf32>
    %131 = arith.select %125, %123, %130 : vector<54x32xi1>, vector<54x32xf32>
    %c10_72 = arith.constant 10 : index
    %c0_73 = arith.constant 0 : index
    %132 = vector.load %arg11[%c10_72, %c0_73] : memref<77x32xf32, #tpu.memory_space<vmem>>, vector<54x32xf32>
    tpu.vector_store %arg11[%c10_72, %c0_73], %131 {strides = array<i32>} : memref<77x32xf32, #tpu.memory_space<vmem>>, vector<54x32xf32>,
    %133 = vector.extract_strided_slice %131 {offsets = [1, 0], sizes = [1, 32], strides = [1, 1]} : vector<54x32xf32> to vector<1x32xf32>
    %c9_74 = arith.constant 9 : index
    %c0_75 = arith.constant 0 : index
    %134 = vector.load %arg11[%c9_74, %c0_75] : memref<77x32xf32, #tpu.memory_space<vmem>>, vector<1x32xf32>
    tpu.vector_store %arg11[%c9_74, %c0_75], %133 {strides = array<i32>} : memref<77x32xf32, #tpu.memory_space<vmem>>, vector<1x32xf32>,
    %135 = vector.extract_strided_slice %131 {offsets = [52, 0], sizes = [1, 32], strides = [1, 1]} : vector<54x32xf32> to vector<1x32xf32>
    %c64_76 = arith.constant 64 : index
    %c0_77 = arith.constant 0 : index
    %136 = vector.load %arg11[%c64_76, %c0_77] : memref<77x32xf32, #tpu.memory_space<vmem>>, vector<1x32xf32>
    tpu.vector_store %arg11[%c64_76, %c0_77], %135 {strides = array<i32>} : memref<77x32xf32, #tpu.memory_space<vmem>>, vector<1x32xf32>,
    %137 = vector.extract_strided_slice %131 {offsets = [2, 0], sizes = [1, 32], strides = [1, 1]} : vector<54x32xf32> to vector<1x32xf32>
    %c8_78 = arith.constant 8 : index
    %c0_79 = arith.constant 0 : index
    %138 = vector.load %arg11[%c8_78, %c0_79] : memref<77x32xf32, #tpu.memory_space<vmem>>, vector<1x32xf32>
    tpu.vector_store %arg11[%c8_78, %c0_79], %137 {strides = array<i32>} : memref<77x32xf32, #tpu.memory_space<vmem>>, vector<1x32xf32>,
    %139 = vector.extract_strided_slice %131 {offsets = [51, 0], sizes = [1, 32], strides = [1, 1]} : vector<54x32xf32> to vector<1x32xf32>
    %c65_80 = arith.constant 65 : index
    %c0_81 = arith.constant 0 : index
    %140 = vector.load %arg11[%c65_80, %c0_81] : memref<77x32xf32, #tpu.memory_space<vmem>>, vector<1x32xf32>
    tpu.vector_store %arg11[%c65_80, %c0_81], %139 {strides = array<i32>} : memref<77x32xf32, #tpu.memory_space<vmem>>, vector<1x32xf32>,
    %141 = vector.extract_strided_slice %131 {offsets = [3, 0], sizes = [1, 32], strides = [1, 1]} : vector<54x32xf32> to vector<1x32xf32>
    %c7_82 = arith.constant 7 : index
    %c0_83 = arith.constant 0 : index
    %142 = vector.load %arg11[%c7_82, %c0_83] : memref<77x32xf32, #tpu.memory_space<vmem>>, vector<1x32xf32>
    tpu.vector_store %arg11[%c7_82, %c0_83], %141 {strides = array<i32>} : memref<77x32xf32, #tpu.memory_space<vmem>>, vector<1x32xf32>,
    %143 = vector.extract_strided_slice %131 {offsets = [50, 0], sizes = [1, 32], strides = [1, 1]} : vector<54x32xf32> to vector<1x32xf32>
    %c66_84 = arith.constant 66 : index
    %c0_85 = arith.constant 0 : index
    %144 = vector.load %arg11[%c66_84, %c0_85] : memref<77x32xf32, #tpu.memory_space<vmem>>, vector<1x32xf32>
    tpu.vector_store %arg11[%c66_84, %c0_85], %143 {strides = array<i32>} : memref<77x32xf32, #tpu.memory_space<vmem>>, vector<1x32xf32>,
    %145 = vector.extract_strided_slice %131 {offsets = [4, 0], sizes = [1, 32], strides = [1, 1]} : vector<54x32xf32> to vector<1x32xf32>
    %c6_86 = arith.constant 6 : index
    %c0_87 = arith.constant 0 : index
    %146 = vector.load %arg11[%c6_86, %c0_87] : memref<77x32xf32, #tpu.memory_space<vmem>>, vector<1x32xf32>
    tpu.vector_store %arg11[%c6_86, %c0_87], %145 {strides = array<i32>} : memref<77x32xf32, #tpu.memory_space<vmem>>, vector<1x32xf32>,
    %147 = vector.extract_strided_slice %131 {offsets = [49, 0], sizes = [1, 32], strides = [1, 1]} : vector<54x32xf32> to vector<1x32xf32>
    %c67_88 = arith.constant 67 : index
    %c0_89 = arith.constant 0 : index
    %148 = vector.load %arg11[%c67_88, %c0_89] : memref<77x32xf32, #tpu.memory_space<vmem>>, vector<1x32xf32>
    tpu.vector_store %arg11[%c67_88, %c0_89], %147 {strides = array<i32>} : memref<77x32xf32, #tpu.memory_space<vmem>>, vector<1x32xf32>,
    %149 = vector.extract_strided_slice %131 {offsets = [5, 0], sizes = [1, 32], strides = [1, 1]} : vector<54x32xf32> to vector<1x32xf32>
    %c5_90 = arith.constant 5 : index
    %c0_91 = arith.constant 0 : index
    %150 = vector.load %arg11[%c5_90, %c0_91] : memref<77x32xf32, #tpu.memory_space<vmem>>, vector<1x32xf32>
    tpu.vector_store %arg11[%c5_90, %c0_91], %149 {strides = array<i32>} : memref<77x32xf32, #tpu.memory_space<vmem>>, vector<1x32xf32>,
    %151 = vector.extract_strided_slice %131 {offsets = [48, 0], sizes = [1, 32], strides = [1, 1]} : vector<54x32xf32> to vector<1x32xf32>
    %c68_92 = arith.constant 68 : index
    %c0_93 = arith.constant 0 : index
    %152 = vector.load %arg11[%c68_92, %c0_93] : memref<77x32xf32, #tpu.memory_space<vmem>>, vector<1x32xf32>
    tpu.vector_store %arg11[%c68_92, %c0_93], %151 {strides = array<i32>} : memref<77x32xf32, #tpu.memory_space<vmem>>, vector<1x32xf32>,
    %153 = vector.extract_strided_slice %131 {offsets = [6, 0], sizes = [1, 32], strides = [1, 1]} : vector<54x32xf32> to vector<1x32xf32>
    %c4_94 = arith.constant 4 : index
    %c0_95 = arith.constant 0 : index
    %154 = vector.load %arg11[%c4_94, %c0_95] : memref<77x32xf32, #tpu.memory_space<vmem>>, vector<1x32xf32>
    tpu.vector_store %arg11[%c4_94, %c0_95], %153 {strides = array<i32>} : memref<77x32xf32, #tpu.memory_space<vmem>>, vector<1x32xf32>,
    %155 = vector.extract_strided_slice %131 {offsets = [47, 0], sizes = [1, 32], strides = [1, 1]} : vector<54x32xf32> to vector<1x32xf32>
    %c69_96 = arith.constant 69 : index
    %c0_97 = arith.constant 0 : index
    %156 = vector.load %arg11[%c69_96, %c0_97] : memref<77x32xf32, #tpu.memory_space<vmem>>, vector<1x32xf32>
    tpu.vector_store %arg11[%c69_96, %c0_97], %155 {strides = array<i32>} : memref<77x32xf32, #tpu.memory_space<vmem>>, vector<1x32xf32>,
    %157 = vector.extract_strided_slice %131 {offsets = [7, 0], sizes = [1, 32], strides = [1, 1]} : vector<54x32xf32> to vector<1x32xf32>
    %c3_98 = arith.constant 3 : index
    %c0_99 = arith.constant 0 : index
    %158 = vector.load %arg11[%c3_98, %c0_99] : memref<77x32xf32, #tpu.memory_space<vmem>>, vector<1x32xf32>
    tpu.vector_store %arg11[%c3_98, %c0_99], %157 {strides = array<i32>} : memref<77x32xf32, #tpu.memory_space<vmem>>, vector<1x32xf32>,
    %159 = vector.extract_strided_slice %131 {offsets = [46, 0], sizes = [1, 32], strides = [1, 1]} : vector<54x32xf32> to vector<1x32xf32>
    %c70_100 = arith.constant 70 : index
    %c0_101 = arith.constant 0 : index
    %160 = vector.load %arg11[%c70_100, %c0_101] : memref<77x32xf32, #tpu.memory_space<vmem>>, vector<1x32xf32>
    tpu.vector_store %arg11[%c70_100, %c0_101], %159 {strides = array<i32>} : memref<77x32xf32, #tpu.memory_space<vmem>>, vector<1x32xf32>,
    %161 = vector.extract_strided_slice %131 {offsets = [8, 0], sizes = [1, 32], strides = [1, 1]} : vector<54x32xf32> to vector<1x32xf32>
    %c2_102 = arith.constant 2 : index
    %c0_103 = arith.constant 0 : index
    %162 = vector.load %arg11[%c2_102, %c0_103] : memref<77x32xf32, #tpu.memory_space<vmem>>, vector<1x32xf32>
    tpu.vector_store %arg11[%c2_102, %c0_103], %161 {strides = array<i32>} : memref<77x32xf32, #tpu.memory_space<vmem>>, vector<1x32xf32>,
    %163 = vector.extract_strided_slice %131 {offsets = [45, 0], sizes = [1, 32], strides = [1, 1]} : vector<54x32xf32> to vector<1x32xf32>
    %c71_104 = arith.constant 71 : index
    %c0_105 = arith.constant 0 : index
    %164 = vector.load %arg11[%c71_104, %c0_105] : memref<77x32xf32, #tpu.memory_space<vmem>>, vector<1x32xf32>
    tpu.vector_store %arg11[%c71_104, %c0_105], %163 {strides = array<i32>} : memref<77x32xf32, #tpu.memory_space<vmem>>, vector<1x32xf32>,
    %165 = vector.extract_strided_slice %131 {offsets = [9, 0], sizes = [1, 32], strides = [1, 1]} : vector<54x32xf32> to vector<1x32xf32>
    %c1_106 = arith.constant 1 : index
    %c0_107 = arith.constant 0 : index
    %166 = vector.load %arg11[%c1_106, %c0_107] : memref<77x32xf32, #tpu.memory_space<vmem>>, vector<1x32xf32>
    tpu.vector_store %arg11[%c1_106, %c0_107], %165 {strides = array<i32>} : memref<77x32xf32, #tpu.memory_space<vmem>>, vector<1x32xf32>,
    %167 = vector.extract_strided_slice %131 {offsets = [44, 0], sizes = [1, 32], strides = [1, 1]} : vector<54x32xf32> to vector<1x32xf32>
    %c72_108 = arith.constant 72 : index
    %c0_109 = arith.constant 0 : index
    %168 = vector.load %arg11[%c72_108, %c0_109] : memref<77x32xf32, #tpu.memory_space<vmem>>, vector<1x32xf32>
    tpu.vector_store %arg11[%c72_108, %c0_109], %167 {strides = array<i32>} : memref<77x32xf32, #tpu.memory_space<vmem>>, vector<1x32xf32>,
    %169 = vector.extract_strided_slice %131 {offsets = [10, 0], sizes = [1, 32], strides = [1, 1]} : vector<54x32xf32> to vector<1x32xf32>
    %c0_110 = arith.constant 0 : index
    %c0_111 = arith.constant 0 : index
    %170 = vector.load %arg11[%c0_110, %c0_111] : memref<77x32xf32, #tpu.memory_space<vmem>>, vector<1x32xf32>
    tpu.vector_store %arg11[%c0_110, %c0_111], %169 {strides = array<i32>} : memref<77x32xf32, #tpu.memory_space<vmem>>, vector<1x32xf32>,
    %171 = vector.extract_strided_slice %131 {offsets = [43, 0], sizes = [1, 32], strides = [1, 1]} : vector<54x32xf32> to vector<1x32xf32>
    %c73_112 = arith.constant 73 : index
    %c0_113 = arith.constant 0 : index
    %172 = vector.load %arg11[%c73_112, %c0_113] : memref<77x32xf32, #tpu.memory_space<vmem>>, vector<1x32xf32>
    tpu.vector_store %arg11[%c73_112, %c0_113], %171 {strides = array<i32>} : memref<77x32xf32, #tpu.memory_space<vmem>>, vector<1x32xf32>,
    %c0_114 = arith.constant 0 : index
    %c0_115 = arith.constant 0 : index
    %173 = vector.load %arg11[%c0_114, %c0_115] : memref<77x32xf32, #tpu.memory_space<vmem>>, vector<77x32xf32>
    %174 = vector.extract_strided_slice %173 {offsets = [0, 0], sizes = [54, 32], strides = [1, 1]} : vector<77x32xf32> to vector<54x32xf32>
    %175 = vector.extract_strided_slice %173 {offsets = [1, 0], sizes = [54, 32], strides = [1, 1]} : vector<77x32xf32> to vector<54x32xf32>
    %176 = vector.extract_strided_slice %173 {offsets = [2, 0], sizes = [54, 32], strides = [1, 1]} : vector<77x32xf32> to vector<54x32xf32>
    %177 = vector.extract_strided_slice %173 {offsets = [3, 0], sizes = [54, 32], strides = [1, 1]} : vector<77x32xf32> to vector<54x32xf32>
    %178 = tpu.concatenate %174, %175, %176, %177 in 1 : vector<54x32xf32>, vector<54x32xf32>, vector<54x32xf32>, vector<54x32xf32> -> vector<54x128xf32>
    %c6_116 = arith.constant 6 : index
    %c0_117 = arith.constant 0 : index
    %c0_118 = arith.constant 0 : index
    %179 = vector.load %arg4[%c6_116, %c0_117, %c0_118] : memref<18x128x32xf32, #tpu.memory_space<vmem>>, vector<1x128x32xf32>
    %180 = vector.shape_cast %179 : vector<1x128x32xf32> to vector<128x32xf32>
    %cst_119 = arith.constant dense<0.000000e+00> : vector<54x32xf32>
    %181 = tpu.matmul %178, %180, %cst_119 {dimension_numbers = #tpu.dot_dimension_numbers<[1], [0], [0], [1], [0, 0, 1, 1], [], []>} : vector<54x128xf32>, vector<128x32xf32>, vector<54x32xf32> -> vector<54x32xf32>
    %182 = vector.extract_strided_slice %173 {offsets = [4, 0], sizes = [54, 32], strides = [1, 1]} : vector<77x32xf32> to vector<54x32xf32>
    %183 = vector.extract_strided_slice %173 {offsets = [5, 0], sizes = [54, 32], strides = [1, 1]} : vector<77x32xf32> to vector<54x32xf32>
    %184 = vector.extract_strided_slice %173 {offsets = [6, 0], sizes = [54, 32], strides = [1, 1]} : vector<77x32xf32> to vector<54x32xf32>
    %185 = vector.extract_strided_slice %173 {offsets = [7, 0], sizes = [54, 32], strides = [1, 1]} : vector<77x32xf32> to vector<54x32xf32>
    %186 = tpu.concatenate %182, %183, %184, %185 in 1 : vector<54x32xf32>, vector<54x32xf32>, vector<54x32xf32>, vector<54x32xf32> -> vector<54x128xf32>
    %c7_120 = arith.constant 7 : index
    %c0_121 = arith.constant 0 : index
    %c0_122 = arith.constant 0 : index
    %187 = vector.load %arg4[%c7_120, %c0_121, %c0_122] : memref<18x128x32xf32, #tpu.memory_space<vmem>>, vector<1x128x32xf32>
    %188 = vector.shape_cast %187 : vector<1x128x32xf32> to vector<128x32xf32>
    %cst_123 = arith.constant dense<0.000000e+00> : vector<54x32xf32>
    %189 = tpu.matmul %186, %188, %cst_123 {dimension_numbers = #tpu.dot_dimension_numbers<[1], [0], [0], [1], [0, 0, 1, 1], [], []>} : vector<54x128xf32>, vector<128x32xf32>, vector<54x32xf32> -> vector<54x32xf32>
    %190 = arith.addf %181, %189 : vector<54x32xf32>
    %191 = vector.extract_strided_slice %173 {offsets = [8, 0], sizes = [54, 32], strides = [1, 1]} : vector<77x32xf32> to vector<54x32xf32>
    %192 = vector.extract_strided_slice %173 {offsets = [9, 0], sizes = [54, 32], strides = [1, 1]} : vector<77x32xf32> to vector<54x32xf32>
    %193 = vector.extract_strided_slice %173 {offsets = [10, 0], sizes = [54, 32], strides = [1, 1]} : vector<77x32xf32> to vector<54x32xf32>
    %194 = vector.extract_strided_slice %173 {offsets = [11, 0], sizes = [54, 32], strides = [1, 1]} : vector<77x32xf32> to vector<54x32xf32>
    %195 = tpu.concatenate %191, %192, %193, %194 in 1 : vector<54x32xf32>, vector<54x32xf32>, vector<54x32xf32>, vector<54x32xf32> -> vector<54x128xf32>
    %c8_124 = arith.constant 8 : index
    %c0_125 = arith.constant 0 : index
    %c0_126 = arith.constant 0 : index
    %196 = vector.load %arg4[%c8_124, %c0_125, %c0_126] : memref<18x128x32xf32, #tpu.memory_space<vmem>>, vector<1x128x32xf32>
    %197 = vector.shape_cast %196 : vector<1x128x32xf32> to vector<128x32xf32>
    %cst_127 = arith.constant dense<0.000000e+00> : vector<54x32xf32>
    %198 = tpu.matmul %195, %197, %cst_127 {dimension_numbers = #tpu.dot_dimension_numbers<[1], [0], [0], [1], [0, 0, 1, 1], [], []>} : vector<54x128xf32>, vector<128x32xf32>, vector<54x32xf32> -> vector<54x32xf32>
    %199 = arith.addf %190, %198 : vector<54x32xf32>
    %200 = vector.extract_strided_slice %173 {offsets = [12, 0], sizes = [54, 32], strides = [1, 1]} : vector<77x32xf32> to vector<54x32xf32>
    %201 = vector.extract_strided_slice %173 {offsets = [13, 0], sizes = [54, 32], strides = [1, 1]} : vector<77x32xf32> to vector<54x32xf32>
    %202 = vector.extract_strided_slice %173 {offsets = [14, 0], sizes = [54, 32], strides = [1, 1]} : vector<77x32xf32> to vector<54x32xf32>
    %203 = vector.extract_strided_slice %173 {offsets = [15, 0], sizes = [54, 32], strides = [1, 1]} : vector<77x32xf32> to vector<54x32xf32>
    %204 = tpu.concatenate %200, %201, %202, %203 in 1 : vector<54x32xf32>, vector<54x32xf32>, vector<54x32xf32>, vector<54x32xf32> -> vector<54x128xf32>
    %c9_128 = arith.constant 9 : index
    %c0_129 = arith.constant 0 : index
    %c0_130 = arith.constant 0 : index
    %205 = vector.load %arg4[%c9_128, %c0_129, %c0_130] : memref<18x128x32xf32, #tpu.memory_space<vmem>>, vector<1x128x32xf32>
    %206 = vector.shape_cast %205 : vector<1x128x32xf32> to vector<128x32xf32>
    %cst_131 = arith.constant dense<0.000000e+00> : vector<54x32xf32>
    %207 = tpu.matmul %204, %206, %cst_131 {dimension_numbers = #tpu.dot_dimension_numbers<[1], [0], [0], [1], [0, 0, 1, 1], [], []>} : vector<54x128xf32>, vector<128x32xf32>, vector<54x32xf32> -> vector<54x32xf32>
    %208 = arith.addf %199, %207 : vector<54x32xf32>
    %209 = vector.extract_strided_slice %173 {offsets = [16, 0], sizes = [54, 32], strides = [1, 1]} : vector<77x32xf32> to vector<54x32xf32>
    %210 = vector.extract_strided_slice %173 {offsets = [17, 0], sizes = [54, 32], strides = [1, 1]} : vector<77x32xf32> to vector<54x32xf32>
    %211 = vector.extract_strided_slice %173 {offsets = [18, 0], sizes = [54, 32], strides = [1, 1]} : vector<77x32xf32> to vector<54x32xf32>
    %212 = vector.extract_strided_slice %173 {offsets = [19, 0], sizes = [54, 32], strides = [1, 1]} : vector<77x32xf32> to vector<54x32xf32>
    %213 = tpu.concatenate %209, %210, %211, %212 in 1 : vector<54x32xf32>, vector<54x32xf32>, vector<54x32xf32>, vector<54x32xf32> -> vector<54x128xf32>
    %c10_132 = arith.constant 10 : index
    %c0_133 = arith.constant 0 : index
    %c0_134 = arith.constant 0 : index
    %214 = vector.load %arg4[%c10_132, %c0_133, %c0_134] : memref<18x128x32xf32, #tpu.memory_space<vmem>>, vector<1x128x32xf32>
    %215 = vector.shape_cast %214 : vector<1x128x32xf32> to vector<128x32xf32>
    %cst_135 = arith.constant dense<0.000000e+00> : vector<54x32xf32>
    %216 = tpu.matmul %213, %215, %cst_135 {dimension_numbers = #tpu.dot_dimension_numbers<[1], [0], [0], [1], [0, 0, 1, 1], [], []>} : vector<54x128xf32>, vector<128x32xf32>, vector<54x32xf32> -> vector<54x32xf32>
    %217 = arith.addf %208, %216 : vector<54x32xf32>
    %218 = vector.extract_strided_slice %173 {offsets = [20, 0], sizes = [54, 32], strides = [1, 1]} : vector<77x32xf32> to vector<54x32xf32>
    %219 = vector.extract_strided_slice %173 {offsets = [21, 0], sizes = [54, 32], strides = [1, 1]} : vector<77x32xf32> to vector<54x32xf32>
    %220 = vector.extract_strided_slice %173 {offsets = [22, 0], sizes = [54, 32], strides = [1, 1]} : vector<77x32xf32> to vector<54x32xf32>
    %221 = vector.extract_strided_slice %173 {offsets = [23, 0], sizes = [54, 32], strides = [1, 1]} : vector<77x32xf32> to vector<54x32xf32>
    %222 = tpu.concatenate %218, %219, %220, %221 in 1 : vector<54x32xf32>, vector<54x32xf32>, vector<54x32xf32>, vector<54x32xf32> -> vector<54x128xf32>
    %c11 = arith.constant 11 : index
    %c0_136 = arith.constant 0 : index
    %c0_137 = arith.constant 0 : index
    %223 = vector.load %arg4[%c11, %c0_136, %c0_137] : memref<18x128x32xf32, #tpu.memory_space<vmem>>, vector<1x128x32xf32>
    %224 = vector.shape_cast %223 : vector<1x128x32xf32> to vector<128x32xf32>
    %cst_138 = arith.constant dense<0.000000e+00> : vector<54x32xf32>
    %225 = tpu.matmul %222, %224, %cst_138 {dimension_numbers = #tpu.dot_dimension_numbers<[1], [0], [0], [1], [0, 0, 1, 1], [], []>} : vector<54x128xf32>, vector<128x32xf32>, vector<54x32xf32> -> vector<54x32xf32>
    %226 = arith.addf %217, %225 : vector<54x32xf32>
    %c1_139 = arith.constant 1 : index
    %c0_140 = arith.constant 0 : index
    %c0_141 = arith.constant 0 : index
    %227 = vector.load %arg5[%c1_139, %c0_140, %c0_141] : memref<3x1x32xf32, #tpu.memory_space<vmem>>, vector<1x1x32xf32>
    %228 = vector.shape_cast %227 : vector<1x1x32xf32> to vector<1x32xf32>
    %229 = vector.broadcast %228 : vector<1x32xf32> to vector<54x32xf32>
    %230 = arith.addf %226, %229 : vector<54x32xf32>
    %cst_142 = arith.constant 0.000000e+00 : f32
    %231 = vector.broadcast %cst_142 : f32 to vector<54x32xf32>
    %232 = arith.cmpf ogt, %230, %231 : vector<54x32xf32>
    %cst_143 = arith.constant 0.000000e+00 : f32
    %233 = vector.broadcast %cst_143 : f32 to vector<54x32xf32>
    %234 = arith.minimumf %230, %233 : vector<54x32xf32>
    %235 = math.exp %234 : vector<54x32xf32>
    %cst_144 = arith.constant 1.000000e+00 : f32
    %236 = vector.broadcast %cst_144 : f32 to vector<54x32xf32>
    %237 = arith.subf %235, %236 : vector<54x32xf32>
    %238 = arith.select %232, %230, %237 : vector<54x32xi1>, vector<54x32xf32>
    %c1_145 = arith.constant 1 : index
    %c0_146 = arith.constant 0 : index
    %c0_147 = arith.constant 0 : index
    %239 = vector.load %arg6[%c1_145, %c0_146, %c0_147] : memref<3x32x32xf32, #tpu.memory_space<vmem>>, vector<1x32x32xf32>
    %240 = vector.shape_cast %239 : vector<1x32x32xf32> to vector<32x32xf32>
    %cst_148 = arith.constant dense<0.000000e+00> : vector<54x32xf32>
    %241 = tpu.matmul %238, %240, %cst_148 {dimension_numbers = #tpu.dot_dimension_numbers<[1], [0], [0], [1], [0, 0, 1, 1], [], []>} : vector<54x32xf32>, vector<32x32xf32>, vector<54x32xf32> -> vector<54x32xf32>
    %242 = arith.addf %131, %241 : vector<54x32xf32>
    %c1_149 = arith.constant 1 : index
    %c0_150 = arith.constant 0 : index
    %c0_151 = arith.constant 0 : index
    %243 = vector.load %arg7[%c1_149, %c0_150, %c0_151] : memref<3x1x32xf32, #tpu.memory_space<vmem>>, vector<1x1x32xf32>
    %244 = vector.shape_cast %243 : vector<1x1x32xf32> to vector<1x32xf32>
    %245 = vector.broadcast %244 : vector<1x32xf32> to vector<54x32xf32>
    %246 = arith.addf %242, %245 : vector<54x32xf32>
    %cst_152 = arith.constant 0.000000e+00 : f32
    %247 = vector.broadcast %cst_152 : f32 to vector<54x32xf32>
    %248 = arith.cmpf ogt, %246, %247 : vector<54x32xf32>
    %cst_153 = arith.constant 0.000000e+00 : f32
    %249 = vector.broadcast %cst_153 : f32 to vector<54x32xf32>
    %250 = arith.minimumf %246, %249 : vector<54x32xf32>
    %251 = math.exp %250 : vector<54x32xf32>
    %cst_154 = arith.constant 1.000000e+00 : f32
    %252 = vector.broadcast %cst_154 : f32 to vector<54x32xf32>
    %253 = arith.subf %251, %252 : vector<54x32xf32>
    %254 = arith.select %248, %246, %253 : vector<54x32xi1>, vector<54x32xf32>
    %c10_155 = arith.constant 10 : index
    %c0_156 = arith.constant 0 : index
    %255 = vector.load %arg11[%c10_155, %c0_156] : memref<77x32xf32, #tpu.memory_space<vmem>>, vector<54x32xf32>
    tpu.vector_store %arg11[%c10_155, %c0_156], %254 {strides = array<i32>} : memref<77x32xf32, #tpu.memory_space<vmem>>, vector<54x32xf32>,
    %256 = vector.extract_strided_slice %254 {offsets = [1, 0], sizes = [1, 32], strides = [1, 1]} : vector<54x32xf32> to vector<1x32xf32>
    %c9_157 = arith.constant 9 : index
    %c0_158 = arith.constant 0 : index
    %257 = vector.load %arg11[%c9_157, %c0_158] : memref<77x32xf32, #tpu.memory_space<vmem>>, vector<1x32xf32>
    tpu.vector_store %arg11[%c9_157, %c0_158], %256 {strides = array<i32>} : memref<77x32xf32, #tpu.memory_space<vmem>>, vector<1x32xf32>,
    %258 = vector.extract_strided_slice %254 {offsets = [52, 0], sizes = [1, 32], strides = [1, 1]} : vector<54x32xf32> to vector<1x32xf32>
    %c64_159 = arith.constant 64 : index
    %c0_160 = arith.constant 0 : index
    %259 = vector.load %arg11[%c64_159, %c0_160] : memref<77x32xf32, #tpu.memory_space<vmem>>, vector<1x32xf32>
    tpu.vector_store %arg11[%c64_159, %c0_160], %258 {strides = array<i32>} : memref<77x32xf32, #tpu.memory_space<vmem>>, vector<1x32xf32>,
    %260 = vector.extract_strided_slice %254 {offsets = [2, 0], sizes = [1, 32], strides = [1, 1]} : vector<54x32xf32> to vector<1x32xf32>
    %c8_161 = arith.constant 8 : index
    %c0_162 = arith.constant 0 : index
    %261 = vector.load %arg11[%c8_161, %c0_162] : memref<77x32xf32, #tpu.memory_space<vmem>>, vector<1x32xf32>
    tpu.vector_store %arg11[%c8_161, %c0_162], %260 {strides = array<i32>} : memref<77x32xf32, #tpu.memory_space<vmem>>, vector<1x32xf32>,
    %262 = vector.extract_strided_slice %254 {offsets = [51, 0], sizes = [1, 32], strides = [1, 1]} : vector<54x32xf32> to vector<1x32xf32>
    %c65_163 = arith.constant 65 : index
    %c0_164 = arith.constant 0 : index
    %263 = vector.load %arg11[%c65_163, %c0_164] : memref<77x32xf32, #tpu.memory_space<vmem>>, vector<1x32xf32>
    tpu.vector_store %arg11[%c65_163, %c0_164], %262 {strides = array<i32>} : memref<77x32xf32, #tpu.memory_space<vmem>>, vector<1x32xf32>,
    %264 = vector.extract_strided_slice %254 {offsets = [3, 0], sizes = [1, 32], strides = [1, 1]} : vector<54x32xf32> to vector<1x32xf32>
    %c7_165 = arith.constant 7 : index
    %c0_166 = arith.constant 0 : index
    %265 = vector.load %arg11[%c7_165, %c0_166] : memref<77x32xf32, #tpu.memory_space<vmem>>, vector<1x32xf32>
    tpu.vector_store %arg11[%c7_165, %c0_166], %264 {strides = array<i32>} : memref<77x32xf32, #tpu.memory_space<vmem>>, vector<1x32xf32>,
    %266 = vector.extract_strided_slice %254 {offsets = [50, 0], sizes = [1, 32], strides = [1, 1]} : vector<54x32xf32> to vector<1x32xf32>
    %c66_167 = arith.constant 66 : index
    %c0_168 = arith.constant 0 : index
    %267 = vector.load %arg11[%c66_167, %c0_168] : memref<77x32xf32, #tpu.memory_space<vmem>>, vector<1x32xf32>
    tpu.vector_store %arg11[%c66_167, %c0_168], %266 {strides = array<i32>} : memref<77x32xf32, #tpu.memory_space<vmem>>, vector<1x32xf32>,
    %268 = vector.extract_strided_slice %254 {offsets = [4, 0], sizes = [1, 32], strides = [1, 1]} : vector<54x32xf32> to vector<1x32xf32>
    %c6_169 = arith.constant 6 : index
    %c0_170 = arith.constant 0 : index
    %269 = vector.load %arg11[%c6_169, %c0_170] : memref<77x32xf32, #tpu.memory_space<vmem>>, vector<1x32xf32>
    tpu.vector_store %arg11[%c6_169, %c0_170], %268 {strides = array<i32>} : memref<77x32xf32, #tpu.memory_space<vmem>>, vector<1x32xf32>,
    %270 = vector.extract_strided_slice %254 {offsets = [49, 0], sizes = [1, 32], strides = [1, 1]} : vector<54x32xf32> to vector<1x32xf32>
    %c67_171 = arith.constant 67 : index
    %c0_172 = arith.constant 0 : index
    %271 = vector.load %arg11[%c67_171, %c0_172] : memref<77x32xf32, #tpu.memory_space<vmem>>, vector<1x32xf32>
    tpu.vector_store %arg11[%c67_171, %c0_172], %270 {strides = array<i32>} : memref<77x32xf32, #tpu.memory_space<vmem>>, vector<1x32xf32>,
    %272 = vector.extract_strided_slice %254 {offsets = [5, 0], sizes = [1, 32], strides = [1, 1]} : vector<54x32xf32> to vector<1x32xf32>
    %c5_173 = arith.constant 5 : index
    %c0_174 = arith.constant 0 : index
    %273 = vector.load %arg11[%c5_173, %c0_174] : memref<77x32xf32, #tpu.memory_space<vmem>>, vector<1x32xf32>
    tpu.vector_store %arg11[%c5_173, %c0_174], %272 {strides = array<i32>} : memref<77x32xf32, #tpu.memory_space<vmem>>, vector<1x32xf32>,
    %274 = vector.extract_strided_slice %254 {offsets = [48, 0], sizes = [1, 32], strides = [1, 1]} : vector<54x32xf32> to vector<1x32xf32>
    %c68_175 = arith.constant 68 : index
    %c0_176 = arith.constant 0 : index
    %275 = vector.load %arg11[%c68_175, %c0_176] : memref<77x32xf32, #tpu.memory_space<vmem>>, vector<1x32xf32>
    tpu.vector_store %arg11[%c68_175, %c0_176], %274 {strides = array<i32>} : memref<77x32xf32, #tpu.memory_space<vmem>>, vector<1x32xf32>,
    %276 = vector.extract_strided_slice %254 {offsets = [6, 0], sizes = [1, 32], strides = [1, 1]} : vector<54x32xf32> to vector<1x32xf32>
    %c4_177 = arith.constant 4 : index
    %c0_178 = arith.constant 0 : index
    %277 = vector.load %arg11[%c4_177, %c0_178] : memref<77x32xf32, #tpu.memory_space<vmem>>, vector<1x32xf32>
    tpu.vector_store %arg11[%c4_177, %c0_178], %276 {strides = array<i32>} : memref<77x32xf32, #tpu.memory_space<vmem>>, vector<1x32xf32>,
    %278 = vector.extract_strided_slice %254 {offsets = [47, 0], sizes = [1, 32], strides = [1, 1]} : vector<54x32xf32> to vector<1x32xf32>
    %c69_179 = arith.constant 69 : index
    %c0_180 = arith.constant 0 : index
    %279 = vector.load %arg11[%c69_179, %c0_180] : memref<77x32xf32, #tpu.memory_space<vmem>>, vector<1x32xf32>
    tpu.vector_store %arg11[%c69_179, %c0_180], %278 {strides = array<i32>} : memref<77x32xf32, #tpu.memory_space<vmem>>, vector<1x32xf32>,
    %280 = vector.extract_strided_slice %254 {offsets = [7, 0], sizes = [1, 32], strides = [1, 1]} : vector<54x32xf32> to vector<1x32xf32>
    %c3_181 = arith.constant 3 : index
    %c0_182 = arith.constant 0 : index
    %281 = vector.load %arg11[%c3_181, %c0_182] : memref<77x32xf32, #tpu.memory_space<vmem>>, vector<1x32xf32>
    tpu.vector_store %arg11[%c3_181, %c0_182], %280 {strides = array<i32>} : memref<77x32xf32, #tpu.memory_space<vmem>>, vector<1x32xf32>,
    %282 = vector.extract_strided_slice %254 {offsets = [46, 0], sizes = [1, 32], strides = [1, 1]} : vector<54x32xf32> to vector<1x32xf32>
    %c70_183 = arith.constant 70 : index
    %c0_184 = arith.constant 0 : index
    %283 = vector.load %arg11[%c70_183, %c0_184] : memref<77x32xf32, #tpu.memory_space<vmem>>, vector<1x32xf32>
    tpu.vector_store %arg11[%c70_183, %c0_184], %282 {strides = array<i32>} : memref<77x32xf32, #tpu.memory_space<vmem>>, vector<1x32xf32>,
    %284 = vector.extract_strided_slice %254 {offsets = [8, 0], sizes = [1, 32], strides = [1, 1]} : vector<54x32xf32> to vector<1x32xf32>
    %c2_185 = arith.constant 2 : index
    %c0_186 = arith.constant 0 : index
    %285 = vector.load %arg11[%c2_185, %c0_186] : memref<77x32xf32, #tpu.memory_space<vmem>>, vector<1x32xf32>
    tpu.vector_store %arg11[%c2_185, %c0_186], %284 {strides = array<i32>} : memref<77x32xf32, #tpu.memory_space<vmem>>, vector<1x32xf32>,
    %286 = vector.extract_strided_slice %254 {offsets = [45, 0], sizes = [1, 32], strides = [1, 1]} : vector<54x32xf32> to vector<1x32xf32>
    %c71_187 = arith.constant 71 : index
    %c0_188 = arith.constant 0 : index
    %287 = vector.load %arg11[%c71_187, %c0_188] : memref<77x32xf32, #tpu.memory_space<vmem>>, vector<1x32xf32>
    tpu.vector_store %arg11[%c71_187, %c0_188], %286 {strides = array<i32>} : memref<77x32xf32, #tpu.memory_space<vmem>>, vector<1x32xf32>,
    %288 = vector.extract_strided_slice %254 {offsets = [9, 0], sizes = [1, 32], strides = [1, 1]} : vector<54x32xf32> to vector<1x32xf32>
    %c1_189 = arith.constant 1 : index
    %c0_190 = arith.constant 0 : index
    %289 = vector.load %arg11[%c1_189, %c0_190] : memref<77x32xf32, #tpu.memory_space<vmem>>, vector<1x32xf32>
    tpu.vector_store %arg11[%c1_189, %c0_190], %288 {strides = array<i32>} : memref<77x32xf32, #tpu.memory_space<vmem>>, vector<1x32xf32>,
    %290 = vector.extract_strided_slice %254 {offsets = [44, 0], sizes = [1, 32], strides = [1, 1]} : vector<54x32xf32> to vector<1x32xf32>
    %c72_191 = arith.constant 72 : index
    %c0_192 = arith.constant 0 : index
    %291 = vector.load %arg11[%c72_191, %c0_192] : memref<77x32xf32, #tpu.memory_space<vmem>>, vector<1x32xf32>
    tpu.vector_store %arg11[%c72_191, %c0_192], %290 {strides = array<i32>} : memref<77x32xf32, #tpu.memory_space<vmem>>, vector<1x32xf32>,
    %292 = vector.extract_strided_slice %254 {offsets = [10, 0], sizes = [1, 32], strides = [1, 1]} : vector<54x32xf32> to vector<1x32xf32>
    %c0_193 = arith.constant 0 : index
    %c0_194 = arith.constant 0 : index
    %293 = vector.load %arg11[%c0_193, %c0_194] : memref<77x32xf32, #tpu.memory_space<vmem>>, vector<1x32xf32>
    tpu.vector_store %arg11[%c0_193, %c0_194], %292 {strides = array<i32>} : memref<77x32xf32, #tpu.memory_space<vmem>>, vector<1x32xf32>,
    %294 = vector.extract_strided_slice %254 {offsets = [43, 0], sizes = [1, 32], strides = [1, 1]} : vector<54x32xf32> to vector<1x32xf32>
    %c73_195 = arith.constant 73 : index
    %c0_196 = arith.constant 0 : index
    %295 = vector.load %arg11[%c73_195, %c0_196] : memref<77x32xf32, #tpu.memory_space<vmem>>, vector<1x32xf32>
    tpu.vector_store %arg11[%c73_195, %c0_196], %294 {strides = array<i32>} : memref<77x32xf32, #tpu.memory_space<vmem>>, vector<1x32xf32>,
    %c0_197 = arith.constant 0 : index
    %c0_198 = arith.constant 0 : index
    %296 = vector.load %arg11[%c0_197, %c0_198] : memref<77x32xf32, #tpu.memory_space<vmem>>, vector<77x32xf32>
    %297 = vector.extract_strided_slice %296 {offsets = [0, 0], sizes = [54, 32], strides = [1, 1]} : vector<77x32xf32> to vector<54x32xf32>
    %298 = vector.extract_strided_slice %296 {offsets = [1, 0], sizes = [54, 32], strides = [1, 1]} : vector<77x32xf32> to vector<54x32xf32>
    %299 = vector.extract_strided_slice %296 {offsets = [2, 0], sizes = [54, 32], strides = [1, 1]} : vector<77x32xf32> to vector<54x32xf32>
    %300 = vector.extract_strided_slice %296 {offsets = [3, 0], sizes = [54, 32], strides = [1, 1]} : vector<77x32xf32> to vector<54x32xf32>
    %301 = tpu.concatenate %297, %298, %299, %300 in 1 : vector<54x32xf32>, vector<54x32xf32>, vector<54x32xf32>, vector<54x32xf32> -> vector<54x128xf32>
    %c12 = arith.constant 12 : index
    %c0_199 = arith.constant 0 : index
    %c0_200 = arith.constant 0 : index
    %302 = vector.load %arg4[%c12, %c0_199, %c0_200] : memref<18x128x32xf32, #tpu.memory_space<vmem>>, vector<1x128x32xf32>
    %303 = vector.shape_cast %302 : vector<1x128x32xf32> to vector<128x32xf32>
    %cst_201 = arith.constant dense<0.000000e+00> : vector<54x32xf32>
    %304 = tpu.matmul %301, %303, %cst_201 {dimension_numbers = #tpu.dot_dimension_numbers<[1], [0], [0], [1], [0, 0, 1, 1], [], []>} : vector<54x128xf32>, vector<128x32xf32>, vector<54x32xf32> -> vector<54x32xf32>
    %305 = vector.extract_strided_slice %296 {offsets = [4, 0], sizes = [54, 32], strides = [1, 1]} : vector<77x32xf32> to vector<54x32xf32>
    %306 = vector.extract_strided_slice %296 {offsets = [5, 0], sizes = [54, 32], strides = [1, 1]} : vector<77x32xf32> to vector<54x32xf32>
    %307 = vector.extract_strided_slice %296 {offsets = [6, 0], sizes = [54, 32], strides = [1, 1]} : vector<77x32xf32> to vector<54x32xf32>
    %308 = vector.extract_strided_slice %296 {offsets = [7, 0], sizes = [54, 32], strides = [1, 1]} : vector<77x32xf32> to vector<54x32xf32>
    %309 = tpu.concatenate %305, %306, %307, %308 in 1 : vector<54x32xf32>, vector<54x32xf32>, vector<54x32xf32>, vector<54x32xf32> -> vector<54x128xf32>
    %c13 = arith.constant 13 : index
    %c0_202 = arith.constant 0 : index
    %c0_203 = arith.constant 0 : index
    %310 = vector.load %arg4[%c13, %c0_202, %c0_203] : memref<18x128x32xf32, #tpu.memory_space<vmem>>, vector<1x128x32xf32>
    %311 = vector.shape_cast %310 : vector<1x128x32xf32> to vector<128x32xf32>
    %cst_204 = arith.constant dense<0.000000e+00> : vector<54x32xf32>
    %312 = tpu.matmul %309, %311, %cst_204 {dimension_numbers = #tpu.dot_dimension_numbers<[1], [0], [0], [1], [0, 0, 1, 1], [], []>} : vector<54x128xf32>, vector<128x32xf32>, vector<54x32xf32> -> vector<54x32xf32>
    %313 = arith.addf %304, %312 : vector<54x32xf32>
    %314 = vector.extract_strided_slice %296 {offsets = [8, 0], sizes = [54, 32], strides = [1, 1]} : vector<77x32xf32> to vector<54x32xf32>
    %315 = vector.extract_strided_slice %296 {offsets = [9, 0], sizes = [54, 32], strides = [1, 1]} : vector<77x32xf32> to vector<54x32xf32>
    %316 = vector.extract_strided_slice %296 {offsets = [10, 0], sizes = [54, 32], strides = [1, 1]} : vector<77x32xf32> to vector<54x32xf32>
    %317 = vector.extract_strided_slice %296 {offsets = [11, 0], sizes = [54, 32], strides = [1, 1]} : vector<77x32xf32> to vector<54x32xf32>
    %318 = tpu.concatenate %314, %315, %316, %317 in 1 : vector<54x32xf32>, vector<54x32xf32>, vector<54x32xf32>, vector<54x32xf32> -> vector<54x128xf32>
    %c14 = arith.constant 14 : index
    %c0_205 = arith.constant 0 : index
    %c0_206 = arith.constant 0 : index
    %319 = vector.load %arg4[%c14, %c0_205, %c0_206] : memref<18x128x32xf32, #tpu.memory_space<vmem>>, vector<1x128x32xf32>
    %320 = vector.shape_cast %319 : vector<1x128x32xf32> to vector<128x32xf32>
    %cst_207 = arith.constant dense<0.000000e+00> : vector<54x32xf32>
    %321 = tpu.matmul %318, %320, %cst_207 {dimension_numbers = #tpu.dot_dimension_numbers<[1], [0], [0], [1], [0, 0, 1, 1], [], []>} : vector<54x128xf32>, vector<128x32xf32>, vector<54x32xf32> -> vector<54x32xf32>
    %322 = arith.addf %313, %321 : vector<54x32xf32>
    %323 = vector.extract_strided_slice %296 {offsets = [12, 0], sizes = [54, 32], strides = [1, 1]} : vector<77x32xf32> to vector<54x32xf32>
    %324 = vector.extract_strided_slice %296 {offsets = [13, 0], sizes = [54, 32], strides = [1, 1]} : vector<77x32xf32> to vector<54x32xf32>
    %325 = vector.extract_strided_slice %296 {offsets = [14, 0], sizes = [54, 32], strides = [1, 1]} : vector<77x32xf32> to vector<54x32xf32>
    %326 = vector.extract_strided_slice %296 {offsets = [15, 0], sizes = [54, 32], strides = [1, 1]} : vector<77x32xf32> to vector<54x32xf32>
    %327 = tpu.concatenate %323, %324, %325, %326 in 1 : vector<54x32xf32>, vector<54x32xf32>, vector<54x32xf32>, vector<54x32xf32> -> vector<54x128xf32>
    %c15 = arith.constant 15 : index
    %c0_208 = arith.constant 0 : index
    %c0_209 = arith.constant 0 : index
    %328 = vector.load %arg4[%c15, %c0_208, %c0_209] : memref<18x128x32xf32, #tpu.memory_space<vmem>>, vector<1x128x32xf32>
    %329 = vector.shape_cast %328 : vector<1x128x32xf32> to vector<128x32xf32>
    %cst_210 = arith.constant dense<0.000000e+00> : vector<54x32xf32>
    %330 = tpu.matmul %327, %329, %cst_210 {dimension_numbers = #tpu.dot_dimension_numbers<[1], [0], [0], [1], [0, 0, 1, 1], [], []>} : vector<54x128xf32>, vector<128x32xf32>, vector<54x32xf32> -> vector<54x32xf32>
    %331 = arith.addf %322, %330 : vector<54x32xf32>
    %332 = vector.extract_strided_slice %296 {offsets = [16, 0], sizes = [54, 32], strides = [1, 1]} : vector<77x32xf32> to vector<54x32xf32>
    %333 = vector.extract_strided_slice %296 {offsets = [17, 0], sizes = [54, 32], strides = [1, 1]} : vector<77x32xf32> to vector<54x32xf32>
    %334 = vector.extract_strided_slice %296 {offsets = [18, 0], sizes = [54, 32], strides = [1, 1]} : vector<77x32xf32> to vector<54x32xf32>
    %335 = vector.extract_strided_slice %296 {offsets = [19, 0], sizes = [54, 32], strides = [1, 1]} : vector<77x32xf32> to vector<54x32xf32>
    %336 = tpu.concatenate %332, %333, %334, %335 in 1 : vector<54x32xf32>, vector<54x32xf32>, vector<54x32xf32>, vector<54x32xf32> -> vector<54x128xf32>
    %c16 = arith.constant 16 : index
    %c0_211 = arith.constant 0 : index
    %c0_212 = arith.constant 0 : index
    %337 = vector.load %arg4[%c16, %c0_211, %c0_212] : memref<18x128x32xf32, #tpu.memory_space<vmem>>, vector<1x128x32xf32>
    %338 = vector.shape_cast %337 : vector<1x128x32xf32> to vector<128x32xf32>
    %cst_213 = arith.constant dense<0.000000e+00> : vector<54x32xf32>
    %339 = tpu.matmul %336, %338, %cst_213 {dimension_numbers = #tpu.dot_dimension_numbers<[1], [0], [0], [1], [0, 0, 1, 1], [], []>} : vector<54x128xf32>, vector<128x32xf32>, vector<54x32xf32> -> vector<54x32xf32>
    %340 = arith.addf %331, %339 : vector<54x32xf32>
    %341 = vector.extract_strided_slice %296 {offsets = [20, 0], sizes = [54, 32], strides = [1, 1]} : vector<77x32xf32> to vector<54x32xf32>
    %342 = vector.extract_strided_slice %296 {offsets = [21, 0], sizes = [54, 32], strides = [1, 1]} : vector<77x32xf32> to vector<54x32xf32>
    %343 = vector.extract_strided_slice %296 {offsets = [22, 0], sizes = [54, 32], strides = [1, 1]} : vector<77x32xf32> to vector<54x32xf32>
    %344 = vector.extract_strided_slice %296 {offsets = [23, 0], sizes = [54, 32], strides = [1, 1]} : vector<77x32xf32> to vector<54x32xf32>
    %345 = tpu.concatenate %341, %342, %343, %344 in 1 : vector<54x32xf32>, vector<54x32xf32>, vector<54x32xf32>, vector<54x32xf32> -> vector<54x128xf32>
    %c17 = arith.constant 17 : index
    %c0_214 = arith.constant 0 : index
    %c0_215 = arith.constant 0 : index
    %346 = vector.load %arg4[%c17, %c0_214, %c0_215] : memref<18x128x32xf32, #tpu.memory_space<vmem>>, vector<1x128x32xf32>
    %347 = vector.shape_cast %346 : vector<1x128x32xf32> to vector<128x32xf32>
    %cst_216 = arith.constant dense<0.000000e+00> : vector<54x32xf32>
    %348 = tpu.matmul %345, %347, %cst_216 {dimension_numbers = #tpu.dot_dimension_numbers<[1], [0], [0], [1], [0, 0, 1, 1], [], []>} : vector<54x128xf32>, vector<128x32xf32>, vector<54x32xf32> -> vector<54x32xf32>
    %349 = arith.addf %340, %348 : vector<54x32xf32>
    %c2_217 = arith.constant 2 : index
    %c0_218 = arith.constant 0 : index
    %c0_219 = arith.constant 0 : index
    %350 = vector.load %arg5[%c2_217, %c0_218, %c0_219] : memref<3x1x32xf32, #tpu.memory_space<vmem>>, vector<1x1x32xf32>
    %351 = vector.shape_cast %350 : vector<1x1x32xf32> to vector<1x32xf32>
    %352 = vector.broadcast %351 : vector<1x32xf32> to vector<54x32xf32>
    %353 = arith.addf %349, %352 : vector<54x32xf32>
    %cst_220 = arith.constant 0.000000e+00 : f32
    %354 = vector.broadcast %cst_220 : f32 to vector<54x32xf32>
    %355 = arith.cmpf ogt, %353, %354 : vector<54x32xf32>
    %cst_221 = arith.constant 0.000000e+00 : f32
    %356 = vector.broadcast %cst_221 : f32 to vector<54x32xf32>
    %357 = arith.minimumf %353, %356 : vector<54x32xf32>
    %358 = math.exp %357 : vector<54x32xf32>
    %cst_222 = arith.constant 1.000000e+00 : f32
    %359 = vector.broadcast %cst_222 : f32 to vector<54x32xf32>
    %360 = arith.subf %358, %359 : vector<54x32xf32>
    %361 = arith.select %355, %353, %360 : vector<54x32xi1>, vector<54x32xf32>
    %c2_223 = arith.constant 2 : index
    %c0_224 = arith.constant 0 : index
    %c0_225 = arith.constant 0 : index
    %362 = vector.load %arg6[%c2_223, %c0_224, %c0_225] : memref<3x32x32xf32, #tpu.memory_space<vmem>>, vector<1x32x32xf32>
    %363 = vector.shape_cast %362 : vector<1x32x32xf32> to vector<32x32xf32>
    %cst_226 = arith.constant dense<0.000000e+00> : vector<54x32xf32>
    %364 = tpu.matmul %361, %363, %cst_226 {dimension_numbers = #tpu.dot_dimension_numbers<[1], [0], [0], [1], [0, 0, 1, 1], [], []>} : vector<54x32xf32>, vector<32x32xf32>, vector<54x32xf32> -> vector<54x32xf32>
    %365 = arith.addf %254, %364 : vector<54x32xf32>
    %c2_227 = arith.constant 2 : index
    %c0_228 = arith.constant 0 : index
    %c0_229 = arith.constant 0 : index
    %366 = vector.load %arg7[%c2_227, %c0_228, %c0_229] : memref<3x1x32xf32, #tpu.memory_space<vmem>>, vector<1x1x32xf32>
    %367 = vector.shape_cast %366 : vector<1x1x32xf32> to vector<1x32xf32>
    %368 = vector.broadcast %367 : vector<1x32xf32> to vector<54x32xf32>
    %369 = arith.addf %365, %368 : vector<54x32xf32>
    %cst_230 = arith.constant 0.000000e+00 : f32
    %370 = vector.broadcast %cst_230 : f32 to vector<54x32xf32>
    %371 = arith.cmpf ogt, %369, %370 : vector<54x32xf32>
    %cst_231 = arith.constant 0.000000e+00 : f32
    %372 = vector.broadcast %cst_231 : f32 to vector<54x32xf32>
    %373 = arith.minimumf %369, %372 : vector<54x32xf32>
    %374 = math.exp %373 : vector<54x32xf32>
    %cst_232 = arith.constant 1.000000e+00 : f32
    %375 = vector.broadcast %cst_232 : f32 to vector<54x32xf32>
    %376 = arith.subf %374, %375 : vector<54x32xf32>
    %377 = arith.select %371, %369, %376 : vector<54x32xi1>, vector<54x32xf32>
    %378 = vector.extract_strided_slice %377 {offsets = [0, 0], sizes = [51, 32], strides = [1, 1]} : vector<54x32xf32> to vector<51x32xf32>
    %379 = vector.extract_strided_slice %377 {offsets = [1, 0], sizes = [51, 32], strides = [1, 1]} : vector<54x32xf32> to vector<51x32xf32>
    %380 = vector.extract_strided_slice %377 {offsets = [2, 0], sizes = [51, 32], strides = [1, 1]} : vector<54x32xf32> to vector<51x32xf32>
    %381 = vector.extract_strided_slice %377 {offsets = [3, 0], sizes = [51, 32], strides = [1, 1]} : vector<54x32xf32> to vector<51x32xf32>
    %382 = tpu.concatenate %378, %379, %380, %381 in 1 : vector<51x32xf32>, vector<51x32xf32>, vector<51x32xf32>, vector<51x32xf32> -> vector<51x128xf32>
    %c0_233 = arith.constant 0 : index
    %c0_234 = arith.constant 0 : index
    %383 = vector.load %arg8[%c0_233, %c0_234] : memref<128x8xf32, #tpu.memory_space<vmem>>, vector<128x8xf32>
    %cst_235 = arith.constant dense<0.000000e+00> : vector<51x8xf32>
    %384 = tpu.matmul %382, %383, %cst_235 {dimension_numbers = #tpu.dot_dimension_numbers<[1], [0], [0], [1], [0, 0, 1, 1], [], []>} : vector<51x128xf32>, vector<128x8xf32>, vector<51x8xf32> -> vector<51x8xf32>
    %c0_236 = arith.constant 0 : index
    %c0_237 = arith.constant 0 : index
    %385 = vector.load %arg9[%c0_236, %c0_237] : memref<1x8xf32, #tpu.memory_space<vmem>>, vector<1x8xf32>
    %386 = vector.broadcast %385 : vector<1x8xf32> to vector<51x8xf32>
    %387 = arith.addf %384, %386 : vector<51x8xf32>
    %c0_238 = arith.constant 0 : index
    %c0_239 = arith.constant 0 : index
    %c0_240 = arith.constant 0 : index
    %388 = vector.load %arg10[%c0_238, %c0_239, %c0_240] : memref<1x51x8xf32, #tpu.memory_space<vmem>>, vector<1x51x8xf32>
    %389 = vector.shape_cast %388 : vector<1x51x8xf32> to vector<51x8xf32>
    %390 = vector.shape_cast %387 : vector<51x8xf32> to vector<1x51x8xf32>
    tpu.vector_store %arg10[%c0_238, %c0_239, %c0_240], %390 {strides = array<i32>} : memref<1x51x8xf32, #tpu.memory_space<vmem>>, vector<1x51x8xf32>,
    return
  }
  func.func @transform_0(%arg0: i32) -> (i32, i32, i32) {
    %c0_i32 = arith.constant 0 : i32
    %c0_i32_0 = arith.constant 0 : i32
    %c0_i32_1 = arith.constant 0 : i32
    return %arg0, %c0_i32, %c0_i32_0 : i32, i32, i32
  }
  func.func @transform_1(%arg0: i32) -> (i32, i32) {
    %c0_i32 = arith.constant 0 : i32
    %c0_i32_0 = arith.constant 0 : i32
    %c0_i32_1 = arith.constant 0 : i32
    return %c0_i32, %c0_i32_0 : i32, i32
  }
  func.func @transform_2(%arg0: i32) -> (i32, i32) {
    %c0_i32 = arith.constant 0 : i32
    %c0_i32_0 = arith.constant 0 : i32
    %c0_i32_1 = arith.constant 0 : i32
    return %c0_i32, %c0_i32_0 : i32, i32
  }
  func.func @transform_3(%arg0: i32) -> (i32, i32, i32) {
    %c0_i32 = arith.constant 0 : i32
    %c0_i32_0 = arith.constant 0 : i32
    %c0_i32_1 = arith.constant 0 : i32
    %c0_i32_2 = arith.constant 0 : i32
    return %c0_i32, %c0_i32_0, %c0_i32_1 : i32, i32, i32
  }
  func.func @transform_4(%arg0: i32) -> (i32, i32, i32) {
    %c0_i32 = arith.constant 0 : i32
    %c0_i32_0 = arith.constant 0 : i32
    %c0_i32_1 = arith.constant 0 : i32
    %c0_i32_2 = arith.constant 0 : i32
    return %c0_i32, %c0_i32_0, %c0_i32_1 : i32, i32, i32
  }
  func.func @transform_5(%arg0: i32) -> (i32, i32, i32) {
    %c0_i32 = arith.constant 0 : i32
    %c0_i32_0 = arith.constant 0 : i32
    %c0_i32_1 = arith.constant 0 : i32
    %c0_i32_2 = arith.constant 0 : i32
    return %c0_i32, %c0_i32_0, %c0_i32_1 : i32, i32, i32
  }
  func.func @transform_6(%arg0: i32) -> (i32, i32, i32) {
    %c0_i32 = arith.constant 0 : i32
    %c0_i32_0 = arith.constant 0 : i32
    %c0_i32_1 = arith.constant 0 : i32
    %c0_i32_2 = arith.constant 0 : i32
    return %c0_i32, %c0_i32_0, %c0_i32_1 : i32, i32, i32
  }
  func.func @transform_7(%arg0: i32) -> (i32, i32) {
    %c0_i32 = arith.constant 0 : i32
    %c0_i32_0 = arith.constant 0 : i32
    %c0_i32_1 = arith.constant 0 : i32
    return %c0_i32, %c0_i32_0 : i32, i32
  }
  func.func @transform_8(%arg0: i32) -> (i32, i32) {
    %c0_i32 = arith.constant 0 : i32
    %c0_i32_0 = arith.constant 0 : i32
    %c0_i32_1 = arith.constant 0 : i32
    return %c0_i32, %c0_i32_0 : i32, i32
  }
  func.func @transform_9(%arg0: i32) -> (i32, i32, i32) {
    %c0_i32 = arith.constant 0 : i32
    %c0_i32_0 = arith.constant 0 : i32
    %c0_i32_1 = arith.constant 0 : i32
    return %arg0, %c0_i32, %c0_i32_0 : i32, i32, i32
  }
}

</mosaic_0001>

<bundles_post_ra>
// kernel: encoder_block_forward.1
= control target key start
LH: loop header
LB: loop body
LE: loop exit
PB: predicated region body
PF: predicated region fallthrough
CT: control target
= control target key end

     0   :  { %s3968_s30 = smov 0   ;;  %s6128_s0 = inlined_call_operand.vmem [shape: f32[2,54,84], index: 0, kind: input, shape index: {}]   ;;  %s6129_s1 = inlined_call_operand.vmem [shape: f32[84,32], index: 1, kind: input, shape index: {}]   ;;  %s6130_s2 = inlined_call_operand.vmem [shape: f32[1,32], index: 2, kind: input, shape index: {}]   ;;  %s6131_s3 = inlined_call_operand.vmem [shape: f32[18,128,32], index: 3, kind: input, shape index: {}]   ;;  %s6132_s4 = inlined_call_operand.vmem [shape: f32[3,1,32], index: 4, kind: input, shape index: {}]   ;;  %s6133_s5 = inlined_call_operand.vmem [shape: f32[3,32,32], index: 5, kind: input, shape index: {}]   ;;  %s6134_s6 = inlined_call_operand.vmem [shape: f32[3,1,32], index: 6, kind: input, shape index: {}]   ;;  %s6135_s7 = inlined_call_operand.vmem [shape: f32[128,8], index: 7, kind: input, shape index: {}]   ;;  %s6136_s8 = inlined_call_operand.vmem [shape: f32[1,8], index: 8, kind: input, shape index: {}]   ;;  %s6137_s9 = inlined_call_operand.vmem [shape: f32[2,51,8], index: 9, kind: output, shape index: {}]  }
   0x1 LB: > { %s3210_s10 = sadd.s32 4294967295, %s3912_s30   ;;  %p3214_p0 = scmp.ge.s32.totalorder %s3912_s30, 1  ;;  %s3912_s30 = sphi %s3968_s30, %s19_s30  }
   0x2   : > { %p287_p1 = scmp.lt.s32.totalorder %s3912_s30, 3 }
   0x4   : > { %p288_p2 = pnand %p3214_p0, %p287_p1 }
   0x5   : > { %p323_p3 = scmp.lt.s32.totalorder (!%p288_p2), %s3210_s10, 1  ;;  %s3915_s20 = smov (!%p288_p2), 96  }
   0x6   : > { %291 = sbr.rel (%p288_p2) target bundleno = 2000 (0x7d0), region = 56  ;;  %s3916_s21 = smov (!%p288_p2), 32  }
   0x7   : > { %s3917_s22 = smov (!%p288_p2), 64  }
   0xb   : > { %v350_v0 = vld [vmem:[%s6129_s1 + $0x50] sm:$0xf]  ;;  %vm6138_vm0 = vcmask 1043456   ;;  %v349_v1 = vld [vmem:[%s6129_s1 + $0x48] sm:$0xff]  ;;  %v348_v2 = vld [vmem:[%s6129_s1 + $0x40] sm:$0xff]  ;;  %s6260_s10 = smov (!%p323_p3, %s3210_s10), 1 }
   0xc   : > { %3217 = vmatpush.msk.msra.mxu0 %vm6138_vm0, %v350_v0  ;;  %v347_v3 = vld [vmem:[%s6129_s1 + $0x38] sm:$0xff]  ;;  %v346_v4 = vld [vmem:[%s6129_s1 + $0x30] sm:$0xff]  ;;  %v345_v5 = vld [vmem:[%s6129_s1 + $0x28] sm:$0xff]  ;;  %s3606_s27 = smul.u32 56, %s6260_s10  ;;  %vm355_vm1 = vcmask 687104   ;;  %vm421_vm2 = vcmask 261120  }
   0xd   : > { %v344_v6 = vld [vmem:[%s6129_s1 + $0x20] sm:$0xff]  ;;  %v343_v7 = vld [vmem:[%s6129_s1 + $0x18] sm:$0xff]  ;;  %v342_v8 = vld [vmem:[%s6129_s1 + $0x10] sm:$0xff]  ;;  %vm436_vm3 = vcmask 257027   ;;  %vm432_vm4 = vcmask 258052   ;;  %vm442_vm5 = vcmask 259077  }
   0xe   : > { %387 = vmatpush.msra.mxu0 %v349_v1  ;;  %v341_v9 = vld [vmem:[%s6129_s1 + $0x8] sm:$0xff]  ;;  %s327_s15 = scalar_lea.vmem %s6128_s0, %s3606_s27  ;;  %v340_v10 = vld [vmem:[%s6129_s1] sm:$0xff]  ;;  %vm446_vm6 = vcmask 260102   ;;  %vm448_vm7 = vcmask 261127   ;;  %vm430_vm8 = vcmask 254977   ;;  %vm434_vm9 = vcmask 256002   ;;  %s332_s17 = scalar_lea.vmem %s6137_s9, %s3606_s27 }
   0xf   : > { %v333_v11 = vld [vmem:[%s327_s15] sm:$0xff]  ;;  %v334_v12 = vld [vmem:[%s327_s15 + $0x8] sm:$0xff]  ;;  %v335_v13 = vld [vmem:[%s327_s15 + $0x10] sm:$0xff]  ;;  %vm444_vm10 = vcmask 253952   ;;  %vm419_vm11 = vcmask 256000   ;;  %v3914_v27 = vmov 0.0  }
  0x10   : > { %388 = vmatpush.msra.mxu0 %v348_v2  ;;  %v336_v14 = vld [vmem:[%s327_s15 + $0x18] sm:$0xff]  ;;  %v337_v15 = vld [vmem:[%s327_s15 + $0x20] sm:$0xff]  ;;  %v338_v16 = vld [vmem:[%s327_s15 + $0x28] sm:$0xff]  ;;  %420 = vst.msk [vmem:[#allocation2 + $0x4a] sm:$0x7] %vm419_vm11, %v3914_v27  ;;  %vm546_vm12 = vcmask 1044480  }
  0x11   : > { %v339_v17 = vld [vmem:[%s327_s15 + $0x30] sm:$0x3f]  ;;  %v4021_v18 = vld [vmem:[%s6130_s2] ss:$0 sm:$0xff]  ;;  %vm6142_vm13 = vcmask 1046528   ;;  %vm6143_vm14 = vcmask 1045504  }
  0x12   : > { %389 = vmatpush.msra.mxu0 %v347_v3  ;;  %vm6141_vm15 = vcmask 259072   ;;  %vm6139_vm11 = vcmask 785408  }
  0x14   : > { %390 = vmatpush.msra.mxu0 %v346_v4 }
  0x16   : > { %391 = vmatpush.msra.mxu0 %v345_v5 }
  0x18   : > { %392 = vmatpush.msra.mxu0 %v344_v6 }
  0x1a   : > { %393 = vmatpush.msra.mxu0 %v343_v7 }
  0x1c   : > { %394 = vmatpush.msra.mxu0 %v342_v8 }
  0x1e   : > { %395 = vmatpush.msra.mxu0 %v341_v9 }
  0x20   : > { %396 = vmatpush.msra.mxu0 %v340_v10 }
  0x21   : > { %3218 = vmatmul.msk.f32.vlgmr.msra.gmra.mxu0 %vm355_vm1, %v333_v11 }
  0x29   : > { %3219 = vmatmul.msk.f32.gmra.mxu0 %vm355_vm1, %v334_v12 }
  0x31   : > { %3220 = vmatmul.msk.f32.gmra.mxu0 %vm355_vm1, %v335_v13 }
  0x39   : > { %3221 = vmatmul.msk.f32.gmra.mxu0 %vm355_vm1, %v336_v14 }
  0x41   : > { %3222 = vmatmul.msk.f32.gmra.mxu0 %vm355_vm1, %v337_v15 }
  0x49   : > { %3223 = vmatmul.msk.f32.gmra.mxu0 %vm355_vm1, %v338_v16 }
  0x51   : > { %3224 = vmatmul.msk.f32.gmra.mxu0 %vm355_vm1, %v339_v17  ;;  %vm6140_vm1 = vcmask 523264  }
  0x9e   : > { %v398_v19 = vpop.f32.mrf.mxu0 }
  0x9f   : > { %v4024_v20 = vadd.f32 %v4021_v18, %v398_v19 }
  0xa1   : > { %422 = vst.msk [vmem:[#allocation2 + $0xa] sm:$0xff] %vm421_vm2, %v4024_v20 }
  0xa2   : > { %438 = vst.msk [vmem:[#allocation2 + $0x4] sm:$0x8] %vm436_vm3, %v4024_v20 }
  0xa3   : > { %440 = vst.msk [vmem:[#allocation2 + $0x2] sm:$0x10] %vm432_vm4, %v4024_v20 }
  0xa4   : > { %443 = vst.msk [vmem:[#allocation2] sm:$0x20] %vm442_vm5, %v4024_v20 }
  0xa5   : > { %447 = vst.msk [vmem:[#allocation2 - $0x2] sm:$0x40] %vm446_vm6, %v4024_v20 }
  0xa6   : > { %450 = vst.msk [vmem:[#allocation2 - $0x4] sm:$0x80] %vm448_vm7, %v4024_v20  ;;  %v401_v21 = vpop.f32.mrf.mxu0 }
  0xa7   : > { %v4039_v22 = vadd.f32 %v4021_v18, %v401_v21  ;;  %431 = vst.msk [vmem:[#allocation2 + $0x8] sm:$0x2] %vm430_vm8, %v4024_v20 }
  0xa8   : > { %435 = vst.msk [vmem:[#allocation2 + $0x6] sm:$0x4] %vm434_vm9, %v4024_v20 }
  0xa9   : > { %423 = vst.msk [vmem:[#allocation2 + $0x12] sm:$0xff] %vm421_vm2, %v4039_v22 }
  0xaa   : > { %452 = vst.msk [vmem:[#allocation2 + $0x2] sm:$0x1] %vm444_vm10, %v4039_v22 }
  0xab   : > { %454 = vst.msk [vmem:[#allocation2] sm:$0x2] %vm430_vm8, %v4039_v22 }
  0xac   : > { %456 = vst.msk [vmem:[#allocation2 - $0x2] sm:$0x4] %vm434_vm9, %v4039_v22 }
  0xae   : > { %v404_v23 = vpop.f32.mrf.mxu0 }
  0xaf   : > { %v4054_v24 = vadd.f32 %v4021_v18, %v404_v23  ;;  %v4056_v25 = vld [vmem:[#allocation2 + $0x8] sm:$0xff] }
  0xb0   : > { %v4058_v26 = vld [vmem:[#allocation2 + $0x10] sm:$0xff]  ;;  %v548_v30 = vrot.slane %v4056_v25, 3  ;;  %v477_v31 = vrot.slane %v4056_v25, 1  ;;  %v512_v45 = vrot.slane %v4056_v25, 2 }
  0xb1   : > { %424 = vst.msk [vmem:[#allocation2 + $0x1a] sm:$0xff] %vm421_vm2, %v4054_v24  ;;  %v550_v28 = vrot.slane %v4058_v26, 3  ;;  %v479_v29 = vrot.slane %v4058_v26, 1  ;;  %v514_v44 = vrot.slane %v4058_v26, 2 }
  0xb3   : > { %v4066_v32 = vld [vmem:[#allocation2] sm:$0xff]  ;;  %v551_v34 = vsel %vm546_vm12, %v548_v30, %v550_v28  ;;  %v480_v36 = vsel %vm6142_vm13, %v477_v31, %v479_v29  ;;  %v515_v47 = vsel %vm6143_vm14, %v512_v45, %v514_v44 }
  0xb4   : > { %v547_v33 = vrot.slane %v4066_v32, 3  ;;  %v476_v35 = vrot.slane %v4066_v32, 1  ;;  %v511_v43 = vrot.slane %v4066_v32, 2 }
  0xb6   : > { %v407_v37 = vpop.f32.mrf.mxu0  ;;  %v549_v38 = vsel %vm546_vm12, %v547_v33, %v548_v30  ;;  %v478_v39 = vsel %vm6142_vm13, %v476_v35, %v477_v31  ;;  %v513_v46 = vsel %vm6143_vm14, %v511_v43, %v512_v45  ;;  %v3238_v43 = vld [vmem:[%s6131_s3 + $0xe8] sm:$0xff] }
  0xb7   : > { %v4077_v40 = vadd.f32 %v4021_v18, %v407_v37  ;;  %v3629_v41 = vpack.i.bf16 %v551_v34, %v549_v38  ;;  %v3619_v42 = vpack.i.bf16 %v480_v36, %v478_v39  ;;  %v3624_v50 = vpack.i.bf16 %v515_v47, %v513_v46  ;;  %v621_v36 = vld [vmem:[%s6131_s3 + $0x78] sm:$0xff]  ;;  %v620_v37 = vld [vmem:[%s6131_s3 + $0x70] sm:$0xff]  ;;  %v3237_v46 = vld [vmem:[%s6131_s3 + $0xe0] sm:$0xff] }
  0xb8   : > { %v4094_v51 = vld [vmem:[#allocation2 + $0x18] sm:$0xff]  ;;  %732 = vmatpush.msra.mxu2 %v621_v36  ;;  %v3239_v39 = vld [vmem:[%s6131_s3 + $0xf0] sm:$0xff]  ;;  %v3229_v36 = vld [vmem:[%s6131_s3 + $0xa0] sm:$0xff] }
  0xb9   : > { %425 = vst.msk [vmem:[#allocation2 + $0x22] sm:$0xff] %vm421_vm2, %v4077_v40  ;;  %3630 = vrot.lane.b32.xlu1 %v3629_v41, %s3915_s20  ;;  %3620 = vrot.lane.b32.xlu0 %v3619_v42, %s3916_s21  ;;  %v516_v55 = vrot.slane %v4094_v51, 2  ;;  %v481_v56 = vrot.slane %v4094_v51, 1  ;;  %v552_v6 = vrot.slane %v4094_v51, 3  ;;  %v3240_v38 = vld [vmem:[%s6131_s3 + $0xf8] sm:$0xff]  ;;  %v619_v42 = vld [vmem:[%s6131_s3 + $0x68] sm:$0xff] }
  0xba   : > { %694 = vmatpush.msra.mxu1 %v3240_v38  ;;  %733 = vmatpush.msra.mxu2 %v620_v37  ;;  %v617_v47 = vld [vmem:[%s6131_s3 + $0x58] sm:$0xff]  ;;  %v608_v37 = vld [vmem:[%s6131_s3 + $0x10] sm:$0xff] }
  0xbb   : > { %v517_v62 = vsel %vm6143_vm14, %v514_v44, %v516_v55  ;;  %v482_v0 = vsel %vm6142_vm13, %v479_v29, %v481_v56  ;;  %v553_v13 = vsel %vm546_vm12, %v550_v28, %v552_v6  ;;  %3574 = vmatpush.msra.mxu3 %v3240_v38  ;;  %v618_v44 = vld [vmem:[%s6131_s3 + $0x60] sm:$0xff] }
  0xbc   : > { %695 = vmatpush.msra.mxu1 %v3239_v39  ;;  %734 = vmatpush.msra.mxu2 %v619_v42  ;;  %v3269_v38 = vld [vmem:[%s6131_s3 + $0x1e0] sm:$0xff]  ;;  %v3268_v42 = vld [vmem:[%s6131_s3 + $0x1d8] sm:$0xff] }
  0xbd   : > { %3575 = vmatpush.msra.mxu3 %v3239_v39  ;;  %v3228_v39 = vld [vmem:[%s6131_s3 + $0x98] sm:$0xff] }
  0xbe   : > { %v410_v48 = vpop.f32.mrf.mxu0  ;;  %696 = vmatpush.msra.mxu1 %v3238_v43  ;;  %735 = vmatpush.msra.mxu2 %v618_v44  ;;  %v606_v44 = vld [vmem:[%s6131_s3] sm:$0xff] }
  0xbf   : > { %v4089_v49 = vadd.f32 %v4021_v18, %v410_v48  ;;  %v3236_v48 = vld [vmem:[%s6131_s3 + $0xd8] sm:$0xff]  ;;  %3576 = vmatpush.msra.mxu3 %v3238_v43  ;;  %v3227_v43 = vld [vmem:[%s6131_s3 + $0x90] sm:$0xff] }
  0xc0   : > { %v4096_v53 = vld [vmem:[#allocation2 + $0x20] sm:$0xff]  ;;  %697 = vmatpush.msra.mxu1 %v3237_v46  ;;  %736 = vmatpush.msra.mxu2 %v617_v47  ;;  %v3266_v47 = vld [vmem:[%s6131_s3 + $0x1c8] sm:$0xff] }
  0xc1   : > { %426 = vst.msk [vmem:[#allocation2 + $0x2a] sm:$0xff] %vm421_vm2, %v4089_v49  ;;  %3625 = vrot.lane.b32.xlu0 %v3624_v50, %s3917_s22  ;;  %v518_v58 = vrot.slane %v4096_v53, 2  ;;  %v483_v60 = vrot.slane %v4096_v53, 1  ;;  %v554_v8 = vrot.slane %v4096_v53, 3  ;;  %v616_v50 = vld [vmem:[%s6131_s3 + $0x50] sm:$0xff]  ;;  %3577 = vmatpush.msra.mxu3 %v3237_v46  ;;  %v3226_v46 = vld [vmem:[%s6131_s3 + $0x88] sm:$0xff] }
  0xc2   : > { %698 = vmatpush.msra.mxu1 %v3236_v48  ;;  %737 = vmatpush.msra.mxu2 %v616_v50  ;;  %v3225_v50 = vld [vmem:[%s6131_s3 + $0x80] sm:$0xff] }
  0xc3   : > { %v519_v14 = vsel %vm6143_vm14, %v516_v55, %v518_v58  ;;  %v484_v16 = vsel %vm6142_vm13, %v481_v56, %v483_v60  ;;  %v555_v31 = vsel %vm546_vm12, %v552_v6, %v554_v8  ;;  %v615_v56 = vld [vmem:[%s6131_s3 + $0x48] sm:$0xff]  ;;  %3578 = vmatpush.msra.mxu3 %v3236_v48  ;;  %v3304_v48 = vld [vmem:[%s6131_s3 + $0x2f8] sm:$0xff] }
  0xc4   : > { %738 = vmatpush.msra.mxu2 %v615_v56  ;;  %v3303_v56 = vld [vmem:[%s6131_s3 + $0x2f0] sm:$0xff] }
  0xc6   : > { %v413_v52 = vpop.f32.mrf.mxu0 }
  0xc7   : > { %v4099_v54 = vadd.f32 %v4021_v18, %v413_v52  ;;  %v3235_v52 = vld [vmem:[%s6131_s3 + $0xd0] sm:$0xff] }
  0xc8   : > { %v4103_v57 = vld [vmem:[#allocation2 + $0x28] sm:$0xff]  ;;  %699 = vmatpush.msra.mxu1 %v3235_v52  ;;  %3579 = vmatpush.msra.mxu3 %v3235_v52  ;;  %v3265_v52 = vld [vmem:[%s6131_s3 + $0x1c0] sm:$0xff] }
  0xc9   : > { %427 = vst.msk [vmem:[#allocation2 + $0x32] sm:$0xff] %vm421_vm2, %v4099_v54  ;;  %v520_v59 = vrot.slane %v4103_v57, 2  ;;  %v485_v61 = vrot.slane %v4103_v57, 1  ;;  %v556_v4 = vrot.slane %v4103_v57, 3 }
  0xca   : > { %449 = vst.msk [vmem:[#allocation2 + $0x3e] sm:$0x80] %vm448_vm7, %v4099_v54 }
  0xcb   : > { %451 = vst.msk [vmem:[#allocation2 + $0x40] sm:$0x40] %vm446_vm6, %v4099_v54  ;;  %v521_v63 = vsel %vm6143_vm14, %v518_v58, %v520_v59  ;;  %v486_v1 = vsel %vm6142_vm13, %v483_v60, %v485_v61  ;;  %v557_v10 = vsel %vm546_vm12, %v554_v8, %v556_v4 }
  0xcc   : > { %453 = vst.msk [vmem:[#allocation2 + $0x42] sm:$0x20] %vm442_vm5, %v4099_v54  ;;  %v3639_v2 = vpack.i.bf16 %v521_v63, %v517_v62  ;;  %v3634_v3 = vpack.i.bf16 %v486_v1, %v482_v0  ;;  %v3234_v62 = vld [vmem:[%s6131_s3 + $0xc8] sm:$0xff]  ;;  %v613_v0 = vld [vmem:[%s6131_s3 + $0x38] sm:$0xff] }
  0xcd   : > { %455 = vst.msk [vmem:[#allocation2 + $0x44] sm:$0x10] %vm432_vm4, %v4099_v54  ;;  %700 = vmatpush.msra.mxu1 %v3234_v62  ;;  %3580 = vmatpush.msra.mxu3 %v3234_v62  ;;  %v3262_v62 = vld [vmem:[%s6131_s3 + $0x1a8] sm:$0xff] }
  0xce   : > { %457 = vst.msk [vmem:[#allocation2 + $0x46] sm:$0x8] %vm436_vm3, %v4099_v54  ;;  %v416_v5 = vpop.f32.mrf.mxu0  ;;  %3640 = vrot.lane.b32.xlu2 %v3639_v2, %s3917_s22  ;;  %3635 = vrot.lane.b32.xlu1 %v3634_v3, %s3916_s21  ;;  %v3233_v3 = vld [vmem:[%s6131_s3 + $0xc0] sm:$0xff] }
  0xcf   : > { %v4130_v7 = vadd.f32 %v4021_v18, %v416_v5  ;;  %v3644_v18 = vpack.i.bf16 %v557_v10, %v553_v13  ;;  %v612_v5 = vld [vmem:[%s6131_s3 + $0x30] sm:$0xff]  ;;  %701 = vmatpush.msra.mxu1 %v3233_v3  ;;  %3581 = vmatpush.msra.mxu3 %v3233_v3 }
  0xd0   : > { %v4133_v9 = vld [vmem:[#allocation2 + $0x30] sm:$0xff] }
  0xd1   : > { %429 = vst.msk [vmem:[#allocation2 + $0x3a] sm:$0x3f] %vm6141_vm15, %v4130_v7  ;;  %v4139_v11 = vrot.slane %v4133_v9, 2  ;;  %v4142_v12 = vrot.slane %v4133_v9, 1  ;;  %v558_v23 = vrot.slane %v4133_v9, 3  ;;  %v3287_v3 = vld [vmem:[%s6131_s3 + $0x270] sm:$0xff] }
  0xd2   : > { %433 = vst.msk [vmem:[#allocation2 + $0x3c] sm:$0x10] %vm432_vm4, %v4130_v7 }
  0xd3   : > { %437 = vst.msk [vmem:[#allocation2 + $0x3e] sm:$0x8] %vm436_vm3, %v4130_v7  ;;  %v523_v15 = vsel %vm6143_vm14, %v520_v59, %v4139_v11  ;;  %v488_v17 = vsel %vm6142_vm13, %v485_v61, %v4142_v12  ;;  %v559_v28 = vsel %vm546_vm12, %v556_v4, %v558_v23  ;;  %v614_v59 = vld [vmem:[%s6131_s3 + $0x40] sm:$0xff] }
  0xd4   : > { %439 = vst.msk [vmem:[#allocation2 + $0x40] sm:$0x4] %vm434_vm9, %v4130_v7  ;;  %v3654_v19 = vpack.i.bf16 %v519_v14, %v523_v15  ;;  %v3649_v21 = vpack.i.bf16 %v484_v16, %v488_v17  ;;  %v3659_v33 = vpack.i.bf16 %v555_v31, %v559_v28  ;;  %739 = vmatpush.msra.mxu2 %v614_v59  ;;  %v3272_v28 = vld [vmem:[%s6131_s3 + $0x1f8] sm:$0xff]  ;;  %v3271_v31 = vld [vmem:[%s6131_s3 + $0x1f0] sm:$0xff] }
  0xd5   : > { %441 = vst.msk [vmem:[#allocation2 + $0x42] sm:$0x2] %vm430_vm8, %v4130_v7  ;;  %v4234_v58 = vld [vmem:[#allocation2 + $0x48] sm:$0x1f]  ;;  %889 = vmatpush.msrb.mxu0 %v3272_v28  ;;  %v3264_v59 = vld [vmem:[%s6131_s3 + $0x1b8] sm:$0xff] }
  0xd6   : > { %445 = vst.msk [vmem:[#allocation2 + $0x44] sm:$0x1] %vm444_vm10, %v4130_v7  ;;  %3645 = vrot.lane.b32.xlu2 %v3644_v18, %s3915_s20  ;;  %3655 = vrot.lane.b32.xlu1 %v3654_v19, %s3917_s22  ;;  %v1003_v1 = vrot.slane %v4234_v58, 1  ;;  %v935_v2 = vrot.slane %v4234_v58, 3  ;;  %v1011_v4 = vrot.slane %v4234_v58, 2 }
  0xd7   : > { %3650 = vrot.lane.b32.xlu0 %v3649_v21, %s3916_s21  ;;  %740 = vmatpush.msra.mxu2 %v613_v0  ;;  %v3232_v21 = vld [vmem:[%s6131_s3 + $0xb8] sm:$0xff] }
  0xd8   : > { %v4167_v27 = vld [vmem:[#allocation2 + $0x38] sm:$0xff]  ;;  %702 = vmatpush.msra.mxu1 %v3232_v21  ;;  %3582 = vmatpush.msra.mxu3 %v3232_v21  ;;  %v3254_v21 = vld [vmem:[%s6131_s3 + $0x168] sm:$0xff] }
  0xd9   : > { %v4171_v29 = vrot.slane %v4167_v27, 2  ;;  %v4174_v30 = vrot.slane %v4167_v27, 1  ;;  %v560_v41 = vrot.slane %v4167_v27, 3  ;;  %741 = vmatpush.msra.mxu2 %v612_v5  ;;  %890 = vmatpush.msrb.mxu0 %v3271_v31  ;;  %v3288_v0 = vld [vmem:[%s6131_s3 + $0x278] sm:$0xff]  ;;  %v3259_v5 = vld [vmem:[%s6131_s3 + $0x190] sm:$0xff] }
  0xdb   : > { %v631_v34 = vsel %vm6143_vm14, %v4139_v11, %v4171_v29  ;;  %v623_v35 = vsel %vm6142_vm13, %v4142_v12, %v4174_v30  ;;  %v561_v45 = vsel %vm546_vm12, %v558_v23, %v560_v41  ;;  %v611_v23 = vld [vmem:[%s6131_s3 + $0x28] sm:$0xff] }
  0xdc   : > { %742 = vmatpush.msra.mxu2 %v611_v23  ;;  %v3282_v23 = vld [vmem:[%s6131_s3 + $0x248] sm:$0xff] }
  0xdd   : > { %v4229_v55 = vld [vmem:[#allocation2 + $0x40] sm:$0xff] }
  0xde   : > { %3660 = vrot.lane.b32.xlu2 %v3659_v33, %s3915_s20  ;;  %632 = vrot.lane.b32.xlu1 %v631_v34, %s3917_s22  ;;  %v839_v60 = vrot.slane %v4229_v55, 1  ;;  %v771_v61 = vrot.slane %v4229_v55, 3  ;;  %v847_v63 = vrot.slane %v4229_v55, 2  ;;  %v3230_v33 = vld [vmem:[%s6131_s3 + $0xa8] sm:$0xff]  ;;  %v609_v34 = vld [vmem:[%s6131_s3 + $0x18] sm:$0xff] }
  0xdf   : > { %624 = vrot.lane.b32.xlu0 %v623_v35, %s3916_s21  ;;  %v3270_v35 = vld [vmem:[%s6131_s3 + $0x1e8] sm:$0xff] }
  0xe0   : > { %v840_v6 = vsel %vm6142_vm13, %v4174_v30, %v839_v60  ;;  %v1004_v8 = vsel %vm6142_vm13, %v839_v60, %v1003_v1  ;;  %v772_v10 = vsel %vm546_vm12, %v560_v41, %v771_v61  ;;  %v1012_v13 = vsel %vm6143_vm14, %v847_v63, %v1011_v4  ;;  %891 = vmatpush.msrb.mxu0 %v3270_v35 }
  0xe1   : > { %v3664_v14 = vpack.i.bf16 %v1004_v8, %v840_v6  ;;  %v3679_v17 = vpack.i.bf16 %v839_v60, %v1003_v1  ;;  %v3689_v18 = vpack.i.bf16 %v771_v61, %v935_v2  ;;  %v3684_v19 = vpack.i.bf16 %v847_v63, %v1011_v4  ;;  %v3263_v60 = vld [vmem:[%s6131_s3 + $0x1b0] sm:$0xff]  ;;  %v3301_v1 = vld [vmem:[%s6131_s3 + $0x2e0] sm:$0xff]  ;;  %v3300_v4 = vld [vmem:[%s6131_s3 + $0x2d8] sm:$0xff] }
  0xe2   : > { %892 = vmatpush.msrb.mxu0 %v3269_v38  ;;  %v3286_v6 = vld [vmem:[%s6131_s3 + $0x268] sm:$0xff]  ;;  %v3252_v38 = vld [vmem:[%s6131_s3 + $0x158] sm:$0xff] }
  0xe3   : > { %v3258_v8 = vld [vmem:[%s6131_s3 + $0x188] sm:$0xff] }
  0xe4   : > { %893 = vmatpush.msrb.mxu0 %v3268_v42 }
  0xe6   : > { %574 = vrot.lane.b32.xlu2 %v561_v45, %s3915_s20  ;;  %634 = vrot.lane.b32.xlu1 %v4171_v29, %s3917_s22  ;;  %v3267_v45 = vld [vmem:[%s6131_s3 + $0x1d0] sm:$0xff] }
  0xe7   : > { %626 = vrot.lane.b32.xlu0 %v4174_v30, %s3916_s21  ;;  %v610_v30 = vld [vmem:[%s6131_s3 + $0x20] sm:$0xff]  ;;  %894 = vmatpush.msrb.mxu0 %v3267_v45 }
  0xe8   : > { %743 = vmatpush.msra.mxu2 %v610_v30  ;;  %v3297_v30 = vld [vmem:[%s6131_s3 + $0x2c0] sm:$0xff] }
  0xe9   : > { %895 = vmatpush.msrb.mxu0 %v3266_v47 }
  0xea   : > { %744 = vmatpush.msra.mxu2 %v609_v34  ;;  %v3281_v34 = vld [vmem:[%s6131_s3 + $0x240] sm:$0xff] }
  0xeb   : > { %896 = vmatpush.msrb.mxu0 %v3265_v52 }
  0xec   : > { %745 = vmatpush.msra.mxu2 %v608_v37 }
  0xed   : > { %897 = vmatpush.msrb.mxu0 %v3264_v59  ;;  %v3250_v59 = vld [vmem:[%s6131_s3 + $0x148] sm:$0xff] }
  0xee   : > { %638 = vrot.lane.b32.xlu2 %v560_v41, %s3915_s20  ;;  %536 = vrot.lane.b32.xlu1 %v4139_v11, %s3917_s22  ;;  %v936_v11 = vsel %vm546_vm12, %v771_v61, %v935_v2  ;;  %v607_v41 = vld [vmem:[%s6131_s3 + $0x8] sm:$0xff]  ;;  %v3260_v2 = vld [vmem:[%s6131_s3 + $0x198] sm:$0xff] }
  0xef   : > { %501 = vrot.lane.b32.xlu0 %v4142_v12, %s3916_s21  ;;  %v848_v12 = vsel %vm6143_vm14, %v4171_v29, %v847_v63  ;;  %v3674_v15 = vpack.i.bf16 %v936_v11, %v772_v10  ;;  %v3231_v29 = vld [vmem:[%s6131_s3 + $0xb0] sm:$0xff]  ;;  %746 = vmatpush.msra.mxu2 %v607_v41  ;;  %v3302_v61 = vld [vmem:[%s6131_s3 + $0x2e8] sm:$0xff]  ;;  %v3261_v63 = vld [vmem:[%s6131_s3 + $0x1a0] sm:$0xff] }
  0xf0   : > { %v3669_v16 = vpack.i.bf16 %v1012_v13, %v848_v12  ;;  %703 = vmatpush.msra.mxu1 %v3231_v29  ;;  %3583 = vmatpush.msra.mxu3 %v3231_v29  ;;  %v3285_v10 = vld [vmem:[%s6131_s3 + $0x260] sm:$0xff]  ;;  %v3299_v13 = vld [vmem:[%s6131_s3 + $0x2d0] sm:$0xff]  ;;  %v3296_v41 = vld [vmem:[%s6131_s3 + $0x2b8] sm:$0xff] }
  0xf1   : > { %747 = vmatpush.msra.mxu2 %v606_v44  ;;  %898 = vmatpush.msrb.mxu0 %v3263_v60  ;;  %v3257_v12 = vld [vmem:[%s6131_s3 + $0x180] sm:$0xff]  ;;  %v3295_v60 = vld [vmem:[%s6131_s3 + $0x2b0] sm:$0xff] }
  0xf2   : > { %704 = vmatpush.msra.mxu1 %v3230_v33  ;;  %3584 = vmatpush.msra.mxu3 %v3230_v33  ;;  %v3253_v33 = vld [vmem:[%s6131_s3 + $0x160] sm:$0xff] }
  0xf3   : > { %1053 = vmatpush.msrb.mxu2 %v3304_v48  ;;  %899 = vmatpush.msrb.mxu0 %v3262_v62  ;;  %v3251_v48 = vld [vmem:[%s6131_s3 + $0x150] sm:$0xff] }
  0xf4   : > { %705 = vmatpush.msra.mxu1 %v3229_v36  ;;  %3585 = vmatpush.msra.mxu3 %v3229_v36 }
  0xf5   : > { %1054 = vmatpush.msrb.mxu2 %v3303_v56  ;;  %900 = vmatpush.msrb.mxu0 %v3261_v63 }
  0xf6   : > { %3665 = vrot.lane.b32.xlu2 %v3664_v14, %s3916_s21  ;;  %3675 = vrot.lane.b32.xlu1 %v3674_v15, %s3915_s20  ;;  %v3256_v14 = vld [vmem:[%s6131_s3 + $0x178] sm:$0xff] }
  0xf7   : > { %3670 = vrot.lane.b32.xlu0 %v3669_v16, %s3917_s22  ;;  %706 = vmatpush.msra.mxu1 %v3228_v39  ;;  %v3284_v15 = vld [vmem:[%s6131_s3 + $0x258] sm:$0xff]  ;;  %v3255_v16 = vld [vmem:[%s6131_s3 + $0x170] sm:$0xff] }
  0xf8   : > { %3586 = vmatpush.msra.mxu3 %v3228_v39  ;;  %1055 = vmatpush.msrb.mxu2 %v3302_v61  ;;  %v3280_v39 = vld [vmem:[%s6131_s3 + $0x238] sm:$0xff]  ;;  %v3278_v61 = vld [vmem:[%s6131_s3 + $0x228] sm:$0xff] }
  0xf9   : > { %707 = vmatpush.msra.mxu1 %v3227_v43  ;;  %901 = vmatpush.msrb.mxu0 %v3260_v2  ;;  %v3294_v2 = vld [vmem:[%s6131_s3 + $0x2a8] sm:$0xff] }
  0xfa   : > { %3587 = vmatpush.msra.mxu3 %v3227_v43  ;;  %1056 = vmatpush.msrb.mxu2 %v3301_v1  ;;  %v3277_v1 = vld [vmem:[%s6131_s3 + $0x220] sm:$0xff] }
  0xfb   : > { %708 = vmatpush.msra.mxu1 %v3226_v46  ;;  %902 = vmatpush.msrb.mxu0 %v3259_v5  ;;  %v3247_v5 = vld [vmem:[%s6131_s3 + $0x130] sm:$0xff] }
  0xfc   : > { %3588 = vmatpush.msra.mxu3 %v3226_v46  ;;  %1057 = vmatpush.msrb.mxu2 %v3300_v4  ;;  %v3276_v4 = vld [vmem:[%s6131_s3 + $0x218] sm:$0xff] }
  0xfd   : > { %709 = vmatpush.msra.mxu1 %v3225_v50  ;;  %903 = vmatpush.msrb.mxu0 %v3258_v8 }
  0xfe   : > { %3680 = vrot.lane.b32.xlu2 %v3679_v17, %s3916_s21  ;;  %3690 = vrot.lane.b32.xlu1 %v3689_v18, %s3915_s20  ;;  %v3283_v17 = vld [vmem:[%s6131_s3 + $0x250] sm:$0xff]  ;;  %v3298_v18 = vld [vmem:[%s6131_s3 + $0x2c8] sm:$0xff] }
  0xff   : > { %3685 = vrot.lane.b32.xlu0 %v3684_v19, %s3917_s22  ;;  %3589 = vmatpush.msra.mxu3 %v3225_v50  ;;  %v3279_v50 = vld [vmem:[%s6131_s3 + $0x230] sm:$0xff] }
 0x100   : > { %958 = vmatpush.msrb.mxu1 %v3288_v0  ;;  %904 = vmatpush.msrb.mxu0 %v3257_v12  ;;  %v3249_v0 = vld [vmem:[%s6131_s3 + $0x140] sm:$0xff] }
 0x101   : > { %1058 = vmatpush.msrb.mxu2 %v3299_v13  ;;  %794 = vmatpush.msrb.mxu3 %v3256_v14  ;;  %v3274_v13 = vld [vmem:[%s6131_s3 + $0x208] sm:$0xff] }
 0x102   : > { %959 = vmatpush.msrb.mxu1 %v3287_v3  ;;  %v3248_v3 = vld [vmem:[%s6131_s3 + $0x138] sm:$0xff] }
 0x103   : > { %1059 = vmatpush.msrb.mxu2 %v3298_v18  ;;  %795 = vmatpush.msrb.mxu3 %v3255_v16  ;;  %v3245_v16 = vld [vmem:[%s6131_s3 + $0x120] sm:$0xff] }
 0x104   : > { %960 = vmatpush.msrb.mxu1 %v3286_v6  ;;  %v3275_v6 = vld [vmem:[%s6131_s3 + $0x210] sm:$0xff] }
 0x105   : > { %1060 = vmatpush.msrb.mxu2 %v3297_v30  ;;  %796 = vmatpush.msrb.mxu3 %v3254_v21  ;;  %v3273_v21 = vld [vmem:[%s6131_s3 + $0x200] sm:$0xff]  ;;  %v3244_v30 = vld [vmem:[%s6131_s3 + $0x118] sm:$0xff] }
 0x106   : > { %961 = vmatpush.msrb.mxu1 %v3285_v10  ;;  %v3246_v10 = vld [vmem:[%s6131_s3 + $0x128] sm:$0xff] }
 0x107   : > { %797 = vmatpush.msrb.mxu3 %v3253_v33  ;;  %1061 = vmatpush.msrb.mxu2 %v3296_v41 }
 0x108   : > { %962 = vmatpush.msrb.mxu1 %v3284_v15 }
 0x109   : > { %798 = vmatpush.msrb.mxu3 %v3252_v38  ;;  %1062 = vmatpush.msrb.mxu2 %v3295_v60 }
 0x10a   : > { %963 = vmatpush.msrb.mxu1 %v3283_v17 }
 0x10b   : > { %799 = vmatpush.msrb.mxu3 %v3251_v48  ;;  %1063 = vmatpush.msrb.mxu2 %v3294_v2  ;;  %v3241_v48 = vld [vmem:[%s6131_s3 + $0x100] sm:$0xff] }
 0x10c   : > { %964 = vmatpush.msrb.mxu1 %v3282_v23  ;;  %v3292_v23 = vld [vmem:[%s6131_s3 + $0x298] sm:$0xff] }
 0x10d   : > { %800 = vmatpush.msrb.mxu3 %v3250_v59  ;;  %v3289_v59 = vld [vmem:[%s6131_s3 + $0x280] sm:$0xff] }
 0x10e   : > { %965 = vmatpush.msrb.mxu1 %v3281_v34 }
 0x10f   : > { %801 = vmatpush.msrb.mxu3 %v3249_v0 }
 0x110   : > { %966 = vmatpush.msrb.mxu1 %v3280_v39 }
 0x111   : > { %802 = vmatpush.msrb.mxu3 %v3248_v3 }
 0x112   : > { %967 = vmatpush.msrb.mxu1 %v3279_v50 }
 0x113   : > { %803 = vmatpush.msrb.mxu3 %v3247_v5 }
 0x114   : > { %968 = vmatpush.msrb.mxu1 %v3278_v61 }
 0x115   : > { %804 = vmatpush.msrb.mxu3 %v3246_v10 }
 0x116   : > { %969 = vmatpush.msrb.mxu1 %v3277_v1 }
 0x117   : > { %805 = vmatpush.msrb.mxu3 %v3245_v16 }
 0x118   : > { %970 = vmatpush.msrb.mxu1 %v3276_v4 }
 0x119   : > { %806 = vmatpush.msrb.mxu3 %v3244_v30 }
 0x11a   : > { %971 = vmatpush.msrb.mxu1 %v3275_v6 }
 0x11c   : > { %972 = vmatpush.msrb.mxu1 %v3274_v13 }
 0x11e   : > { %973 = vmatpush.msrb.mxu1 %v3273_v21 }
 0x128   : > { %v4411_v19 = vpop.permute.xlu2 %3640 }
 0x129   : > { %v3642_v14 = vunpack.i.l.bf16 %v4411_v19 }
 0x12b   : > { %v3621_v11 = vpop.permute.xlu0 %3620  ;;  %v3631_v31 = vpop.permute.xlu1 %3630 }
 0x12c   : > { %v3623_v28 = vunpack.i.h.bf16 %v3621_v11  ;;  %v3622_v29 = vunpack.i.l.bf16 %v3621_v11  ;;  %v3633_v42 = vunpack.i.h.bf16 %v3631_v31  ;;  %v3632_v43 = vunpack.i.l.bf16 %v3631_v31  ;;  %v3293_v11 = vld [vmem:[%s6131_s3 + $0x2a0] sm:$0xff] }
 0x12d   : > { %1064 = vmatpush.msrb.mxu2 %v3293_v11 }
 0x12e   : > { %v584_v44 = vsel %vm421_vm2, %v4056_v25, %v3623_v28  ;;  %v583_v45 = vsel %vm421_vm2, %v4066_v32, %v3622_v29 }
 0x12f   : > { %1065 = vmatpush.msrb.mxu2 %v3292_v23 }
 0x130   : > { %v4463_v62 = vpop.permute.xlu2 %3645 }
 0x131   : > { %v3647_v17 = vunpack.i.l.bf16 %v4463_v62 }
 0x133   : > { %v3626_v35 = vpop.permute.xlu0 %3625 }
 0x134   : > { %v3628_v36 = vunpack.i.h.bf16 %v3626_v35  ;;  %v3627_v37 = vunpack.i.l.bf16 %v3626_v35  ;;  %v3643_v35 = vunpack.i.h.bf16 %v4411_v19  ;;  %v3242_v19 = vld [vmem:[%s6131_s3 + $0x108] sm:$0xff] }
 0x136   : > { %v592_v46 = vsel %vm6140_vm1, %v584_v44, %v3628_v36  ;;  %v591_v47 = vsel %vm6140_vm1, %v583_v45, %v3627_v37  ;;  %v3243_v36 = vld [vmem:[%s6131_s3 + $0x110] sm:$0xff]  ;;  %v3648_v44 = vunpack.i.h.bf16 %v4463_v62 }
 0x137   : > { %v599_v25 = vsel %vm6139_vm11, %v591_v47, %v3632_v43  ;;  %v4451_v52 = vsel %vm6139_vm11, %v592_v46, %v3633_v42  ;;  %807 = vmatpush.msrb.mxu3 %v3243_v36 }
 0x138   : > { %v672_v32 = vrot.slane %v599_v25, 4  ;;  %748 = vmatmul.f32.vlgmr.msra.gmra.mxu2 %v599_v25  ;;  %v673_v56 = vrot.slane %v4451_v52, 4  ;;  %v3661_v28 = vpop.permute.xlu2 %3660 }
 0x139   : > { %v3663_v47 = vunpack.i.h.bf16 %v3661_v28  ;;  %v3662_v50 = vunpack.i.l.bf16 %v3661_v28  ;;  %808 = vmatpush.msrb.mxu3 %v3242_v19 }
 0x13a   : > { %v674_v63 = vsel %vm6138_vm0, %v672_v32, %v673_v56 }
 0x13b   : > { %710 = vmatmul.f32.vlgmr.msra.gmra.mxu1 %v674_v63  ;;  %809 = vmatpush.msrb.mxu3 %v3241_v48 }
 0x140   : > { %751 = vmatmul.f32.gmra.mxu2 %v4451_v52  ;;  %v3636_v8 = vpop.permute.xlu1 %3635  ;;  %v575_v62 = vpop.permute.xlu2 %574 }
 0x141   : > { %v3637_v12 = vunpack.i.l.bf16 %v3636_v8  ;;  %v3638_v15 = vunpack.i.h.bf16 %v3636_v8 }
 0x143   : > { %v585_v18 = vsel %vm421_vm2, %v4058_v26, %v3637_v12  ;;  %v3291_v26 = vld [vmem:[%s6131_s3 + $0x290] sm:$0xff]  ;;  %v587_v33 = vsel %vm421_vm2, %v4096_v53, %v3638_v15  ;;  %v3290_v53 = vld [vmem:[%s6131_s3 + $0x288] sm:$0xff] }
 0x144   : > { %v593_v29 = vsel %vm6140_vm1, %v585_v18, %v3642_v14  ;;  %1066 = vmatpush.msrb.mxu2 %v3291_v26  ;;  %v595_v39 = vsel %vm6140_vm1, %v587_v33, %v3643_v35 }
 0x145   : > { %v4518_v31 = vsel %vm6139_vm11, %v593_v29, %v3647_v17 }
 0x146   : > { %v675_v34 = vrot.slane %v4518_v31, 4  ;;  %1067 = vmatpush.msrb.mxu2 %v3290_v53 }
 0x148   : > { %754 = vmatmul.f32.gmra.mxu2 %v4518_v31  ;;  %v3656_v37 = vpop.permute.xlu1 %3655  ;;  %v676_v38 = vsel %vm6138_vm0, %v673_v56, %v675_v34  ;;  %v4545_v56 = vsel %vm6139_vm11, %v595_v39, %v3648_v44  ;;  %v639_v12 = vpop.permute.xlu2 %638 }
 0x149   : > { %v3658_v41 = vunpack.i.h.bf16 %v3656_v37  ;;  %v3657_v42 = vunpack.i.l.bf16 %v3656_v37  ;;  %v3651_v43 = vpop.permute.xlu0 %3650  ;;  %713 = vmatmul.f32.gmra.mxu1 %v676_v38  ;;  %905 = vmatmul.f32.vlgmr.msrb.gmra.mxu0 %v676_v38  ;;  %v679_v0 = vrot.slane %v4545_v56, 4 }
 0x14a   : > { %v3653_v45 = vunpack.i.h.bf16 %v3651_v43  ;;  %v3652_v46 = vunpack.i.l.bf16 %v3651_v43  ;;  %1068 = vmatpush.msrb.mxu2 %v3289_v59 }
 0x14c   : > { %v586_v25 = vsel %vm421_vm2, %v4094_v51, %v3653_v45  ;;  %v588_v32 = vsel %vm421_vm2, %v4103_v57, %v3652_v46 }
 0x14d   : > { %v596_v60 = vsel %vm6140_vm1, %v588_v32, %v3657_v42  ;;  %v594_v61 = vsel %vm6140_vm1, %v586_v25, %v3658_v41 }
 0x14e   : > { %v4553_v63 = vsel %vm6139_vm11, %v594_v61, %v3663_v47  ;;  %v4556_v51 = vsel %vm6139_vm11, %v596_v60, %v3662_v50 }
 0x14f   : > { %v677_v57 = vrot.slane %v4553_v63, 4  ;;  %v681_v1 = vrot.slane %v4556_v51, 4 }
 0x150   : > { %757 = vmatmul.f32.gmra.mxu2 %v4553_v63  ;;  %v633_v2 = vpop.permute.xlu1 %632  ;;  %v3666_v26 = vpop.permute.xlu2 %3665 }
 0x151   : > { %v625_v3 = vpop.permute.xlu0 %624  ;;  %v678_v4 = vsel %vm6138_vm0, %v675_v34, %v677_v57  ;;  %v4564_v5 = vsel %vm6138_vm0, %v679_v0, %v681_v1  ;;  %v680_v15 = vsel %vm6138_vm0, %v677_v57, %v679_v0  ;;  %v3667_v35 = vunpack.i.l.bf16 %v3666_v26 }
 0x152   : > { %v641_v6 = vsel %vm421_vm2, %v4133_v9, %v625_v3  ;;  %716 = vmatmul.f32.gmra.mxu1 %v678_v4  ;;  %722 = vmatmul.f32.vlgmr.msra.gmra.mxu3 %v4564_v5 }
 0x153   : > { %v643_v8 = vsel %vm6140_vm1, %v641_v6, %v633_v2  ;;  %908 = vmatmul.f32.gmra.mxu0 %v678_v4 }
 0x154   : > { %v4571_v10 = vsel %vm6139_vm11, %v643_v8, %v575_v62 }
 0x155   : > { %v683_v11 = vrot.slane %v4571_v10, 4 }
 0x157   : > { %v684_v16 = vsel %vm6138_vm0, %v681_v1, %v683_v11 }
 0x158   : > { %760 = vmatmul.f32.gmra.mxu2 %v4545_v56  ;;  %v635_v13 = vpop.permute.xlu1 %634  ;;  %v3681_v41 = vpop.permute.xlu2 %3680 }
 0x159   : > { %v627_v14 = vpop.permute.xlu0 %626  ;;  %v3683_v44 = vunpack.i.h.bf16 %v3681_v41  ;;  %v3682_v57 = vunpack.i.l.bf16 %v3681_v41 }
 0x15a   : > { %v642_v17 = vsel %vm421_vm2, %v4167_v27, %v627_v14  ;;  %719 = vmatmul.f32.gmra.mxu1 %v680_v15  ;;  %725 = vmatmul.f32.gmra.mxu3 %v684_v16 }
 0x15b   : > { %v4580_v18 = vsel %vm6140_vm1, %v642_v17, %v635_v13  ;;  %911 = vmatmul.f32.gmra.mxu0 %v680_v15  ;;  %v1152_v17 = vld [vmem:[%s6133_s5 + $0x8] sm:$0xff] }
 0x15c   : > { %v646_v21 = vsel %vm6139_vm11, %v4580_v18, %v639_v12  ;;  %v1153_v12 = vld [vmem:[%s6133_s5 + $0x10] sm:$0xff] }
 0x15d   : > { %v685_v23 = vrot.slane %v646_v21, 4 }
 0x15f   : > { %v686_v30 = vsel %vm6138_vm0, %v683_v11, %v685_v23 }
 0x160   : > { %763 = vmatmul.f32.gmra.mxu2 %v4556_v51  ;;  %v537_v28 = vpop.permute.xlu1 %536 }
 0x161   : > { %v502_v29 = vpop.permute.xlu0 %501 }
 0x162   : > { %v589_v33 = vsel %vm421_vm2, %v4133_v9, %v502_v29  ;;  %728 = vmatmul.f32.gmra.mxu3 %v686_v30  ;;  %974 = vmatmul.f32.vlgmr.msrb.gmra.mxu1 %v4518_v31  ;;  %v858_v9 = vsel %vm421_vm2, %v4167_v27, %v3667_v35  ;;  %v859_v27 = vsel %vm421_vm2, %v4229_v55, %v3683_v44  ;;  %v1151_v30 = vld [vmem:[%s6133_s5] sm:$0xff] }
 0x163   : > { %914 = vmatmul.f32.gmra.mxu0 %v4564_v5  ;;  %v597_v34 = vsel %vm6140_vm1, %v589_v33, %v537_v28 }
 0x164   : > { %v605_v36 = vsel %vm6139_vm11, %v597_v34, %v575_v62 }
 0x168   : > { %766 = vmatmul.f32.gmra.mxu2 %v605_v36  ;;  %v3676_v37 = vpop.permute.xlu1 %3675 }
 0x169   : > { %v3677_v38 = vunpack.i.l.bf16 %v3676_v37  ;;  %v3671_v53 = vpop.permute.xlu0 %3670  ;;  %v3678_v62 = vunpack.i.h.bf16 %v3676_v37 }
 0x16a   : > { %v3672_v39 = vunpack.i.l.bf16 %v3671_v53  ;;  %810 = vmatmul.f32.vlgmr.msrb.gmra.mxu3 %v4451_v52  ;;  %977 = vmatmul.f32.gmra.mxu1 %v4553_v63  ;;  %v3673_v60 = vunpack.i.h.bf16 %v3671_v53 }
 0x16b   : > { %917 = vmatmul.f32.gmra.mxu0 %v684_v16  ;;  %v776_v6 = vsel %vm6139_vm11, %v4580_v18, %v3677_v38 }
 0x16c   : > { %v860_v42 = vsel %vm6140_vm1, %v858_v9, %v3672_v39 }
 0x16d   : > { %v862_v43 = vsel %vm6139_vm11, %v860_v42, %v3677_v38 }
 0x16e   : > { %v883_v19 = vrot.slane %v862_v43, 4 }
 0x170   : > { %1069 = vmatmul.f32.vlgmr.msrb.gmra.mxu2 %v678_v4  ;;  %v3691_v45 = vpop.permute.xlu1 %3690  ;;  %v884_v46 = vsel %vm6138_vm0, %v683_v11, %v883_v19 }
 0x171   : > { %v3693_v47 = vunpack.i.h.bf16 %v3691_v45  ;;  %v3686_v48 = vpop.permute.xlu0 %3685  ;;  %v3692_v3 = vunpack.i.l.bf16 %v3691_v45 }
 0x172   : > { %v3688_v52 = vunpack.i.h.bf16 %v3686_v48  ;;  %813 = vmatmul.f32.gmra.mxu3 %v4518_v31  ;;  %980 = vmatmul.f32.gmra.mxu1 %v4545_v56  ;;  %v3668_v31 = vunpack.i.h.bf16 %v3666_v26  ;;  %v3687_v1 = vunpack.i.l.bf16 %v3686_v48 }
 0x173   : > { %920 = vmatmul.f32.gmra.mxu0 %v884_v46 }
 0x174   : > { %v861_v50 = vsel %vm6140_vm1, %v859_v27, %v3688_v52  ;;  %v1022_v61 = vsel %vm421_vm2, %v4229_v55, %v3668_v31 }
 0x175   : > { %v863_v25 = vsel %vm6139_vm11, %v861_v50, %v3693_v47 }
 0x176   : > { %v885_v32 = vrot.slane %v863_v25, 4 }
 0x178   : > { %1072 = vmatmul.f32.gmra.mxu2 %v680_v15  ;;  %v886_v59 = vsel %vm6138_vm0, %v883_v19, %v885_v32 }
 0x17a   : > { %816 = vmatmul.f32.gmra.mxu3 %v4553_v63  ;;  %983 = vmatmul.f32.gmra.mxu1 %v4556_v51  ;;  %v1024_v63 = vsel %vm6140_vm1, %v1022_v61, %v3673_v60 }
 0x17b   : > { %923 = vmatmul.f32.gmra.mxu0 %v886_v59  ;;  %v1026_v0 = vsel %vm6139_vm11, %v1024_v63, %v3678_v62 }
 0x17c   : > { %v1047_v2 = vrot.slane %v1026_v0, 4 }
 0x17e   : > { %v1048_v4 = vsel %vm6138_vm0, %v883_v19, %v1047_v2  ;;  %v4651_v19 = vld [vmem:[%s6132_s4] ss:$0 sm:$0xff] }
 0x180   : > { %1075 = vmatmul.f32.gmra.mxu2 %v4564_v5 }
 0x182   : > { %819 = vmatmul.f32.gmra.mxu3 %v4545_v56  ;;  %986 = vmatmul.f32.gmra.mxu1 %v4571_v10  ;;  %v940_v56 = vsel %vm6139_vm11, %v861_v50, %v3678_v62 }
 0x188   : > { %1078 = vmatmul.f32.gmra.mxu2 %v684_v16 }
 0x18a   : > { %822 = vmatmul.f32.gmra.mxu3 %v4556_v51  ;;  %989 = vmatmul.f32.gmra.mxu1 %v862_v43  ;;  %v1023_v51 = vsel %vm421_vm2, %v4234_v58, %v3682_v57  ;;  %v1154_v58 = vld [vmem:[%s6133_s5 + $0x18] sm:$0xff] }
 0x18b   : > { %v1025_v55 = vsel %vm6140_vm1, %v1023_v51, %v3687_v1  ;;  %1188 = vmatpush.msra.mxu3 %v1154_v58 }
 0x18c   : > { %v1027_v5 = vsel %vm6139_vm11, %v1025_v55, %v3692_v3 }
 0x18d   : > { %v1049_v8 = vrot.slane %v1027_v5, 4  ;;  %1189 = vmatpush.msra.mxu3 %v1153_v12 }
 0x18f   : > { %1190 = vmatpush.msra.mxu3 %v1152_v17 }
 0x190   : > { %1081 = vmatmul.f32.gmra.mxu2 %v884_v46 }
 0x191   : > { %1191 = vmatpush.msra.mxu3 %v1151_v30 }
 0x192   : > { %825 = vmatmul.f32.gmra.mxu3 %v4571_v10  ;;  %992 = vmatmul.f32.gmra.mxu1 %v940_v56  ;;  %v1050_v10 = vsel %vm6138_vm0, %v1047_v2, %v1049_v8 }
 0x198   : > { %1084 = vmatmul.f32.gmra.mxu2 %v1048_v4 }
 0x19a   : > { %828 = vmatmul.f32.gmra.mxu3 %v776_v6 }
 0x1a0   : > { %1087 = vmatmul.f32.gmra.mxu2 %v1050_v10 }
 0x1b8   : > { %v711_v13 = vpop.f32.mrf.mxu1 }
 0x1bb   : > { %v749_v11 = vpop.f32.mrf.mxu2 }
 0x1bc   : > { %v750_v38 = vadd.f32 %v749_v11, %v711_v13 }
 0x1c3   : > { %v752_v14 = vpop.f32.mrf.mxu2 }
 0x1c6   : > { %v714_v15 = vpop.f32.mrf.mxu1  ;;  %v906_v33 = vpop.f32.mrf.mxu0 }
 0x1c7   : > { %v753_v45 = vadd.f32 %v752_v14, %v714_v15 }
 0x1cb   : > { %v755_v16 = vpop.f32.mrf.mxu2 }
 0x1cf   : > { %v717_v18 = vpop.f32.mrf.mxu1 }
 0x1d0   : > { %v909_v53 = vpop.f32.mrf.mxu0  ;;  %v756_v61 = vadd.f32 %v755_v16, %v717_v18 }
 0x1d3   : > { %v758_v21 = vpop.f32.mrf.mxu2 }
 0x1d5   : > { %v4635_v23 = vpop.f32.mrf.mxu3 }
 0x1d7   : > { %v720_v28 = vpop.f32.mrf.mxu1 }
 0x1d8   : > { %v912_v27 = vpop.f32.mrf.mxu0  ;;  %v759_v8 = vadd.f32 %v758_v21, %v720_v28 }
 0x1db   : > { %v761_v29 = vpop.f32.mrf.mxu2 }
 0x1dc   : > { %v762_v21 = vadd.f32 %v761_v29, %v4635_v23 }
 0x1dd   : > { %v4640_v26 = vpop.f32.mrf.mxu3 }
 0x1df   : > { %v975_v35 = vpop.f32.mrf.mxu1 }
 0x1e0   : > { %v915_v2 = vpop.f32.mrf.mxu0 }
 0x1e3   : > { %v4642_v34 = vpop.f32.mrf.mxu2 }
 0x1e4   : > { %v765_v23 = vadd.f32 %v4642_v34, %v4640_v26 }
 0x1e5   : > { %v4644_v36 = vpop.f32.mrf.mxu3 }
 0x1e7   : > { %v978_v41 = vpop.f32.mrf.mxu1 }
 0x1e8   : > { %v918_v30 = vpop.f32.mrf.mxu0 }
 0x1eb   : > { %v4646_v37 = vpop.f32.mrf.mxu2 }
 0x1ec   : > { %v768_v26 = vadd.f32 %v4646_v37, %v4644_v36 }
 0x1ed   : > { %v811_v39 = vpop.f32.mrf.mxu3 }
 0x1ee   : > { %v832_v9 = vadd.f32 %v811_v39, %v750_v38 }
 0x1ef   : > { %v981_v32 = vpop.f32.mrf.mxu1 }
 0x1f0   : > { %v927_v42 = vadd.f32 %v906_v33, %v832_v9 }
 0x1f2   : > { %v996_v43 = vadd.f32 %v975_v35, %v927_v42 }
 0x1f3   : > { %v1070_v44 = vpop.f32.mrf.mxu2 }
 0x1f4   : > { %v1091_v46 = vadd.f32 %v1070_v44, %v996_v43 }
 0x1f5   : > { %v814_v47 = vpop.f32.mrf.mxu3 }
 0x1f6   : > { %v1102_v48 = vadd.f32 %v4651_v19, %v1091_v46  ;;  %v833_v52 = vadd.f32 %v814_v47, %v753_v45 }
 0x1f7   : > { %v984_v4 = vpop.f32.mrf.mxu1 }
 0x1f8   : > { %v1116_v50 = vmin.f32 %v1102_v48, 0.0  ;;  %v928_v25 = vadd.f32 %v909_v53, %v833_v52  ;;  %vm1109_vm0 = vcmp.gt.f32.partialorder %v1102_v48, 0.0  ;;  %v921_v52 = vpop.f32.mrf.mxu0 }
 0x1fa   : > { %v1123_v59 = vmul.f32 1.442695, %v1116_v50  ;;  %v997_v31 = vadd.f32 %v978_v41, %v928_v25 }
 0x1fb   : > { %v1073_v60 = vpop.f32.mrf.mxu2 }
 0x1fc   : > { %3822 = vpow2.f32 %v1123_v59  ;;  %v1092_v62 = vadd.f32 %v1073_v60, %v997_v31 }
 0x1fd   : > { %v817_v63 = vpop.f32.mrf.mxu3 }
 0x1fe   : > { %v1103_v57 = vadd.f32 %v4651_v19, %v1092_v62  ;;  %v834_v0 = vadd.f32 %v817_v63, %v756_v61 }
 0x1ff   : > { %v987_v38 = vpop.f32.mrf.mxu1 }
 0x200   : > { %v1117_v1 = vmin.f32 %v1103_v57, 0.0  ;;  %v929_v56 = vadd.f32 %v912_v27, %v834_v0  ;;  %vm1110_vm11 = vcmp.gt.f32.partialorder %v1103_v57, 0.0 }
 0x202   : > { %v3823_v51 = vpop.eup %3822  ;;  %v998_v3 = vadd.f32 %v981_v32, %v929_v56  ;;  %v1125_v55 = vmul.f32 1.442695, %v1117_v1 }
 0x203   : > { %v1076_v5 = vpop.f32.mrf.mxu2  ;;  %v3305_v6 = vadd.f32 -1.0, %v3823_v51 }
 0x204   : > { %v1093_v10 = vadd.f32 %v1076_v5, %v998_v3  ;;  %3824 = vpow2.f32 %v1125_v55  ;;  %v924_v3 = vpop.f32.mrf.mxu0 }
 0x205   : > { %v820_v58 = vpop.f32.mrf.mxu3  ;;  %v1144_v11 = vsel %vm1109_vm0, %v1102_v48, %v3305_v6 }
 0x206   : > { %v1104_v12 = vadd.f32 %v4651_v19, %v1093_v10  ;;  %v835_v13 = vadd.f32 %v820_v58, %v759_v8  ;;  %3312 = vmatmul.msk.f32.vlgmr.msra.gmra.mxu3 %vm421_vm2, %v1144_v11 }
 0x207   : > { %v990_v59 = vpop.f32.mrf.mxu1 }
 0x208   : > { %v1118_v14 = vmin.f32 %v1104_v12, 0.0  ;;  %v930_v15 = vadd.f32 %v915_v2, %v835_v13  ;;  %vm1111_vm0 = vcmp.gt.f32.partialorder %v1104_v12, 0.0 }
 0x20a   : > { %v3825_v16 = vpop.eup %3824  ;;  %v999_v17 = vadd.f32 %v984_v4, %v930_v15  ;;  %v1127_v18 = vmul.f32 1.442695, %v1118_v14 }
 0x20b   : > { %v1079_v33 = vpop.f32.mrf.mxu2  ;;  %v3306_v35 = vadd.f32 -1.0, %v3825_v16 }
 0x20c   : > { %v1094_v28 = vadd.f32 %v1079_v33, %v999_v17  ;;  %3826 = vpow2.f32 %v1127_v18 }
 0x20d   : > { %v823_v53 = vpop.f32.mrf.mxu3  ;;  %v1145_v39 = vsel %vm1110_vm11, %v1103_v57, %v3306_v35 }
 0x20e   : > { %v1105_v9 = vadd.f32 %v4651_v19, %v1094_v28  ;;  %v836_v41 = vadd.f32 %v823_v53, %v762_v21  ;;  %3313 = vmatmul.msk.f32.gmra.mxu3 %vm421_vm2, %v1145_v39 }
 0x20f   : > { %v993_v5 = vpop.f32.mrf.mxu1 }
 0x210   : > { %v1119_v42 = vmin.f32 %v1105_v9, 0.0  ;;  %v931_v43 = vadd.f32 %v918_v30, %v836_v41  ;;  %vm1112_vm11 = vcmp.gt.f32.partialorder %v1105_v9, 0.0 }
 0x212   : > { %v3827_v44 = vpop.eup %3826  ;;  %v1000_v45 = vadd.f32 %v987_v38, %v931_v43  ;;  %v1129_v46 = vmul.f32 1.442695, %v1119_v42 }
 0x213   : > { %v1082_v47 = vpop.f32.mrf.mxu2  ;;  %v3307_v48 = vadd.f32 -1.0, %v3827_v44 }
 0x214   : > { %v1095_v29 = vadd.f32 %v1082_v47, %v1000_v45  ;;  %3828 = vpow2.f32 %v1129_v46 }
 0x215   : > { %v826_v27 = vpop.f32.mrf.mxu3  ;;  %v1146_v50 = vsel %vm1111_vm0, %v1104_v12, %v3307_v48 }
 0x216   : > { %v1106_v25 = vadd.f32 %v4651_v19, %v1095_v29  ;;  %v837_v32 = vadd.f32 %v826_v27, %v765_v23  ;;  %3314 = vmatmul.msk.f32.gmra.mxu3 %vm421_vm2, %v1146_v50 }
 0x218   : > { %v1120_v31 = vmin.f32 %v1106_v25, 0.0  ;;  %v932_v60 = vadd.f32 %v921_v52, %v837_v32  ;;  %vm1113_vm0 = vcmp.gt.f32.partialorder %v1106_v25, 0.0 }
 0x21a   : > { %v3829_v61 = vpop.eup %3828  ;;  %v1001_v62 = vadd.f32 %v990_v59, %v932_v60  ;;  %v1131_v63 = vmul.f32 1.442695, %v1120_v31 }
 0x21b   : > { %v1085_v57 = vpop.f32.mrf.mxu2  ;;  %v3308_v0 = vadd.f32 -1.0, %v3829_v61 }
 0x21c   : > { %v1096_v34 = vadd.f32 %v1085_v57, %v1001_v62  ;;  %3830 = vpow2.f32 %v1131_v63 }
 0x21d   : > { %v829_v1 = vpop.f32.mrf.mxu3  ;;  %v1147_v56 = vsel %vm1112_vm11, %v1105_v9, %v3308_v0 }
 0x21e   : > { %v1107_v2 = vadd.f32 %v4651_v19, %v1096_v34  ;;  %v838_v51 = vadd.f32 %v829_v1, %v768_v26  ;;  %3315 = vmatmul.msk.f32.gmra.mxu3 %vm421_vm2, %v1147_v56 }
 0x220   : > { %v1121_v55 = vmin.f32 %v1107_v2, 0.0  ;;  %v933_v4 = vadd.f32 %v924_v3, %v838_v51  ;;  %vm1114_vm11 = vcmp.gt.f32.partialorder %v1107_v2, 0.0 }
 0x222   : > { %v3831_v6 = vpop.eup %3830  ;;  %v1002_v8 = vadd.f32 %v993_v5, %v933_v4  ;;  %v1133_v10 = vmul.f32 1.442695, %v1121_v55 }
 0x223   : > { %v1088_v58 = vpop.f32.mrf.mxu2  ;;  %v3309_v11 = vadd.f32 -1.0, %v3831_v6 }
 0x224   : > { %v1097_v36 = vadd.f32 %v1088_v58, %v1002_v8  ;;  %3832 = vpow2.f32 %v1133_v10 }
 0x225   : > { %v1148_v37 = vsel %vm1113_vm0, %v1106_v25, %v3309_v11 }
 0x226   : > { %v1108_v12 = vadd.f32 %v4651_v19, %v1097_v36  ;;  %3316 = vmatmul.msk.f32.gmra.mxu3 %vm421_vm2, %v1148_v37  ;;  %v4675_v19 = vld [vmem:[%s6134_s6] ss:$0 sm:$0xff] }
 0x228   : > { %v1122_v13 = vmin.f32 %v1108_v12, 0.0  ;;  %vm1115_vm1 = vcmp.gt.f32.partialorder %v1108_v12, 0.0 }
 0x22a   : > { %v3833_v14 = vpop.eup %3832  ;;  %v1135_v15 = vmul.f32 1.442695, %v1122_v13 }
 0x22b   : > { %v3310_v16 = vadd.f32 -1.0, %v3833_v14 }
 0x22c   : > { %3834 = vpow2.f32 %v1135_v15 }
 0x22d   : > { %v1149_v17 = vsel %vm1114_vm11, %v1107_v2, %v3310_v16 }
 0x22e   : > { %3317 = vmatmul.msk.f32.gmra.mxu3 %vm421_vm2, %v1149_v17 }
 0x232   : > { %v3835_v18 = vpop.eup %3834 }
 0x233   : > { %v3311_v30 = vadd.f32 -1.0, %v3835_v18 }
 0x235   : > { %v1150_v33 = vsel %vm1115_vm1, %v1108_v12, %v3311_v30 }
 0x236   : > { %3318 = vmatmul.msk.f32.gmra.mxu3 %vm421_vm2, %v1150_v33 }
 0x289   : > { %v1193_v35 = vpop.f32.mrf.mxu3 }
 0x28a   : > { %v1214_v21 = vadd.f32 %v1193_v35, %v4024_v20 }
 0x28c   : > { %v1225_v28 = vadd.f32 %v4675_v19, %v1214_v21 }
 0x28e   : > { %v1239_v38 = vmin.f32 %v1225_v28, 0.0  ;;  %vm1232_vm1 = vcmp.gt.f32.partialorder %v1225_v28, 0.0 }
 0x290   : > { %v1246_v53 = vmul.f32 1.442695, %v1239_v38 }
 0x291   : > { %v1196_v39 = vpop.f32.mrf.mxu3 }
 0x292   : > { %3836 = vpow2.f32 %v1246_v53  ;;  %v1215_v9 = vadd.f32 %v1196_v39, %v4039_v22 }
 0x294   : > { %v1226_v41 = vadd.f32 %v4675_v19, %v1215_v9 }
 0x296   : > { %v1240_v42 = vmin.f32 %v1226_v41, 0.0  ;;  %vm1233_vm0 = vcmp.gt.f32.partialorder %v1226_v41, 0.0 }
 0x298   : > { %v3837_v43 = vpop.eup %3836  ;;  %v1248_v44 = vmul.f32 1.442695, %v1240_v42 }
 0x299   : > { %v3319_v45 = vadd.f32 -1.0, %v3837_v43  ;;  %v1199_v46 = vpop.f32.mrf.mxu3 }
 0x29a   : > { %3838 = vpow2.f32 %v1248_v44  ;;  %v1216_v47 = vadd.f32 %v1199_v46, %v4054_v24 }
 0x29b   : > { %v4682_v20 = vsel %vm1232_vm1, %v1225_v28, %v3319_v45 }
 0x29c   : > { %1274 = vst.msk [vmem:[#allocation2 + $0xa] sm:$0xff] %vm421_vm2, %v4682_v20  ;;  %v1227_v48 = vadd.f32 %v4675_v19, %v1216_v47 }
 0x29d   : > { %1281 = vst.msk [vmem:[#allocation2 + $0x8] sm:$0x2] %vm430_vm8, %v4682_v20 }
 0x29e   : > { %1283 = vst.msk [vmem:[#allocation2 + $0x6] sm:$0x4] %vm434_vm9, %v4682_v20  ;;  %v1241_v22 = vmin.f32 %v1227_v48, 0.0  ;;  %vm1234_vm11 = vcmp.gt.f32.partialorder %v1227_v48, 0.0 }
 0x29f   : > { %1285 = vst.msk [vmem:[#allocation2 + $0x4] sm:$0x8] %vm436_vm3, %v4682_v20 }
 0x2a0   : > { %v3839_v23 = vpop.eup %3838  ;;  %1287 = vst.msk [vmem:[#allocation2 + $0x2] sm:$0x10] %vm432_vm4, %v4682_v20  ;;  %v1250_v24 = vmul.f32 1.442695, %v1241_v22 }
 0x2a1   : > { %1289 = vst.msk [vmem:[#allocation2] sm:$0x20] %vm442_vm5, %v4682_v20  ;;  %v3320_v29 = vadd.f32 -1.0, %v3839_v23  ;;  %v1202_v52 = vpop.f32.mrf.mxu3 }
 0x2a2   : > { %1291 = vst.msk [vmem:[#allocation2 - $0x2] sm:$0x40] %vm446_vm6, %v4682_v20  ;;  %3840 = vpow2.f32 %v1250_v24  ;;  %v1217_v27 = vadd.f32 %v1202_v52, %v4077_v40 }
 0x2a3   : > { %1293 = vst.msk [vmem:[#allocation2 - $0x4] sm:$0x80] %vm448_vm7, %v4682_v20  ;;  %v4702_v50 = vsel %vm1233_vm0, %v1226_v41, %v3320_v29 }
 0x2a4   : > { %1275 = vst.msk [vmem:[#allocation2 + $0x12] sm:$0xff] %vm421_vm2, %v4702_v50  ;;  %v1228_v25 = vadd.f32 %v4675_v19, %v1217_v27 }
 0x2a5   : > { %1295 = vst.msk [vmem:[#allocation2 + $0x2] sm:$0x1] %vm444_vm10, %v4702_v50  ;;  %v4713_v31 = vld [vmem:[#allocation2 + $0x8] sm:$0xff] }
 0x2a6   : > { %1297 = vst.msk [vmem:[#allocation2] sm:$0x2] %vm430_vm8, %v4702_v50  ;;  %v1242_v32 = vmin.f32 %v1228_v25, 0.0  ;;  %v1388_v0 = vrot.slane %v4713_v31, 3  ;;  %v1353_v26 = vrot.slane %v4713_v31, 2  ;;  %vm1235_vm1 = vcmp.gt.f32.partialorder %v1228_v25, 0.0 }
 0x2a7   : > { %1299 = vst.msk [vmem:[#allocation2 - $0x2] sm:$0x4] %vm434_vm9, %v4702_v50 }
 0x2a8   : > { %v3841_v40 = vpop.eup %3840  ;;  %v1252_v59 = vmul.f32 1.442695, %v1242_v32 }
 0x2a9   : > { %v3321_v60 = vadd.f32 -1.0, %v3841_v40  ;;  %v1205_v61 = vpop.f32.mrf.mxu3 }
 0x2aa   : > { %3842 = vpow2.f32 %v1252_v59  ;;  %v1218_v62 = vadd.f32 %v1205_v61, %v4089_v49  ;;  %v1319_v49 = vrot.slane %v4713_v31, 1 }
 0x2ab   : > { %v4716_v63 = vsel %vm1234_vm11, %v1227_v48, %v3321_v60  ;;  %v4718_v57 = vld [vmem:[#allocation2 + $0x10] sm:$0xff] }
 0x2ac   : > { %1276 = vst.msk [vmem:[#allocation2 + $0x1a] sm:$0xff] %vm421_vm2, %v4716_v63  ;;  %v1229_v34 = vadd.f32 %v4675_v19, %v1218_v62  ;;  %v1390_v1 = vrot.slane %v4718_v57, 3  ;;  %v1355_v56 = vrot.slane %v4718_v57, 2  ;;  %v1321_v2 = vrot.slane %v4718_v57, 1 }
 0x2ae   : > { %v1243_v51 = vmin.f32 %v1229_v34, 0.0  ;;  %v4729_v3 = vld [vmem:[#allocation2] sm:$0xff]  ;;  %v1391_v55 = vsel %vm546_vm12, %v1388_v0, %v1390_v1  ;;  %v1356_v4 = vsel %vm6143_vm14, %v1353_v26, %v1355_v56  ;;  %v1322_v10 = vsel %vm6142_vm13, %v1319_v49, %v1321_v2 }
 0x2af   : > { %v1387_v5 = vrot.slane %v4729_v3, 3  ;;  %v1352_v6 = vrot.slane %v4729_v3, 2  ;;  %v1318_v8 = vrot.slane %v4729_v3, 1  ;;  %vm1236_vm0 = vcmp.gt.f32.partialorder %v1229_v34, 0.0 }
 0x2b0   : > { %v3843_v58 = vpop.eup %3842  ;;  %v1254_v11 = vmul.f32 1.442695, %v1243_v51 }
 0x2b1   : > { %v3322_v36 = vadd.f32 -1.0, %v3843_v58  ;;  %v1389_v37 = vsel %vm546_vm12, %v1387_v5, %v1388_v0  ;;  %v1354_v12 = vsel %vm6143_vm14, %v1352_v6, %v1353_v26  ;;  %v1320_v13 = vsel %vm6142_vm13, %v1318_v8, %v1319_v49  ;;  %v1208_v14 = vpop.f32.mrf.mxu3 }
 0x2b2   : > { %3844 = vpow2.f32 %v1254_v11  ;;  %v3704_v15 = vpack.i.bf16 %v1391_v55, %v1389_v37  ;;  %v3699_v16 = vpack.i.bf16 %v1356_v4, %v1354_v12  ;;  %v3694_v17 = vpack.i.bf16 %v1322_v10, %v1320_v13 }
 0x2b3   : > { %v4740_v18 = vsel %vm1235_vm1, %v1228_v25, %v3322_v36  ;;  %v1219_v30 = vadd.f32 %v1208_v14, %v4099_v54  ;;  %v4749_v35 = vld [vmem:[#allocation2 + $0x18] sm:$0xff] }
 0x2b4   : > { %1277 = vst.msk [vmem:[#allocation2 + $0x22] sm:$0xff] %vm421_vm2, %v4740_v18  ;;  %3705 = vrot.lane.b32.xlu1 %v3704_v15, %s3915_s20  ;;  %3700 = vrot.lane.b32.xlu0 %v3699_v16, %s3917_s22  ;;  %v1392_v54 = vrot.slane %v4749_v35, 3  ;;  %v1357_v41 = vrot.slane %v4749_v35, 2  ;;  %v1323_v44 = vrot.slane %v4749_v35, 1 }
 0x2b5   : > { %3695 = vrot.lane.b32.xlu2 %v3694_v17, %s3916_s21  ;;  %v1230_v33 = vadd.f32 %v4675_v19, %v1219_v30  ;;  %v3357_v30 = vld [vmem:[%s6131_s3 + $0x3f8] sm:$0xff] }
 0x2b6   : > { %v1393_v48 = vsel %vm546_vm12, %v1390_v1, %v1392_v54  ;;  %v1358_v24 = vsel %vm6143_vm14, %v1355_v56, %v1357_v41  ;;  %v1324_v25 = vsel %vm6142_vm13, %v1321_v2, %v1323_v44  ;;  %1533 = vmatpush.msra.mxu0 %v3357_v30  ;;  %v3389_v30 = vld [vmem:[%s6131_s3 + $0x4f8] sm:$0xff] }
 0x2b7   : > { %v1244_v21 = vmin.f32 %v1230_v33, 0.0  ;;  %vm1237_vm11 = vcmp.gt.f32.partialorder %v1230_v33, 0.0  ;;  %1728 = vmatpush.msrb.mxu3 %v3389_v30  ;;  %v3400_v30 = vld [vmem:[%s6131_s3 + $0x550] sm:$0xff] }
 0x2b8   : > { %v3845_v28 = vpop.eup %3844 }
 0x2b9   : > { %v3323_v38 = vadd.f32 -1.0, %v3845_v28  ;;  %v1256_v53 = vmul.f32 1.442695, %v1244_v21  ;;  %v1211_v39 = vpop.f32.mrf.mxu3  ;;  %v3356_v28 = vld [vmem:[%s6131_s3 + $0x3f0] sm:$0xff] }
 0x2ba   : > { %v1220_v9 = vadd.f32 %v1211_v39, %v4130_v7  ;;  %1534 = vmatpush.msra.mxu0 %v3356_v28  ;;  %v3363_v28 = vld [vmem:[%s6131_s3 + $0x428] sm:$0xff] }
 0x2bb   : > { %v4754_v42 = vsel %vm1236_vm0, %v1229_v34, %v3323_v38  ;;  %3846 = vpow2.f32 %v1256_v53  ;;  %v4756_v43 = vld [vmem:[#allocation2 + $0x20] sm:$0xff]  ;;  %v3340_v38 = vld [vmem:[%s6131_s3 + $0x370] sm:$0xff]  ;;  %vm6144_vm0 = vcmask 523264  }
 0x2bc   : > { %1278 = vst.msk [vmem:[#allocation2 + $0x2a] sm:$0xff] %vm421_vm2, %v4754_v42  ;;  %v1231_v45 = vadd.f32 %v4675_v19, %v1220_v9  ;;  %v1394_v46 = vrot.slane %v4756_v43, 3  ;;  %v1359_v47 = vrot.slane %v4756_v43, 2  ;;  %v1325_v7 = vrot.slane %v4756_v43, 1 }
 0x2be   : > { %v1245_v22 = vmin.f32 %v1231_v45, 0.0  ;;  %v1395_v23 = vsel %vm546_vm12, %v1392_v54, %v1394_v46  ;;  %v1360_v29 = vsel %vm6143_vm14, %v1357_v41, %v1359_v47  ;;  %v1326_v19 = vsel %vm6142_vm13, %v1323_v44, %v1325_v7  ;;  %v3355_v41 = vld [vmem:[%s6131_s3 + $0x3e8] sm:$0xff] }
 0x2bf   : > { %v3719_v52 = vpack.i.bf16 %v1395_v23, %v1393_v48  ;;  %v3714_v27 = vpack.i.bf16 %v1360_v29, %v1358_v24  ;;  %v3709_v40 = vpack.i.bf16 %v1326_v19, %v1324_v25  ;;  %vm1238_vm1 = vcmp.gt.f32.partialorder %v1231_v45, 0.0  ;;  %v3339_v44 = vld [vmem:[%s6131_s3 + $0x368] sm:$0xff]  ;;  %1535 = vmatpush.msra.mxu0 %v3355_v41  ;;  %v3372_v23 = vld [vmem:[%s6131_s3 + $0x470] sm:$0xff]  ;;  %v3346_v41 = vld [vmem:[%s6131_s3 + $0x3a0] sm:$0xff] }
 0x2c0   : > { %v1258_v32 = vmul.f32 1.442695, %v1245_v22  ;;  %v3337_v22 = vld [vmem:[%s6131_s3 + $0x358] sm:$0xff] }
 0x2c1   : > { %v3847_v59 = vpop.eup %3846  ;;  %3720 = vrot.lane.b32.xlu1 %v3719_v52, %s3915_s20  ;;  %3715 = vrot.lane.b32.xlu0 %v3714_v27, %s3917_s22 }
 0x2c2   : > { %v3324_v60 = vadd.f32 -1.0, %v3847_v59  ;;  %3848 = vpow2.f32 %v1258_v32  ;;  %3710 = vrot.lane.b32.xlu2 %v3709_v40, %s3916_s21 }
 0x2c3   : > { %v4774_v61 = vld [vmem:[#allocation2 + $0x28] sm:$0xff] }
 0x2c4   : > { %v4776_v62 = vsel %vm1237_vm11, %v1230_v33, %v3324_v60  ;;  %v1396_v0 = vrot.slane %v4774_v61, 3  ;;  %v1361_v2 = vrot.slane %v4774_v61, 2  ;;  %v1327_v49 = vrot.slane %v4774_v61, 1  ;;  %v3341_v33 = vld [vmem:[%s6131_s3 + $0x378] sm:$0xff]  ;;  %v3352_v60 = vld [vmem:[%s6131_s3 + $0x3d0] sm:$0xff]  ;;  %vm6145_vm11 = vmmov %vm6144_vm0 }
 0x2c5   : > { %1279 = vst.msk [vmem:[#allocation2 + $0x32] sm:$0xff] %vm421_vm2, %v4776_v62  ;;  %1571 = vmatpush.msra.mxu1 %v3341_v33  ;;  %v3331_v33 = vld [vmem:[%s6131_s3 + $0x328] sm:$0xff] }
 0x2c6   : > { %1292 = vst.msk [vmem:[#allocation2 + $0x3e] sm:$0x80] %vm448_vm7, %v4776_v62  ;;  %v1397_v34 = vsel %vm546_vm12, %v1394_v46, %v1396_v0  ;;  %v1362_v5 = vsel %vm6143_vm14, %v1359_v47, %v1361_v2  ;;  %v1328_v8 = vsel %vm6142_vm13, %v1325_v7, %v1327_v49  ;;  %v3338_v46 = vld [vmem:[%s6131_s3 + $0x360] sm:$0xff]  ;;  %v3353_v47 = vld [vmem:[%s6131_s3 + $0x3d8] sm:$0xff] }
 0x2c7   : > { %1294 = vst.msk [vmem:[#allocation2 + $0x40] sm:$0x40] %vm446_vm6, %v4776_v62  ;;  %1572 = vmatpush.msra.mxu1 %v3340_v38  ;;  %v3373_v7 = vld [vmem:[%s6131_s3 + $0x478] sm:$0xff]  ;;  %v3347_v38 = vld [vmem:[%s6131_s3 + $0x3a8] sm:$0xff] }
 0x2c8   : > { %v3849_v26 = vpop.eup %3848  ;;  %1296 = vst.msk [vmem:[#allocation2 + $0x42] sm:$0x20] %vm442_vm5, %v4776_v62  ;;  %1633 = vmatpush.msra.mxu2 %v3373_v7  ;;  %v3360_v7 = vld [vmem:[%s6131_s3 + $0x410] sm:$0xff] }
 0x2c9   : > { %1298 = vst.msk [vmem:[#allocation2 + $0x44] sm:$0x10] %vm432_vm4, %v4776_v62  ;;  %v3325_v1 = vadd.f32 -1.0, %v3849_v26  ;;  %1410 = vrot.lane.b32.xlu1 %v1397_v34, %s3915_s20  ;;  %1573 = vmatpush.msra.mxu1 %v3339_v44  ;;  %v3336_v26 = vld [vmem:[%s6131_s3 + $0x350] sm:$0xff]  ;;  %v3370_v34 = vld [vmem:[%s6131_s3 + $0x460] sm:$0xff]  ;;  %v3329_v44 = vld [vmem:[%s6131_s3 + $0x318] sm:$0xff] }
 0x2ca   : > { %1300 = vst.msk [vmem:[#allocation2 + $0x46] sm:$0x8] %vm436_vm3, %v4776_v62  ;;  %1634 = vmatpush.msra.mxu2 %v3372_v23  ;;  %v3327_v23 = vld [vmem:[%s6131_s3 + $0x308] sm:$0xff] }
 0x2cb   : > { %v4793_v56 = vsel %vm1238_vm1, %v1231_v45, %v3325_v1  ;;  %v3354_v45 = vld [vmem:[%s6131_s3 + $0x3e0] sm:$0xff]  ;;  %1574 = vmatpush.msra.mxu1 %v3338_v46  ;;  %v3351_v1 = vld [vmem:[%s6131_s3 + $0x3c8] sm:$0xff]  ;;  %vm6146_vm1 = vcmask 785408  }
 0x2cc   : > { %1280 = vst.msk [vmem:[#allocation2 + $0x3a] sm:$0x3f] %vm6141_vm15, %v4793_v56  ;;  %v4799_v51 = vld [vmem:[#allocation2 + $0x30] sm:$0xff]  ;;  %1536 = vmatpush.msra.mxu0 %v3354_v45  ;;  %v3361_v45 = vld [vmem:[%s6131_s3 + $0x418] sm:$0xff]  ;;  %v3386_v46 = vld [vmem:[%s6131_s3 + $0x4e0] sm:$0xff] }
 0x2cd   : > { %1282 = vst.msk [vmem:[#allocation2 + $0x3c] sm:$0x10] %vm432_vm4, %v4793_v56  ;;  %v1363_v55 = vrot.slane %v4799_v51, 2  ;;  %v1329_v4 = vrot.slane %v4799_v51, 1  ;;  %v1398_v13 = vrot.slane %v4799_v51, 3  ;;  %1575 = vmatpush.msra.mxu1 %v3337_v22  ;;  %v3385_v22 = vld [vmem:[%s6131_s3 + $0x4d8] sm:$0xff]  ;;  %vm6147_vm15 = vmmov %vm6146_vm1 }
 0x2ce   : > { %1284 = vst.msk [vmem:[#allocation2 + $0x3e] sm:$0x8] %vm436_vm3, %v4793_v56  ;;  %1537 = vmatpush.msra.mxu0 %v3353_v47  ;;  %v3328_v47 = vld [vmem:[%s6131_s3 + $0x310] sm:$0xff] }
 0x2cf   : > { %1286 = vst.msk [vmem:[#allocation2 + $0x40] sm:$0x4] %vm434_vm9, %v4793_v56  ;;  %v1364_v6 = vsel %vm6143_vm14, %v1361_v2, %v1363_v55  ;;  %v1330_v10 = vsel %vm6142_vm13, %v1327_v49, %v1329_v4  ;;  %v1399_v17 = vsel %vm546_vm12, %v1396_v0, %v1398_v13  ;;  %v3371_v0 = vld [vmem:[%s6131_s3 + $0x468] sm:$0xff]  ;;  %1576 = vmatpush.msra.mxu1 %v3336_v26  ;;  %v3369_v2 = vld [vmem:[%s6131_s3 + $0x458] sm:$0xff]  ;;  %v3380_v26 = vld [vmem:[%s6131_s3 + $0x4b0] sm:$0xff] }
 0x2d0   : > { %1288 = vst.msk [vmem:[#allocation2 + $0x42] sm:$0x2] %vm430_vm8, %v4793_v56  ;;  %v3729_v58 = vpack.i.bf16 %v1364_v6, %v1362_v5  ;;  %v3724_v11 = vpack.i.bf16 %v1330_v10, %v1328_v8  ;;  %1538 = vmatpush.msra.mxu0 %v3352_v60  ;;  %1635 = vmatpush.msra.mxu2 %v3371_v0  ;;  %v3335_v49 = vld [vmem:[%s6131_s3 + $0x348] sm:$0xff]  ;;  %v3368_v5 = vld [vmem:[%s6131_s3 + $0x450] sm:$0xff]  ;;  %v3382_v60 = vld [vmem:[%s6131_s3 + $0x4c0] sm:$0xff] }
 0x2d1   : > { %1290 = vst.msk [vmem:[#allocation2 + $0x44] sm:$0x1] %vm444_vm10, %v4793_v56  ;;  %v4876_v24 = vld [vmem:[#allocation2 + $0x48] sm:$0x1f]  ;;  %1577 = vmatpush.msra.mxu1 %v3335_v49  ;;  %v3381_v0 = vld [vmem:[%s6131_s3 + $0x4b8] sm:$0xff] }
 0x2d2   : > { %3730 = vrot.lane.b32.xlu0 %v3729_v58, %s3917_s22  ;;  %3725 = vrot.lane.b32.xlu2 %v3724_v11, %s3916_s21  ;;  %v1842_v27 = vrot.slane %v4876_v24, 1  ;;  %v1774_v6 = vrot.slane %v4876_v24, 3  ;;  %v1850_v8 = vrot.slane %v4876_v24, 2  ;;  %v3367_v10 = vld [vmem:[%s6131_s3 + $0x448] sm:$0xff]  ;;  %v3349_v58 = vld [vmem:[%s6131_s3 + $0x3b8] sm:$0xff] }
 0x2d3   : > { %v4819_v36 = vld [vmem:[#allocation2 + $0x38] sm:$0xff]  ;;  %1636 = vmatpush.msra.mxu2 %v3370_v34  ;;  %1539 = vmatpush.msra.mxu0 %v3351_v1  ;;  %v3379_v34 = vld [vmem:[%s6131_s3 + $0x4a8] sm:$0xff] }
 0x2d4   : > { %v1469_v37 = vrot.slane %v4819_v36, 2  ;;  %v1461_v12 = vrot.slane %v4819_v36, 1  ;;  %v1400_v53 = vrot.slane %v4819_v36, 3  ;;  %v3405_v1 = vld [vmem:[%s6131_s3 + $0x578] sm:$0xff] }
 0x2d5   : > { %1637 = vmatpush.msra.mxu2 %v3369_v2  ;;  %v3378_v2 = vld [vmem:[%s6131_s3 + $0x4a0] sm:$0xff]  ;;  %v3421_v49 = vld [vmem:[%s6131_s3 + $0x5f8] sm:$0xff] }
 0x2d6   : > { %v1470_v14 = vsel %vm6143_vm14, %v1363_v55, %v1469_v37  ;;  %v1462_v15 = vsel %vm6142_vm13, %v1329_v4, %v1461_v12  ;;  %v1401_v54 = vsel %vm546_vm12, %v1398_v13, %v1400_v53  ;;  %v3366_v13 = vld [vmem:[%s6131_s3 + $0x440] sm:$0xff] }
 0x2d7   : > { %1471 = vrot.lane.b32.xlu1 %v1470_v14, %s3917_s22  ;;  %v3734_v16 = vpack.i.bf16 %v1461_v12, %v1462_v15  ;;  %1638 = vmatpush.msra.mxu2 %v3368_v5  ;;  %v3348_v14 = vld [vmem:[%s6131_s3 + $0x3b0] sm:$0xff] }
 0x2d8   : > { %v4836_v21 = vld [vmem:[#allocation2 + $0x40] sm:$0xff]  ;;  %v3332_v15 = vld [vmem:[%s6131_s3 + $0x330] sm:$0xff] }
 0x2d9   : > { %v1678_v39 = vrot.slane %v4836_v21, 1  ;;  %v1610_v29 = vrot.slane %v4836_v21, 3  ;;  %v1686_v52 = vrot.slane %v4836_v21, 2  ;;  %1639 = vmatpush.msra.mxu2 %v3367_v10  ;;  %v3376_v5 = vld [vmem:[%s6131_s3 + $0x490] sm:$0xff]  ;;  %v3374_v10 = vld [vmem:[%s6131_s3 + $0x480] sm:$0xff] }
 0x2da   : > { %1412 = vrot.lane.b32.xlu2 %v1399_v17, %s3915_s20  ;;  %3735 = vrot.lane.b32.xlu0 %v3734_v16, %s3916_s21  ;;  %v3365_v16 = vld [vmem:[%s6131_s3 + $0x438] sm:$0xff]  ;;  %v3364_v17 = vld [vmem:[%s6131_s3 + $0x430] sm:$0xff] }
 0x2db   : > { %v1679_v9 = vsel %vm6142_vm13, %v1461_v12, %v1678_v39  ;;  %v1611_v25 = vsel %vm546_vm12, %v1400_v53, %v1610_v29  ;;  %v1687_v19 = vsel %vm6143_vm14, %v1469_v37, %v1686_v52  ;;  %v1843_v32 = vsel %vm6142_vm13, %v1678_v39, %v1842_v27  ;;  %v3333_v12 = vld [vmem:[%s6131_s3 + $0x338] sm:$0xff]  ;;  %1640 = vmatpush.msra.mxu2 %v3366_v13  ;;  %v3418_v13 = vld [vmem:[%s6131_s3 + $0x5e0] sm:$0xff] }
 0x2dc   : > { %v3739_v48 = vpack.i.bf16 %v1678_v39, %v1679_v9  ;;  %v3749_v40 = vpack.i.bf16 %v1610_v29, %v1611_v25  ;;  %v3744_v59 = vpack.i.bf16 %v1686_v52, %v1687_v19  ;;  %v1775_v11 = vsel %vm546_vm12, %v1610_v29, %v1774_v6  ;;  %v3330_v39 = vld [vmem:[%s6131_s3 + $0x320] sm:$0xff]  ;;  %v3387_v9 = vld [vmem:[%s6131_s3 + $0x4e8] sm:$0xff] }
 0x2dd   : > { %1641 = vmatpush.msra.mxu2 %v3365_v16  ;;  %v3359_v29 = vld [vmem:[%s6131_s3 + $0x408] sm:$0xff]  ;;  %v3326_v25 = vld [vmem:[%s6131_s3 + $0x300] sm:$0xff] }
 0x2de   : > { %v3343_v19 = vld [vmem:[%s6131_s3 + $0x388] sm:$0xff] }
 0x2df   : > { %1477 = vrot.lane.b32.xlu1 %v1400_v53, %s3915_s20  ;;  %v3388_v53 = vld [vmem:[%s6131_s3 + $0x4f0] sm:$0xff]  ;;  %1642 = vmatpush.msra.mxu2 %v3364_v17  ;;  %v3417_v17 = vld [vmem:[%s6131_s3 + $0x5d8] sm:$0xff] }
 0x2e0   : > { %1729 = vmatpush.msrb.mxu3 %v3388_v53 }
 0x2e1   : > { %1643 = vmatpush.msra.mxu2 %v3363_v28 }
 0x2e2   : > { %1473 = vrot.lane.b32.xlu0 %v1469_v37, %s3917_s22  ;;  %1414 = vrot.lane.b32.xlu2 %v1401_v54, %s3915_s20  ;;  %v1851_v37 = vsel %vm6143_vm14, %v1686_v52, %v1850_v8  ;;  %v3362_v54 = vld [vmem:[%s6131_s3 + $0x420] sm:$0xff]  ;;  %v3344_v52 = vld [vmem:[%s6131_s3 + $0x390] sm:$0xff] }
 0x2e3   : > { %1644 = vmatpush.msra.mxu2 %v3362_v54  ;;  %1730 = vmatpush.msrb.mxu3 %v3387_v9 }
 0x2e5   : > { %1645 = vmatpush.msra.mxu2 %v3361_v45  ;;  %1731 = vmatpush.msrb.mxu3 %v3386_v46 }
 0x2e7   : > { %3740 = vrot.lane.b32.xlu1 %v3739_v48, %s3916_s21  ;;  %v3345_v48 = vld [vmem:[%s6131_s3 + $0x398] sm:$0xff]  ;;  %1646 = vmatpush.msra.mxu2 %v3360_v7 }
 0x2e8   : > { %1732 = vmatpush.msrb.mxu3 %v3385_v22 }
 0x2e9   : > { %1647 = vmatpush.msra.mxu2 %v3359_v29  ;;  %v3398_v29 = vld [vmem:[%s6131_s3 + $0x540] sm:$0xff] }
 0x2ea   : > { %1377 = vrot.lane.b32.xlu0 %v1363_v55, %s3917_s22  ;;  %1343 = vrot.lane.b32.xlu2 %v1329_v4, %s3916_s21  ;;  %v3350_v55 = vld [vmem:[%s6131_s3 + $0x3c0] sm:$0xff] }
 0x2eb   : > { %v3334_v4 = vld [vmem:[%s6131_s3 + $0x340] sm:$0xff]  ;;  %1540 = vmatpush.msra.mxu0 %v3350_v55  ;;  %v3404_v55 = vld [vmem:[%s6131_s3 + $0x570] sm:$0xff] }
 0x2ec   : > { %1578 = vmatpush.msra.mxu1 %v3334_v4  ;;  %v3377_v4 = vld [vmem:[%s6131_s3 + $0x498] sm:$0xff] }
 0x2ed   : > { %1541 = vmatpush.msra.mxu0 %v3349_v58  ;;  %v3403_v58 = vld [vmem:[%s6131_s3 + $0x568] sm:$0xff] }
 0x2ee   : > { %1579 = vmatpush.msra.mxu1 %v3333_v12 }
 0x2ef   : > { %1844 = vrot.lane.b32.xlu1 %v1843_v32, %s3916_s21  ;;  %1542 = vmatpush.msra.mxu0 %v3348_v14  ;;  %v3358_v32 = vld [vmem:[%s6131_s3 + $0x400] sm:$0xff]  ;;  %v3401_v14 = vld [vmem:[%s6131_s3 + $0x558] sm:$0xff] }
 0x2f0   : > { %1580 = vmatpush.msra.mxu1 %v3332_v15  ;;  %1648 = vmatpush.msra.mxu2 %v3358_v32 }
 0x2f1   : > { %1543 = vmatpush.msra.mxu0 %v3347_v38 }
 0x2f2   : > { %3750 = vrot.lane.b32.xlu0 %v3749_v40, %s3915_s20  ;;  %3745 = vrot.lane.b32.xlu2 %v3744_v59, %s3917_s22  ;;  %v3383_v40 = vld [vmem:[%s6131_s3 + $0x4c8] sm:$0xff]  ;;  %v3342_v59 = vld [vmem:[%s6131_s3 + $0x380] sm:$0xff] }
 0x2f3   : > { %1581 = vmatpush.msra.mxu1 %v3331_v33  ;;  %1544 = vmatpush.msra.mxu0 %v3346_v41  ;;  %v3416_v33 = vld [vmem:[%s6131_s3 + $0x5d0] sm:$0xff] }
 0x2f5   : > { %1582 = vmatpush.msra.mxu1 %v3330_v39  ;;  %1545 = vmatpush.msra.mxu0 %v3345_v48 }
 0x2f7   : > { %1846 = vrot.lane.b32.xlu1 %v1842_v27, %s3916_s21  ;;  %1583 = vmatpush.msra.mxu1 %v3329_v44  ;;  %v3384_v27 = vld [vmem:[%s6131_s3 + $0x4d0] sm:$0xff] }
 0x2f8   : > { %1546 = vmatpush.msra.mxu0 %v3344_v52  ;;  %1733 = vmatpush.msrb.mxu3 %v3384_v27  ;;  %v3414_v52 = vld [vmem:[%s6131_s3 + $0x5c0] sm:$0xff] }
 0x2f9   : > { %1584 = vmatpush.msra.mxu1 %v3328_v47 }
 0x2fa   : > { %1776 = vrot.lane.b32.xlu0 %v1775_v11, %s3915_s20  ;;  %1852 = vrot.lane.b32.xlu2 %v1851_v37, %s3917_s22  ;;  %v3419_v11 = vld [vmem:[%s6131_s3 + $0x5e8] sm:$0xff]  ;;  %v3402_v37 = vld [vmem:[%s6131_s3 + $0x560] sm:$0xff] }
 0x2fb   : > { %1585 = vmatpush.msra.mxu1 %v3327_v23  ;;  %1547 = vmatpush.msra.mxu0 %v3343_v19 }
 0x2fc   : > { %1734 = vmatpush.msrb.mxu3 %v3383_v40 }
 0x2fd   : > { %1586 = vmatpush.msra.mxu1 %v3326_v25  ;;  %1548 = vmatpush.msra.mxu0 %v3342_v59  ;;  %v3397_v25 = vld [vmem:[%s6131_s3 + $0x538] sm:$0xff] }
 0x2fe   : > { %1735 = vmatpush.msrb.mxu3 %v3382_v60  ;;  %v3413_v60 = vld [vmem:[%s6131_s3 + $0x5b8] sm:$0xff] }
 0x2ff   : > { %1797 = vmatpush.msrb.mxu0 %v3405_v1  ;;  %1892 = vmatpush.msrb.mxu1 %v3421_v49  ;;  %v3396_v1 = vld [vmem:[%s6131_s3 + $0x530] sm:$0xff] }
 0x300   : > { %1736 = vmatpush.msrb.mxu3 %v3381_v0 }
 0x301   : > { %1798 = vmatpush.msrb.mxu0 %v3404_v55 }
 0x302   : > { %1858 = vrot.lane.b32.xlu0 %v1774_v6, %s3915_s20  ;;  %1854 = vrot.lane.b32.xlu2 %v1850_v8, %s3917_s22  ;;  %v3375_v6 = vld [vmem:[%s6131_s3 + $0x488] sm:$0xff]  ;;  %v3420_v8 = vld [vmem:[%s6131_s3 + $0x5f0] sm:$0xff] }
 0x303   : > { %1737 = vmatpush.msrb.mxu3 %v3380_v26  ;;  %1893 = vmatpush.msrb.mxu1 %v3420_v8  ;;  %v3395_v8 = vld [vmem:[%s6131_s3 + $0x528] sm:$0xff] }
 0x304   : > { %1799 = vmatpush.msrb.mxu0 %v3403_v58  ;;  %v3411_v58 = vld [vmem:[%s6131_s3 + $0x5a8] sm:$0xff] }
 0x305   : > { %1738 = vmatpush.msrb.mxu3 %v3379_v34  ;;  %1894 = vmatpush.msrb.mxu1 %v3419_v11 }
 0x306   : > { %1800 = vmatpush.msrb.mxu0 %v3402_v37 }
 0x307   : > { %1739 = vmatpush.msrb.mxu3 %v3378_v2  ;;  %1895 = vmatpush.msrb.mxu1 %v3418_v13  ;;  %v3410_v13 = vld [vmem:[%s6131_s3 + $0x5a0] sm:$0xff] }
 0x308   : > { %1801 = vmatpush.msrb.mxu0 %v3401_v14  ;;  %v3393_v14 = vld [vmem:[%s6131_s3 + $0x518] sm:$0xff] }
 0x309   : > { %1740 = vmatpush.msrb.mxu3 %v3377_v4  ;;  %1896 = vmatpush.msrb.mxu1 %v3417_v17  ;;  %v3392_v17 = vld [vmem:[%s6131_s3 + $0x510] sm:$0xff] }
 0x30a   : > { %1802 = vmatpush.msrb.mxu0 %v3400_v30  ;;  %v3408_v30 = vld [vmem:[%s6131_s3 + $0x590] sm:$0xff] }
 0x30b   : > { %1741 = vmatpush.msrb.mxu3 %v3376_v5  ;;  %1897 = vmatpush.msrb.mxu1 %v3416_v33 }
 0x30d   : > { %1742 = vmatpush.msrb.mxu3 %v3375_v6  ;;  %v3412_v6 = vld [vmem:[%s6131_s3 + $0x5b0] sm:$0xff] }
 0x30f   : > { %1743 = vmatpush.msrb.mxu3 %v3374_v10  ;;  %v3696_v12 = vpop.permute.xlu2 %3695 }
 0x310   : > { %v3698_v15 = vunpack.i.h.bf16 %v3696_v12  ;;  %v3697_v16 = vunpack.i.l.bf16 %v3696_v12  ;;  %v3394_v12 = vld [vmem:[%s6131_s3 + $0x520] sm:$0xff] }
 0x312   : > { %v1424_v41 = vsel %vm421_vm2, %v4713_v31, %v3698_v15  ;;  %v1423_v44 = vsel %vm421_vm2, %v4729_v3, %v3697_v16  ;;  %v3399_v31 = vld [vmem:[%s6131_s3 + $0x548] sm:$0xff]  ;;  %v3409_v16 = vld [vmem:[%s6131_s3 + $0x598] sm:$0xff] }
 0x313   : > { %v3415_v3 = vld [vmem:[%s6131_s3 + $0x5c8] sm:$0xff]  ;;  %1803 = vmatpush.msrb.mxu0 %v3399_v31  ;;  %v3390_v31 = vld [vmem:[%s6131_s3 + $0x500] sm:$0xff] }
 0x314   : > { %1898 = vmatpush.msrb.mxu1 %v3415_v3 }
 0x315   : > { %1804 = vmatpush.msrb.mxu0 %v3398_v29 }
 0x316   : > { %1899 = vmatpush.msrb.mxu1 %v3414_v52 }
 0x317   : > { %1805 = vmatpush.msrb.mxu0 %v3397_v25 }
 0x318   : > { %1900 = vmatpush.msrb.mxu1 %v3413_v60 }
 0x319   : > { %1806 = vmatpush.msrb.mxu0 %v3396_v1 }
 0x31a   : > { %1901 = vmatpush.msrb.mxu1 %v3412_v6 }
 0x31b   : > { %1807 = vmatpush.msrb.mxu0 %v3395_v8 }
 0x31c   : > { %v3711_v27 = vpop.permute.xlu2 %3710  ;;  %1902 = vmatpush.msrb.mxu1 %v3411_v58 }
 0x31d   : > { %v3712_v19 = vunpack.i.l.bf16 %v3711_v27  ;;  %v3713_v32 = vunpack.i.h.bf16 %v3711_v27  ;;  %1808 = vmatpush.msrb.mxu0 %v3394_v12 }
 0x31e   : > { %1903 = vmatpush.msrb.mxu1 %v3410_v13 }
 0x31f   : > { %v1425_v2 = vsel %vm421_vm2, %v4718_v57, %v3712_v19  ;;  %v1426_v55 = vsel %vm421_vm2, %v4749_v35, %v3713_v32  ;;  %1809 = vmatpush.msrb.mxu0 %v3393_v14 }
 0x320   : > { %1904 = vmatpush.msrb.mxu1 %v3409_v16 }
 0x321   : > { %1810 = vmatpush.msrb.mxu0 %v3392_v17 }
 0x322   : > { %1905 = vmatpush.msrb.mxu1 %v3408_v30 }
 0x326   : > { %v3706_v28 = vpop.permute.xlu1 %3705  ;;  %v3701_v38 = vpop.permute.xlu0 %3700 }
 0x327   : > { %v3708_v53 = vunpack.i.h.bf16 %v3706_v28  ;;  %v3707_v39 = vunpack.i.l.bf16 %v3706_v28  ;;  %v3703_v54 = vunpack.i.h.bf16 %v3701_v38  ;;  %v3702_v9 = vunpack.i.l.bf16 %v3701_v38 }
 0x329   : > { %v1430_v45 = vsel %vm6144_vm0, %v1423_v44, %v3702_v9  ;;  %v1431_v46 = vsel %vm6145_vm11, %v1424_v41, %v3703_v54  ;;  %vm6148_vm0 = vcmask 1043456  }
 0x32a   : > { %v1437_v47 = vsel %vm6146_vm1, %v1430_v45, %v3707_v39  ;;  %v1438_v7 = vsel %vm6147_vm15, %v1431_v46, %v3708_v53  ;;  %vm6149_vm15 = vmmov %vm6145_vm11  ;;  %v3407_v53 = vld [vmem:[%s6131_s3 + $0x588] sm:$0xff]  ;;  %v3406_v46 = vld [vmem:[%s6131_s3 + $0x580] sm:$0xff] }
 0x32b   : > { %v1511_v48 = vrot.slane %v1437_v47, 4  ;;  %1587 = vmatmul.f32.vlgmr.msra.gmra.mxu1 %v1437_v47  ;;  %v1512_v22 = vrot.slane %v1438_v7, 4  ;;  %1649 = vmatmul.f32.vlgmr.msra.gmra.mxu2 %v1438_v7  ;;  %vm6150_vm11 = vmmov %vm6146_vm1  ;;  %v3391_v45 = vld [vmem:[%s6131_s3 + $0x508] sm:$0xff] }
 0x32c   : > { %vm6151_vm1 = vmmov %vm6149_vm15  ;;  %v3726_v35 = vpop.permute.xlu2 %3725  ;;  %1906 = vmatpush.msrb.mxu1 %v3407_v53  ;;  %1811 = vmatpush.msrb.mxu0 %v3391_v45 }
 0x32d   : > { %v1513_v23 = vsel %vm6148_vm0, %v1511_v48, %v1512_v22  ;;  %v3727_v28 = vunpack.i.l.bf16 %v3726_v35  ;;  %v3728_v54 = vunpack.i.h.bf16 %v3726_v35 }
 0x32e   : > { %1549 = vmatmul.f32.vlgmr.msra.gmra.mxu0 %v1513_v23  ;;  %1907 = vmatpush.msrb.mxu1 %v3406_v46 }
 0x32f   : > { %v1427_v47 = vsel %vm421_vm2, %v4756_v43, %v3727_v28  ;;  %v1428_v48 = vsel %vm421_vm2, %v4774_v61, %v3728_v54  ;;  %1812 = vmatpush.msrb.mxu0 %v3390_v31 }
 0x333   : > { %1590 = vmatmul.f32.gmra.mxu1 %v1438_v7  ;;  %v3721_v40 = vpop.permute.xlu1 %3720  ;;  %v3716_v59 = vpop.permute.xlu0 %3715 }
 0x334   : > { %v3722_v0 = vunpack.i.l.bf16 %v3721_v40  ;;  %v3718_v26 = vunpack.i.h.bf16 %v3716_v59  ;;  %v3717_v34 = vunpack.i.l.bf16 %v3716_v59  ;;  %v3723_v4 = vunpack.i.h.bf16 %v3721_v40  ;;  %v1413_v39 = vpop.permute.xlu2 %1412 }
 0x336   : > { %v1432_v49 = vsel %vm6149_vm15, %v1425_v2, %v3717_v34  ;;  %v1433_v10 = vsel %vm6151_vm1, %v1426_v55, %v3718_v26  ;;  %vm6152_vm15 = vmmov %vm6150_vm11 }
 0x337   : > { %v5126_v5 = vsel %vm6150_vm11, %v1432_v49, %v3722_v0  ;;  %v5143_v37 = vsel %vm6152_vm15, %v1433_v10, %v3723_v4  ;;  %vm6153_vm11 = vmmov %vm6148_vm0 }
 0x338   : > { %1652 = vmatmul.f32.gmra.mxu2 %v5126_v5  ;;  %v1514_v57 = vrot.slane %v5126_v5, 4  ;;  %v1516_v15 = vrot.slane %v5143_v37, 4 }
 0x33a   : > { %v1515_v11 = vsel %vm6148_vm0, %v1512_v22, %v1514_v57  ;;  %v5166_v38 = vsel %vm6153_vm11, %v1514_v57, %v1516_v15  ;;  %vm6154_vm0 = vmmov %vm6152_vm15 }
 0x33b   : > { %1593 = vmatmul.f32.gmra.mxu1 %v5126_v5  ;;  %1552 = vmatmul.f32.gmra.mxu0 %v1515_v11  ;;  %v1411_v33 = vpop.permute.xlu1 %1410  ;;  %vm6155_vm15 = vmmov %vm6151_vm1 }
 0x33c   : > { %1744 = vmatmul.f32.vlgmr.msrb.gmra.mxu3 %v1515_v11  ;;  %v1415_v27 = vpop.permute.xlu2 %1414 }
 0x340   : > { %1655 = vmatmul.f32.gmra.mxu2 %v5143_v37 }
 0x343   : > { %1596 = vmatmul.f32.gmra.mxu1 %v5143_v37  ;;  %1555 = vmatmul.f32.gmra.mxu0 %v5166_v38 }
 0x344   : > { %1747 = vmatmul.f32.gmra.mxu3 %v5166_v38  ;;  %v3731_v9 = vpop.permute.xlu0 %3730  ;;  %v1344_v1 = vpop.permute.xlu2 %1343 }
 0x345   : > { %v3733_v41 = vunpack.i.h.bf16 %v3731_v9  ;;  %v3732_v44 = vunpack.i.l.bf16 %v3731_v9  ;;  %v1429_v6 = vsel %vm421_vm2, %v4799_v51, %v1344_v1 }
 0x347   : > { %v1434_v7 = vsel %vm6151_vm1, %v1427_v47, %v3732_v44  ;;  %v1435_v43 = vsel %vm6155_vm15, %v1428_v48, %v3733_v41  ;;  %vm6156_vm1 = vmmov %vm6154_vm0 }
 0x348   : > { %v5186_v22 = vsel %vm6154_vm0, %v1434_v7, %v1411_v33  ;;  %v5197_v52 = vsel %vm6156_vm1, %v1435_v43, %v1413_v39  ;;  %vm6157_vm0 = vmmov %vm6155_vm15 }
 0x349   : > { %1658 = vmatmul.f32.gmra.mxu2 %v5186_v22  ;;  %v1472_v3 = vpop.permute.xlu1 %1471  ;;  %v1518_v23 = vrot.slane %v5186_v22, 4  ;;  %v1520_v19 = vrot.slane %v5197_v52, 4  ;;  %vm6158_vm15 = vmmov %vm6153_vm11 }
 0x34b   : > { %1599 = vmatmul.f32.gmra.mxu1 %v5186_v22  ;;  %v1519_v29 = vsel %vm6153_vm11, %v1516_v15, %v1518_v23  ;;  %v1521_v60 = vsel %vm6158_vm15, %v1518_v23, %v1520_v19  ;;  %vm6159_vm11 = vmmov %vm6156_vm1 }
 0x34c   : > { %1558 = vmatmul.f32.gmra.mxu0 %v1519_v29  ;;  %1750 = vmatmul.f32.gmra.mxu3 %v1519_v29  ;;  %v3736_v61 = vpop.permute.xlu0 %3735  ;;  %vm6160_vm1 = vmmov %vm6157_vm0  ;;  %v3746_v13 = vpop.permute.xlu2 %3745 }
 0x34d   : > { %v3737_v25 = vunpack.i.l.bf16 %v3736_v61  ;;  %v3738_v0 = vunpack.i.h.bf16 %v3736_v61  ;;  %v3747_v16 = vunpack.i.l.bf16 %v3746_v13  ;;  %v3748_v9 = vunpack.i.h.bf16 %v3746_v13 }
 0x34f   : > { %v1480_v32 = vsel %vm421_vm2, %v4799_v51, %v3737_v25  ;;  %v1481_v49 = vsel %vm421_vm2, %v4819_v36, %v3738_v0 }
 0x350   : > { %v1482_v40 = vsel %vm6157_vm0, %v1480_v32, %v1472_v3  ;;  %vm6161_vm0 = vmmov %vm6158_vm15 }
 0x351   : > { %1661 = vmatmul.f32.gmra.mxu2 %v5197_v52  ;;  %v1478_v59 = vpop.permute.xlu1 %1477  ;;  %v1484_v34 = vsel %vm6159_vm11, %v1482_v40, %v1415_v27  ;;  %vm6162_vm15 = vmmov %vm6159_vm11 }
 0x352   : > { %v1522_v2 = vrot.slane %v1484_v34, 4  ;;  %vm6163_vm11 = vmmov %vm6160_vm1 }
 0x353   : > { %1602 = vmatmul.f32.gmra.mxu1 %v5197_v52  ;;  %vm6164_vm13 = vmmov %vm6162_vm15 }
 0x354   : > { %1561 = vmatmul.f32.gmra.mxu0 %v1521_v60  ;;  %1753 = vmatmul.f32.gmra.mxu3 %v1521_v60  ;;  %v1474_v26 = vpop.permute.xlu0 %1473  ;;  %v1523_v4 = vsel %vm6161_vm0, %v1520_v19, %v1522_v2  ;;  %vm6170_vm14 = vmmov %vm6164_vm13  ;;  %v1853_v48 = vpop.permute.xlu2 %1852 }
 0x355   : > { %v1483_v55 = vsel %vm6160_vm1, %v1481_v49, %v1474_v26  ;;  %vm6165_vm1 = vmmov %vm6161_vm0 }
 0x356   : > { %v1485_v8 = vsel %vm6162_vm15, %v1483_v55, %v1478_v59  ;;  %vm6166_vm0 = vmmov %vm6163_vm11 }
 0x357   : > { %v1524_v11 = vrot.slane %v1485_v8, 4  ;;  %vm6167_vm15 = vmmov %vm6164_vm13  ;;  %v3430_v8 = vld [vmem:[%s6133_s5 + $0x20] sm:$0xff] }
 0x359   : > { %1664 = vmatmul.f32.gmra.mxu2 %v1484_v34  ;;  %v3741_v57 = vpop.permute.xlu1 %3740  ;;  %v1525_v51 = vsel %vm6165_vm1, %v1522_v2, %v1524_v11 }
 0x35a   : > { %v3742_v12 = vunpack.i.l.bf16 %v3741_v57  ;;  %v3743_v14 = vunpack.i.h.bf16 %v3741_v57 }
 0x35c   : > { %v1378_v10 = vpop.permute.xlu0 %1377  ;;  %1564 = vmatmul.f32.gmra.mxu0 %v1523_v4  ;;  %1756 = vmatmul.f32.gmra.mxu3 %v1523_v4  ;;  %v1697_v15 = vsel %vm421_vm2, %v4819_v36, %v3742_v12  ;;  %v1698_v28 = vsel %vm421_vm2, %v4836_v21, %v3743_v14 }
 0x35d   : > { %v1436_v35 = vsel %vm6163_vm11, %v1429_v6, %v1378_v10  ;;  %v1699_v33 = vsel %vm6166_vm0, %v1697_v15, %v3747_v16  ;;  %vm6168_vm11 = vmmov %vm6165_vm1 }
 0x35e   : > { %v1443_v58 = vsel %vm6164_vm13, %v1436_v35, %v1415_v27  ;;  %vm6169_vm1 = vmmov %vm6166_vm0 }
 0x35f   : > { %1605 = vmatmul.f32.gmra.mxu1 %v1443_v58  ;;  %v1700_v44 = vsel %vm6169_vm1, %v1698_v28, %v3748_v9  ;;  %vm6171_vm0 = vmmov %vm6168_vm11  ;;  %v5267_v28 = vld [vmem:[%s6132_s4 + $0x1] ss:$0 sm:$0xff] }
 0x361   : > { %v1845_v47 = vpop.permute.xlu1 %1844 }
 0x362   : > { %v1861_v31 = vsel %vm421_vm2, %v4836_v21, %v1845_v47 }
 0x364   : > { %v3751_v17 = vpop.permute.xlu0 %3750  ;;  %1567 = vmatmul.f32.gmra.mxu0 %v1525_v51 }
 0x365   : > { %v3752_v30 = vunpack.i.l.bf16 %v3751_v17  ;;  %v3753_v53 = vunpack.i.h.bf16 %v3751_v17 }
 0x367   : > { %1908 = vmatmul.f32.vlgmr.msrb.gmra.mxu1 %v5166_v38  ;;  %v1615_v39 = vsel %vm6164_vm13, %v1483_v55, %v3752_v30  ;;  %v1701_v54 = vsel %vm6167_vm15, %v1699_v33, %v3752_v30  ;;  %v1702_v45 = vsel %vm6170_vm14, %v1700_v44, %v3753_v53  ;;  %vm6172_vm14 = vmmov %vm6169_vm1 }
 0x368   : > { %1667 = vmatmul.f32.gmra.mxu2 %v1615_v39  ;;  %v1722_v36 = vrot.slane %v1701_v54, 4  ;;  %v1724_v46 = vrot.slane %v1702_v45, 4  ;;  %vm6173_vm15 = vmmov %vm6169_vm1 }
 0x369   : > { %v1847_v23 = vpop.permute.xlu1 %1846  ;;  %vm6175_vm1 = vmmov %vm6164_vm13 }
 0x36a   : > { %v1723_v41 = vsel %vm6168_vm11, %v1522_v2, %v1722_v36  ;;  %v1725_v38 = vsel %vm6171_vm0, %v1722_v36, %v1724_v46  ;;  %vm6174_vm11 = vmmov %vm6171_vm0  ;;  %v3431_v2 = vld [vmem:[%s6133_s5 + $0x28] sm:$0xff] }
 0x36b   : > { %1759 = vmatmul.f32.gmra.mxu3 %v1723_v41 }
 0x36c   : > { %1813 = vmatmul.f32.vlgmr.msrb.gmra.mxu0 %v5126_v5  ;;  %v1777_v7 = vpop.permute.xlu0 %1776  ;;  %v1863_v5 = vsel %vm6172_vm14, %v1861_v31, %v1853_v48  ;;  %vm6176_vm14 = vmmov %vm6175_vm1 }
 0x36d   : > { %v1865_v3 = vsel %vm6164_vm13, %v1863_v5, %v1777_v7  ;;  %v1779_v19 = vsel %vm6176_vm14, %v1700_v44, %v1777_v7 }
 0x36e   : > { %v1886_v43 = vrot.slane %v1865_v3, 4 }
 0x36f   : > { %1911 = vmatmul.f32.gmra.mxu1 %v1519_v29  ;;  %v1855_v29 = vpop.permute.xlu2 %1854 }
 0x370   : > { %v1887_v27 = vsel %vm6174_vm11, %v1722_v36, %v1886_v43 }
 0x373   : > { %1762 = vmatmul.f32.gmra.mxu3 %v1725_v38 }
 0x374   : > { %1816 = vmatmul.f32.gmra.mxu0 %v5143_v37  ;;  %v1862_v37 = vsel %vm421_vm2, %v4876_v24, %v1847_v23  ;;  %v3433_v24 = vld [vmem:[%s6133_s5 + $0x38] sm:$0xff] }
 0x375   : > { %v1864_v61 = vsel %vm6173_vm15, %v1862_v37, %v1855_v29  ;;  %2029 = vmatpush.msrb.mxu2 %v3433_v24 }
 0x377   : > { %1914 = vmatmul.f32.gmra.mxu1 %v1521_v60  ;;  %v3432_v60 = vld [vmem:[%s6133_s5 + $0x30] sm:$0xff] }
 0x378   : > { %2030 = vmatpush.msrb.mxu2 %v3432_v60 }
 0x37a   : > { %2031 = vmatpush.msrb.mxu2 %v3431_v2 }
 0x37c   : > { %1819 = vmatmul.f32.gmra.mxu0 %v5186_v22  ;;  %v1859_v22 = vpop.permute.xlu0 %1858  ;;  %2032 = vmatpush.msrb.mxu2 %v3430_v8 }
 0x37d   : > { %v1866_v21 = vsel %vm6175_vm1, %v1864_v61, %v1859_v22 }
 0x37f   : > { %1917 = vmatmul.f32.gmra.mxu1 %v1523_v4 }
 0x384   : > { %1822 = vmatmul.f32.gmra.mxu0 %v5197_v52  ;;  %v1888_v52 = vrot.slane %v1866_v21, 4 }
 0x386   : > { %v1889_v25 = vsel %vm6171_vm0, %v1886_v43, %v1888_v52 }
 0x387   : > { %1920 = vmatmul.f32.gmra.mxu1 %v1723_v41 }
 0x38c   : > { %1825 = vmatmul.f32.gmra.mxu0 %v1484_v34 }
 0x38f   : > { %1923 = vmatmul.f32.gmra.mxu1 %v1887_v27 }
 0x394   : > { %1828 = vmatmul.f32.gmra.mxu0 %v1701_v54 }
 0x397   : > { %1926 = vmatmul.f32.gmra.mxu1 %v1889_v25 }
 0x39c   : > { %1831 = vmatmul.f32.gmra.mxu0 %v1779_v19 }
 0x3a8   : > { %v1588_v32 = vpop.f32.mrf.mxu1 }
 0x3ab   : > { %v1550_v40 = vpop.f32.mrf.mxu0 }
 0x3ac   : > { %v1589_v12 = vadd.f32 %v1588_v32, %v1550_v40 }
 0x3ae   : > { %v1650_v10 = vpop.f32.mrf.mxu2 }
 0x3af   : > { %v1671_v51 = vadd.f32 %v1650_v10, %v1589_v12 }
 0x3b0   : > { %v1591_v59 = vpop.f32.mrf.mxu1 }
 0x3b8   : > { %v1594_v0 = vpop.f32.mrf.mxu1  ;;  %v1553_v26 = vpop.f32.mrf.mxu0 }
 0x3b9   : > { %v1592_v30 = vadd.f32 %v1591_v59, %v1553_v26 }
 0x3bb   : > { %v1653_v13 = vpop.f32.mrf.mxu2 }
 0x3bc   : > { %v1672_v9 = vadd.f32 %v1653_v13, %v1592_v30 }
 0x3bf   : > { %v1745_v35 = vpop.f32.mrf.mxu3 }
 0x3c0   : > { %v1597_v34 = vpop.f32.mrf.mxu1  ;;  %v1556_v1 = vpop.f32.mrf.mxu0  ;;  %v1766_v16 = vadd.f32 %v1745_v35, %v1671_v51 }
 0x3c1   : > { %v1595_v38 = vadd.f32 %v1594_v0, %v1556_v1 }
 0x3c3   : > { %v1656_v54 = vpop.f32.mrf.mxu2 }
 0x3c4   : > { %v1673_v5 = vadd.f32 %v1656_v54, %v1595_v38 }
 0x3c7   : > { %v1748_v15 = vpop.f32.mrf.mxu3 }
 0x3c8   : > { %v1600_v55 = vpop.f32.mrf.mxu1  ;;  %v1767_v44 = vadd.f32 %v1748_v15, %v1672_v9 }
 0x3c9   : > { %v1559_v49 = vpop.f32.mrf.mxu0 }
 0x3ca   : > { %v1598_v27 = vadd.f32 %v1597_v34, %v1559_v49 }
 0x3cc   : > { %v1659_v23 = vpop.f32.mrf.mxu2 }
 0x3cd   : > { %v1674_v40 = vadd.f32 %v1659_v23, %v1598_v27 }
 0x3cf   : > { %v1751_v41 = vpop.f32.mrf.mxu3 }
 0x3d0   : > { %v5253_v6 = vpop.f32.mrf.mxu1  ;;  %v1768_v43 = vadd.f32 %v1751_v41, %v1673_v5 }
 0x3d1   : > { %v1562_v4 = vpop.f32.mrf.mxu0 }
 0x3d2   : > { %v1601_v8 = vadd.f32 %v1600_v55, %v1562_v4 }
 0x3d4   : > { %v1662_v26 = vpop.f32.mrf.mxu2 }
 0x3d7   : > { %v1754_v22 = vpop.f32.mrf.mxu3 }
 0x3d8   : > { %v1769_v60 = vadd.f32 %v1754_v22, %v1674_v40 }
 0x3d9   : > { %v5258_v57 = vpop.f32.mrf.mxu0 }
 0x3da   : > { %v1604_v55 = vadd.f32 %v5253_v6, %v5258_v57 }
 0x3dc   : > { %v5260_v58 = vpop.f32.mrf.mxu1 }
 0x3df   : > { %v1757_v10 = vpop.f32.mrf.mxu3 }
 0x3e1   : > { %v5262_v11 = vpop.f32.mrf.mxu0 }
 0x3e4   : > { %v1909_v14 = vpop.f32.mrf.mxu1 }
 0x3e9   : > { %v1814_v17 = vpop.f32.mrf.mxu0 }
 0x3ea   : > { %v1835_v33 = vadd.f32 %v1814_v17, %v1766_v16 }
 0x3ec   : > { %v1930_v53 = vadd.f32 %v1909_v14, %v1835_v33  ;;  %v1912_v39 = vpop.f32.mrf.mxu1  ;;  %v1675_v14 = vadd.f32 %v1662_v26, %v1601_v8 }
 0x3ee   : > { %v1942_v36 = vadd.f32 %v5267_v28, %v1930_v53  ;;  %v1770_v16 = vadd.f32 %v1757_v10, %v1675_v14  ;;  %v1760_v54 = vpop.f32.mrf.mxu3 }
 0x3f0   : > { %v1956_v45 = vmin.f32 %v1942_v36, 0.0  ;;  %vm1949_vm13 = vcmp.gt.f32.partialorder %v1942_v36, 0.0 }
 0x3f1   : > { %v1817_v46 = vpop.f32.mrf.mxu0 }
 0x3f2   : > { %v1963_v47 = vmul.f32 1.442695, %v1956_v45  ;;  %v1836_v7 = vadd.f32 %v1817_v46, %v1767_v44 }
 0x3f4   : > { %3850 = vpow2.f32 %v1963_v47  ;;  %v1931_v48 = vadd.f32 %v1912_v39, %v1836_v7  ;;  %v1915_v31 = vpop.f32.mrf.mxu1  ;;  %v1665_v39 = vpop.f32.mrf.mxu2 }
 0x3f5   : > { %v1676_v44 = vadd.f32 %v1665_v39, %v1604_v55 }
 0x3f6   : > { %v1943_v3 = vadd.f32 %v5267_v28, %v1931_v48 }
 0x3f7   : > { %v1771_v46 = vadd.f32 %v1760_v54, %v1676_v44 }
 0x3f8   : > { %v1957_v37 = vmin.f32 %v1943_v3, 0.0  ;;  %vm1950_vm15 = vcmp.gt.f32.partialorder %v1943_v3, 0.0 }
 0x3f9   : > { %v1820_v29 = vpop.f32.mrf.mxu0 }
 0x3fa   : > { %v3851_v61 = vpop.eup %3850  ;;  %v1837_v21 = vadd.f32 %v1820_v29, %v1768_v43  ;;  %v1965_v52 = vmul.f32 1.442695, %v1957_v37  ;;  %v1763_v43 = vpop.f32.mrf.mxu3 }
 0x3fb   : > { %v3423_v25 = vadd.f32 -1.0, %v3851_v61 }
 0x3fc   : > { %v1932_v19 = vadd.f32 %v1915_v31, %v1837_v21  ;;  %3852 = vpow2.f32 %v1965_v52  ;;  %v1918_v32 = vpop.f32.mrf.mxu1  ;;  %v1668_v31 = vpop.f32.mrf.mxu2 }
 0x3fd   : > { %v1984_v24 = vsel %vm1949_vm13, %v1942_v36, %v3423_v25 }
 0x3fe   : > { %v1944_v59 = vadd.f32 %v5267_v28, %v1932_v19  ;;  %3434 = vmatmul.msk.f32.vlgmr.msrb.gmra.mxu2 %vm421_vm2, %v1984_v24 }
 0x400   : > { %v1958_v0 = vmin.f32 %v1944_v59, 0.0  ;;  %vm1951_vm11 = vcmp.gt.f32.partialorder %v1944_v59, 0.0 }
 0x401   : > { %v1823_v1 = vpop.f32.mrf.mxu0 }
 0x402   : > { %v3853_v2 = vpop.eup %3852  ;;  %v1838_v34 = vadd.f32 %v1823_v1, %v1769_v60  ;;  %v1967_v49 = vmul.f32 1.442695, %v1958_v0 }
 0x403   : > { %v3424_v35 = vadd.f32 -1.0, %v3853_v2 }
 0x404   : > { %v1933_v12 = vadd.f32 %v1918_v32, %v1838_v34  ;;  %3854 = vpow2.f32 %v1967_v49  ;;  %v1921_v51 = vpop.f32.mrf.mxu1 }
 0x405   : > { %v1985_v13 = vsel %vm1950_vm15, %v1943_v3, %v3424_v35  ;;  %v1607_v3 = vadd.f32 %v5260_v58, %v5262_v11 }
 0x406   : > { %v1945_v15 = vadd.f32 %v5267_v28, %v1933_v12  ;;  %3435 = vmatmul.msk.f32.gmra.mxu2 %vm421_vm2, %v1985_v13 }
 0x407   : > { %v1677_v22 = vadd.f32 %v1668_v31, %v1607_v3 }
 0x408   : > { %v1959_v17 = vmin.f32 %v1945_v15, 0.0  ;;  %vm1952_vm1 = vcmp.gt.f32.partialorder %v1945_v15, 0.0 }
 0x409   : > { %v1826_v30 = vpop.f32.mrf.mxu0  ;;  %v1772_v61 = vadd.f32 %v1763_v43, %v1677_v22 }
 0x40a   : > { %v3855_v33 = vpop.eup %3854  ;;  %v1969_v4 = vmul.f32 1.442695, %v1959_v17  ;;  %v1839_v53 = vadd.f32 %v1826_v30, %v1770_v16 }
 0x40b   : > { %v3425_v9 = vadd.f32 -1.0, %v3855_v33 }
 0x40c   : > { %v1934_v36 = vadd.f32 %v1921_v51, %v1839_v53  ;;  %3856 = vpow2.f32 %v1969_v4  ;;  %v1924_v47 = vpop.f32.mrf.mxu1 }
 0x40d   : > { %v1986_v41 = vsel %vm1951_vm11, %v1944_v59, %v3425_v9 }
 0x40e   : > { %v1946_v45 = vadd.f32 %v5267_v28, %v1934_v36  ;;  %3436 = vmatmul.msk.f32.gmra.mxu2 %vm421_vm2, %v1986_v41 }
 0x410   : > { %v1960_v38 = vmin.f32 %v1946_v45, 0.0  ;;  %vm1953_vm0 = vcmp.gt.f32.partialorder %v1946_v45, 0.0 }
 0x411   : > { %v1829_v7 = vpop.f32.mrf.mxu0 }
 0x412   : > { %v3857_v48 = vpop.eup %3856  ;;  %v1971_v6 = vmul.f32 1.442695, %v1960_v38  ;;  %v1840_v57 = vadd.f32 %v1829_v7, %v1771_v46 }
 0x413   : > { %v3426_v5 = vadd.f32 -1.0, %v3857_v48 }
 0x414   : > { %v1935_v23 = vadd.f32 %v1924_v47, %v1840_v57  ;;  %3858 = vpow2.f32 %v1971_v6  ;;  %v1927_v32 = vpop.f32.mrf.mxu1 }
 0x415   : > { %v1987_v37 = vsel %vm1952_vm1, %v1945_v15, %v3426_v5 }
 0x416   : > { %v1947_v29 = vadd.f32 %v5267_v28, %v1935_v23  ;;  %3437 = vmatmul.msk.f32.gmra.mxu2 %vm421_vm2, %v1987_v37 }
 0x418   : > { %v1961_v27 = vmin.f32 %v1947_v29, 0.0  ;;  %vm1954_vm14 = vcmp.gt.f32.partialorder %v1947_v29, 0.0 }
 0x419   : > { %v1832_v21 = vpop.f32.mrf.mxu0 }
 0x41a   : > { %v3859_v52 = vpop.eup %3858  ;;  %v1973_v25 = vmul.f32 1.442695, %v1961_v27  ;;  %v1841_v19 = vadd.f32 %v1832_v21, %v1772_v61 }
 0x41b   : > { %v3427_v24 = vadd.f32 -1.0, %v3859_v52 }
 0x41c   : > { %v1936_v40 = vadd.f32 %v1927_v32, %v1841_v19  ;;  %3860 = vpow2.f32 %v1973_v25 }
 0x41d   : > { %v1988_v58 = vsel %vm1953_vm0, %v1946_v45, %v3427_v24  ;;  %vm6177_vm0 = vcmask 1045504  }
 0x41e   : > { %v1948_v11 = vadd.f32 %v5267_v28, %v1936_v40  ;;  %3438 = vmatmul.msk.f32.gmra.mxu2 %vm421_vm2, %v1988_v58  ;;  %v5290_v28 = vld [vmem:[%s6134_s6 + $0x1] ss:$0 sm:$0xff] }
 0x420   : > { %v1962_v59 = vmin.f32 %v1948_v11, 0.0  ;;  %vm1955_vm13 = vcmp.gt.f32.partialorder %v1948_v11, 0.0 }
 0x422   : > { %v3861_v60 = vpop.eup %3860  ;;  %v1975_v0 = vmul.f32 1.442695, %v1962_v59 }
 0x423   : > { %v3428_v26 = vadd.f32 -1.0, %v3861_v60 }
 0x424   : > { %3862 = vpow2.f32 %v1975_v0 }
 0x425   : > { %v1989_v1 = vsel %vm1954_vm14, %v1947_v29, %v3428_v26  ;;  %vm6178_vm14 = vcmask 1046528  }
 0x426   : > { %3439 = vmatmul.msk.f32.gmra.mxu2 %vm421_vm2, %v1989_v1 }
 0x42a   : > { %v3863_v2 = vpop.eup %3862 }
 0x42b   : > { %v3429_v8 = vadd.f32 -1.0, %v3863_v2 }
 0x42d   : > { %v1990_v34 = vsel %vm1955_vm13, %v1948_v11, %v3429_v8 }
 0x42e   : > { %3440 = vmatmul.msk.f32.gmra.mxu2 %vm421_vm2, %v1990_v34 }
 0x481   : > { %v2034_v49 = vpop.f32.mrf.mxu2 }
 0x482   : > { %v2055_v10 = vadd.f32 %v2034_v49, %v4682_v20 }
 0x484   : > { %v2067_v35 = vadd.f32 %v5290_v28, %v2055_v10 }
 0x486   : > { %v2081_v12 = vmin.f32 %v2067_v35, 0.0  ;;  %vm2074_vm15 = vcmp.gt.f32.partialorder %v2067_v35, 0.0 }
 0x488   : > { %v2088_v13 = vmul.f32 1.442695, %v2081_v12 }
 0x489   : > { %v2037_v14 = vpop.f32.mrf.mxu2 }
 0x48a   : > { %3864 = vpow2.f32 %v2088_v13  ;;  %v2056_v15 = vadd.f32 %v2037_v14, %v4702_v50 }
 0x48c   : > { %v2068_v51 = vadd.f32 %v5290_v28, %v2056_v15 }
 0x48e   : > { %v2082_v16 = vmin.f32 %v2068_v51, 0.0  ;;  %vm2075_vm11 = vcmp.gt.f32.partialorder %v2068_v51, 0.0 }
 0x490   : > { %v3865_v17 = vpop.eup %3864  ;;  %v2090_v30 = vmul.f32 1.442695, %v2082_v16 }
 0x491   : > { %v3442_v33 = vadd.f32 -1.0, %v3865_v17  ;;  %v2040_v55 = vpop.f32.mrf.mxu2 }
 0x492   : > { %3866 = vpow2.f32 %v2090_v30  ;;  %v2057_v4 = vadd.f32 %v2040_v55, %v4716_v63 }
 0x493   : > { %v5297_v20 = vsel %vm2074_vm15, %v2067_v35, %v3442_v33  ;;  %vm6179_vm15 = vmmov %vm6177_vm0 }
 0x494   : > { %2116 = vst.msk [vmem:[#allocation2 + $0xa] sm:$0xff] %vm421_vm2, %v5297_v20  ;;  %v2069_v53 = vadd.f32 %v5290_v28, %v2057_v4 }
 0x495   : > { %2123 = vst.msk [vmem:[#allocation2 + $0x8] sm:$0x2] %vm430_vm8, %v5297_v20 }
 0x496   : > { %2125 = vst.msk [vmem:[#allocation2 + $0x6] sm:$0x4] %vm434_vm9, %v5297_v20  ;;  %v2083_v50 = vmin.f32 %v2069_v53, 0.0  ;;  %vm2076_vm1 = vcmp.gt.f32.partialorder %v2069_v53, 0.0 }
 0x497   : > { %2127 = vst.msk [vmem:[#allocation2 + $0x4] sm:$0x8] %vm436_vm3, %v5297_v20 }
 0x498   : > { %v3867_v39 = vpop.eup %3866  ;;  %2129 = vst.msk [vmem:[#allocation2 + $0x2] sm:$0x10] %vm432_vm4, %v5297_v20  ;;  %v2092_v63 = vmul.f32 1.442695, %v2083_v50 }
 0x499   : > { %2131 = vst.msk [vmem:[#allocation2] sm:$0x20] %vm442_vm5, %v5297_v20  ;;  %v3443_v54 = vadd.f32 -1.0, %v3867_v39  ;;  %v2043_v9 = vpop.f32.mrf.mxu2 }
 0x49a   : > { %2133 = vst.msk [vmem:[#allocation2 - $0x2] sm:$0x40] %vm446_vm6, %v5297_v20  ;;  %3868 = vpow2.f32 %v2092_v63  ;;  %v2058_v36 = vadd.f32 %v2043_v9, %v4740_v18 }
 0x49b   : > { %2135 = vst.msk [vmem:[#allocation2 - $0x4] sm:$0x80] %vm448_vm7, %v5297_v20  ;;  %v5317_v41 = vsel %vm2075_vm11, %v2068_v51, %v3443_v54  ;;  %vm6180_vm11 = vmmov %vm6178_vm14 }
 0x49c   : > { %2117 = vst.msk [vmem:[#allocation2 + $0x12] sm:$0xff] %vm421_vm2, %v5317_v41  ;;  %v2070_v44 = vadd.f32 %v5290_v28, %v2058_v36 }
 0x49d   : > { %2137 = vst.msk [vmem:[#allocation2 + $0x2] sm:$0x1] %vm444_vm10, %v5317_v41  ;;  %v5328_v38 = vld [vmem:[#allocation2 + $0x8] sm:$0xff] }
 0x49e   : > { %2139 = vst.msk [vmem:[#allocation2] sm:$0x2] %vm430_vm8, %v5317_v41  ;;  %v2084_v45 = vmin.f32 %v2070_v44, 0.0  ;;  %v2230_v31 = vrot.slane %v5328_v38, 3  ;;  %v2195_v5 = vrot.slane %v5328_v38, 2  ;;  %vm2077_vm13 = vcmp.gt.f32.partialorder %v2070_v44, 0.0 }
 0x49f   : > { %2141 = vst.msk [vmem:[#allocation2 - $0x2] sm:$0x4] %vm434_vm9, %v5317_v41 }
 0x4a0   : > { %v3869_v18 = vpop.eup %3868  ;;  %v2094_v46 = vmul.f32 1.442695, %v2084_v45 }
 0x4a1   : > { %v3444_v47 = vadd.f32 -1.0, %v3869_v18  ;;  %v2046_v7 = vpop.f32.mrf.mxu2 }
 0x4a2   : > { %3870 = vpow2.f32 %v2094_v46  ;;  %v2059_v48 = vadd.f32 %v2046_v7, %v4754_v42  ;;  %v2161_v42 = vrot.slane %v5328_v38, 1 }
 0x4a3   : > { %v5331_v6 = vsel %vm2076_vm1, %v2069_v53, %v3444_v47  ;;  %v5333_v57 = vld [vmem:[#allocation2 + $0x10] sm:$0xff] }
 0x4a4   : > { %2118 = vst.msk [vmem:[#allocation2 + $0x1a] sm:$0xff] %vm421_vm2, %v5331_v6  ;;  %v2071_v3 = vadd.f32 %v5290_v28, %v2059_v48  ;;  %v2232_v23 = vrot.slane %v5333_v57, 3  ;;  %v2197_v43 = vrot.slane %v5333_v57, 2  ;;  %v2163_v37 = vrot.slane %v5333_v57, 1 }
 0x4a6   : > { %v2085_v22 = vmin.f32 %v2071_v3, 0.0  ;;  %v5344_v29 = vld [vmem:[#allocation2] sm:$0xff]  ;;  %v2233_v61 = vsel %vm546_vm12, %v2230_v31, %v2232_v23  ;;  %v2198_v27 = vsel %vm6177_vm0, %v2195_v5, %v2197_v43  ;;  %v2164_v19 = vsel %vm6178_vm14, %v2161_v42, %v2163_v37  ;;  %vm6181_vm14 = vmmov %vm6177_vm0 }
 0x4a7   : > { %v2229_v21 = vrot.slane %v5344_v29, 3  ;;  %v2194_v52 = vrot.slane %v5344_v29, 2  ;;  %v2160_v25 = vrot.slane %v5344_v29, 1  ;;  %vm2078_vm1 = vcmp.gt.f32.partialorder %v2071_v3, 0.0 }
 0x4a8   : > { %v3871_v32 = vpop.eup %3870  ;;  %v2096_v24 = vmul.f32 1.442695, %v2085_v22 }
 0x4a9   : > { %v3445_v40 = vadd.f32 -1.0, %v3871_v32  ;;  %v2231_v58 = vsel %vm546_vm12, %v2229_v21, %v2230_v31  ;;  %v2196_v11 = vsel %vm6179_vm15, %v2194_v52, %v2195_v5  ;;  %v2162_v59 = vsel %vm6180_vm11, %v2160_v25, %v2161_v42  ;;  %v2049_v60 = vpop.f32.mrf.mxu2  ;;  %vm6183_vm15 = vmmov %vm6180_vm11 }
 0x4aa   : > { %3872 = vpow2.f32 %v2096_v24  ;;  %v3764_v0 = vpack.i.bf16 %v2233_v61, %v2231_v58  ;;  %v3759_v26 = vpack.i.bf16 %v2198_v27, %v2196_v11  ;;  %v3754_v1 = vpack.i.bf16 %v2164_v19, %v2162_v59 }
 0x4ab   : > { %v5355_v2 = vsel %vm2077_vm13, %v2070_v44, %v3445_v40  ;;  %v2060_v8 = vadd.f32 %v2049_v60, %v4776_v62  ;;  %v5362_v34 = vld [vmem:[#allocation2 + $0x18] sm:$0xff]  ;;  %vm6182_vm13 = vmmov %vm6180_vm11 }
 0x4ac   : > { %2119 = vst.msk [vmem:[#allocation2 + $0x22] sm:$0xff] %vm421_vm2, %v5355_v2  ;;  %3765 = vrot.lane.b32.xlu0 %v3764_v0, %s3915_s20  ;;  %3760 = vrot.lane.b32.xlu2 %v3759_v26, %s3917_s22  ;;  %v2234_v35 = vrot.slane %v5362_v34, 3  ;;  %v2199_v15 = vrot.slane %v5362_v34, 2  ;;  %v2165_v16 = vrot.slane %v5362_v34, 1  ;;  %v3480_v0 = vld [vmem:[%s6131_s3 + $0x6f8] sm:$0xff]  ;;  %v3479_v26 = vld [vmem:[%s6131_s3 + $0x6f0] sm:$0xff] }
 0x4ad   : > { %3755 = vrot.lane.b32.xlu1 %v3754_v1, %s3916_s21  ;;  %v2072_v49 = vadd.f32 %v5290_v28, %v2060_v8  ;;  %v3496_v1 = vld [vmem:[%s6131_s3 + $0x778] sm:$0xff]  ;;  %2375 = vmatpush.msra.mxu3 %v3480_v0  ;;  %v3470_v0 = vld [vmem:[%s6131_s3 + $0x6a8] sm:$0xff] }
 0x4ae   : > { %v2235_v30 = vsel %vm546_vm12, %v2232_v23, %v2234_v35  ;;  %v2200_v53 = vsel %vm6177_vm0, %v2197_v43, %v2199_v15  ;;  %v2166_v63 = vsel %vm6182_vm13, %v2163_v37, %v2165_v16  ;;  %2475 = vmatpush.msra.mxu1 %v3496_v1  ;;  %v3512_v1 = vld [vmem:[%s6131_s3 + $0x7f8] sm:$0xff] }
 0x4af   : > { %v2086_v10 = vmin.f32 %v2072_v49, 0.0  ;;  %vm2079_vm11 = vcmp.gt.f32.partialorder %v2072_v49, 0.0  ;;  %2376 = vmatpush.msra.mxu3 %v3479_v26  ;;  %v3485_v26 = vld [vmem:[%s6131_s3 + $0x720] sm:$0xff]  ;;  %3590 = vmatpush.msra.mxu2 %v3512_v1 }
 0x4b0   : > { %v3873_v12 = vpop.eup %3872 }
 0x4b1   : > { %v3446_v13 = vadd.f32 -1.0, %v3873_v12  ;;  %v2098_v14 = vmul.f32 1.442695, %v2086_v10  ;;  %v2052_v62 = vpop.f32.mrf.mxu2  ;;  %v3464_v12 = vld [vmem:[%s6131_s3 + $0x678] sm:$0xff] }
 0x4b2   : > { %v2061_v51 = vadd.f32 %v2052_v62, %v4793_v56  ;;  %2413 = vmatpush.msra.mxu0 %v3464_v12  ;;  %v3494_v62 = vld [vmem:[%s6131_s3 + $0x768] sm:$0xff]  ;;  %v3469_v12 = vld [vmem:[%s6131_s3 + $0x6a0] sm:$0xff] }
 0x4b3   : > { %v5370_v17 = vsel %vm2078_vm1, %v2071_v3, %v3446_v13  ;;  %3874 = vpow2.f32 %v2098_v14  ;;  %v5373_v33 = vld [vmem:[#allocation2 + $0x20] sm:$0xff]  ;;  %vm6184_vm1 = vmmov %vm6177_vm0  ;;  %v3495_v13 = vld [vmem:[%s6131_s3 + $0x770] sm:$0xff] }
 0x4b4   : > { %2120 = vst.msk [vmem:[#allocation2 + $0x2a] sm:$0xff] %vm421_vm2, %v5370_v17  ;;  %2248 = vrot.lane.b32.xlu0 %v2235_v30, %s3915_s20  ;;  %v2073_v55 = vadd.f32 %v5290_v28, %v2061_v51  ;;  %v2201_v4 = vrot.slane %v5373_v33, 2  ;;  %v2167_v56 = vrot.slane %v5373_v33, 1  ;;  %v2236_v7 = vrot.slane %v5373_v33, 3  ;;  %v3477_v14 = vld [vmem:[%s6131_s3 + $0x6e0] sm:$0xff]  ;;  %2476 = vmatpush.msra.mxu1 %v3495_v13 }
 0x4b6   : > { %v2087_v50 = vmin.f32 %v2073_v55, 0.0  ;;  %v2202_v39 = vsel %vm6181_vm14, %v2199_v15, %v2201_v4  ;;  %v2168_v54 = vsel %vm6183_vm15, %v2165_v16, %v2167_v56  ;;  %v2237_v5 = vsel %vm546_vm12, %v2234_v35, %v2236_v7  ;;  %v3478_v35 = vld [vmem:[%s6131_s3 + $0x6e8] sm:$0xff]  ;;  %v3463_v15 = vld [vmem:[%s6131_s3 + $0x670] sm:$0xff]  ;;  %2477 = vmatpush.msra.mxu1 %v3494_v62 }
 0x4b7   : > { %v3774_v9 = vpack.i.bf16 %v2202_v39, %v2200_v53  ;;  %v3769_v36 = vpack.i.bf16 %v2168_v54, %v2166_v63  ;;  %2377 = vmatpush.msra.mxu3 %v3478_v35  ;;  %2414 = vmatpush.msra.mxu0 %v3463_v15  ;;  %v3462_v53 = vld [vmem:[%s6131_s3 + $0x668] sm:$0xff]  ;;  %v3484_v35 = vld [vmem:[%s6131_s3 + $0x718] sm:$0xff]  ;;  %v3511_v62 = vld [vmem:[%s6131_s3 + $0x7f0] sm:$0xff]  ;;  %vm6195_vm15 = vcmask 523264  }
 0x4b8   : > { %v2100_v44 = vmul.f32 1.442695, %v2087_v50  ;;  %v3493_v50 = vld [vmem:[%s6131_s3 + $0x760] sm:$0xff]  ;;  %3591 = vmatpush.msra.mxu2 %v3511_v62  ;;  %v3451_v15 = vld [vmem:[%s6131_s3 + $0x610] sm:$0xff] }
 0x4b9   : > { %v3875_v45 = vpop.eup %3874  ;;  %3775 = vrot.lane.b32.xlu2 %v3774_v9, %s3917_s22  ;;  %3770 = vrot.lane.b32.xlu1 %v3769_v36, %s3916_s21  ;;  %v3475_v36 = vld [vmem:[%s6131_s3 + $0x6d0] sm:$0xff] }
 0x4ba   : > { %v3447_v28 = vadd.f32 -1.0, %v3875_v45  ;;  %3876 = vpow2.f32 %v2100_v44  ;;  %2378 = vmatpush.msra.mxu3 %v3477_v14  ;;  %2415 = vmatpush.msra.mxu0 %v3462_v53  ;;  %v3492_v44 = vld [vmem:[%s6131_s3 + $0x758] sm:$0xff]  ;;  %v3461_v45 = vld [vmem:[%s6131_s3 + $0x660] sm:$0xff]  ;;  %v3467_v53 = vld [vmem:[%s6131_s3 + $0x690] sm:$0xff] }
 0x4bb   : > { %v5387_v18 = vld [vmem:[#allocation2 + $0x28] sm:$0xff]  ;;  %2478 = vmatpush.msra.mxu1 %v3493_v50  ;;  %v3452_v14 = vld [vmem:[%s6131_s3 + $0x618] sm:$0xff]  ;;  %v3509_v50 = vld [vmem:[%s6131_s3 + $0x7e0] sm:$0xff] }
 0x4bc   : > { %v5389_v46 = vsel %vm2079_vm11, %v2072_v49, %v3447_v28  ;;  %v2203_v47 = vrot.slane %v5387_v18, 2  ;;  %v2169_v43 = vrot.slane %v5387_v18, 1  ;;  %v2238_v42 = vrot.slane %v5387_v18, 3  ;;  %v3474_v28 = vld [vmem:[%s6131_s3 + $0x6c8] sm:$0xff]  ;;  %2416 = vmatpush.msra.mxu0 %v3461_v45  ;;  %vm6196_vm11 = vmmov %vm6195_vm15 }
 0x4bd   : > { %2121 = vst.msk [vmem:[#allocation2 + $0x32] sm:$0xff] %vm421_vm2, %v5389_v46  ;;  %2479 = vmatpush.msra.mxu1 %v3492_v44  ;;  %v3507_v44 = vld [vmem:[%s6131_s3 + $0x7d0] sm:$0xff]  ;;  %v3506_v45 = vld [vmem:[%s6131_s3 + $0x7c8] sm:$0xff] }
 0x4be   : > { %2134 = vst.msk [vmem:[#allocation2 + $0x3e] sm:$0x80] %vm448_vm7, %v5389_v46  ;;  %v2204_v48 = vsel %vm6184_vm1, %v2201_v4, %v2203_v47  ;;  %vm2080_vm7 = vcmp.gt.f32.partialorder %v2073_v55, 0.0  ;;  %v2239_v25 = vsel %vm546_vm12, %v2236_v7, %v2238_v42 }
 0x4bf   : > { %2136 = vst.msk [vmem:[#allocation2 + $0x40] sm:$0x40] %vm446_vm6, %v5389_v46  ;;  %2215 = vrot.lane.b32.xlu0 %v2204_v48, %s3917_s22  ;;  %vm6185_vm6 = vcmask 259072   ;;  %v3460_v48 = vld [vmem:[%s6131_s3 + $0x658] sm:$0xff] }
 0x4c0   : > { %v3877_v31 = vpop.eup %3876  ;;  %2138 = vst.msk [vmem:[#allocation2 + $0x42] sm:$0x20] %vm442_vm5, %v5389_v46  ;;  %vm6186_vm5 = vmmov %vm6182_vm13  ;;  %2417 = vmatpush.msra.mxu0 %v3460_v48  ;;  %v3503_v48 = vld [vmem:[%s6131_s3 + $0x7b0] sm:$0xff] }
 0x4c1   : > { %2140 = vst.msk [vmem:[#allocation2 + $0x44] sm:$0x10] %vm432_vm4, %v5389_v46  ;;  %v3448_v3 = vadd.f32 -1.0, %v3877_v31  ;;  %2250 = vrot.lane.b32.xlu1 %v2237_v5, %s3915_s20  ;;  %v2170_v21 = vsel %vm6186_vm5, %v2167_v56, %v2169_v43  ;;  %vm6187_vm0 = vmmov %vm6186_vm5  ;;  %v3476_v56 = vld [vmem:[%s6131_s3 + $0x6d8] sm:$0xff]  ;;  %v3473_v31 = vld [vmem:[%s6131_s3 + $0x6c0] sm:$0xff] }
 0x4c2   : > { %2142 = vst.msk [vmem:[#allocation2 + $0x46] sm:$0x8] %vm436_vm3, %v5389_v46  ;;  %2379 = vmatpush.msra.mxu3 %v3476_v56  ;;  %v3490_v5 = vld [vmem:[%s6131_s3 + $0x748] sm:$0xff]  ;;  %vm6193_vm14 = vmmov %vm6187_vm0 }
 0x4c3   : > { %v5409_v23 = vsel %vm2080_vm7, %v2073_v55, %v3448_v3  ;;  %v3459_v3 = vld [vmem:[%s6131_s3 + $0x650] sm:$0xff]  ;;  %vm6194_vm13 = vmmov %vm6184_vm1  ;;  %v3482_v56 = vld [vmem:[%s6131_s3 + $0x708] sm:$0xff] }
 0x4c4   : > { %2122 = vst.msk [vmem:[#allocation2 + $0x3a] sm:$0x3f] %vm6185_vm6, %v5409_v23  ;;  %v5414_v37 = vld [vmem:[#allocation2 + $0x30] sm:$0xff]  ;;  %2380 = vmatpush.msra.mxu3 %v3475_v36  ;;  %2418 = vmatpush.msra.mxu0 %v3459_v3  ;;  %v3465_v36 = vld [vmem:[%s6131_s3 + $0x680] sm:$0xff]  ;;  %vm6199_vm6 = vcmask 1043456   ;;  %vm6200_vm5 = vmmov %vm6196_vm11 }
 0x4c5   : > { %2124 = vst.msk [vmem:[#allocation2 + $0x3c] sm:$0x10] %vm432_vm4, %v5409_v23  ;;  %v2240_v22 = vrot.slane %v5414_v37, 3  ;;  %v5421_v61 = vrot.slane %v5414_v37, 1  ;;  %v2205_v58 = vrot.slane %v5414_v37, 2  ;;  %vm6189_vm4 = vmmov %vm6184_vm1  ;;  %v3501_v3 = vld [vmem:[%s6131_s3 + $0x7a0] sm:$0xff] }
 0x4c6   : > { %2126 = vst.msk [vmem:[#allocation2 + $0x3e] sm:$0x8] %vm436_vm3, %v5409_v23  ;;  %vm6188_vm3 = vmmov %vm6187_vm0  ;;  %2381 = vmatpush.msra.mxu3 %v3474_v28  ;;  %v3505_v28 = vld [vmem:[%s6131_s3 + $0x7c0] sm:$0xff] }
 0x4c7   : > { %2128 = vst.msk [vmem:[#allocation2 + $0x40] sm:$0x4] %vm434_vm9, %v5409_v23  ;;  %v2241_v27 = vsel %vm546_vm12, %v2238_v42, %v2240_v22  ;;  %v2172_v52 = vsel %vm6187_vm0, %v2169_v43, %v5421_v61  ;;  %v2206_v60 = vsel %vm6189_vm4, %v2203_v47, %v2205_v58  ;;  %vm6191_vm9 = vmmov %vm6187_vm0  ;;  %v3491_v47 = vld [vmem:[%s6131_s3 + $0x750] sm:$0xff]  ;;  %v3472_v43 = vld [vmem:[%s6131_s3 + $0x6b8] sm:$0xff] }
 0x4c8   : > { %2130 = vst.msk [vmem:[#allocation2 + $0x42] sm:$0x2] %vm430_vm8, %v5409_v23  ;;  %2254 = vrot.lane.b32.xlu0 %v2241_v27, %s3915_s20  ;;  %v3779_v19 = vpack.i.bf16 %v2172_v52, %v2170_v21  ;;  %vm6190_vm8 = vmmov %vm6184_vm1  ;;  %2480 = vmatpush.msra.mxu1 %v3491_v47  ;;  %v3489_v42 = vld [vmem:[%s6131_s3 + $0x740] sm:$0xff]  ;;  %v3488_v21 = vld [vmem:[%s6131_s3 + $0x738] sm:$0xff] }
 0x4c9   : > { %2132 = vst.msk [vmem:[#allocation2 + $0x44] sm:$0x1] %vm444_vm10, %v5409_v23  ;;  %2252 = vrot.lane.b32.xlu1 %v2239_v25, %s3915_s20  ;;  %v5486_v16 = vld [vmem:[#allocation2 + $0x48] sm:$0x1f]  ;;  %vm6192_vm10 = vmmov %vm6184_vm1  ;;  %2382 = vmatpush.msra.mxu3 %v3473_v31  ;;  %v3457_v52 = vld [vmem:[%s6131_s3 + $0x640] sm:$0xff]  ;;  %vm6197_vm1 = vcmask 785408  }
 0x4ca   : > { %3780 = vrot.lane.b32.xlu2 %v3779_v19, %s3916_s21  ;;  %v2616_v4 = vrot.slane %v5486_v16, 3  ;;  %2481 = vmatpush.msra.mxu1 %v3490_v5  ;;  %v2684_v27 = vrot.slane %v5486_v16, 1  ;;  %v3504_v47 = vld [vmem:[%s6131_s3 + $0x7b8] sm:$0xff]  ;;  %v3527_v31 = vld [vmem:[%s6131_s3 + $0x870] sm:$0xff]  ;;  %v3502_v5 = vld [vmem:[%s6131_s3 + $0x7a8] sm:$0xff] }
 0x4cb   : > { %v5439_v32 = vld [vmem:[#allocation2 + $0x38] sm:$0xff]  ;;  %2383 = vmatpush.msra.mxu3 %v3472_v43  ;;  %vm6198_vm7 = vmmov %vm6197_vm1 }
 0x4cc   : > { %v2242_v24 = vrot.slane %v5439_v32, 3  ;;  %v2303_v40 = vrot.slane %v5439_v32, 1  ;;  %v2311_v8 = vrot.slane %v5439_v32, 2  ;;  %2482 = vmatpush.msra.mxu1 %v3489_v42  ;;  %v3500_v43 = vld [vmem:[%s6131_s3 + $0x798] sm:$0xff]  ;;  %v3526_v42 = vld [vmem:[%s6131_s3 + $0x868] sm:$0xff]  ;;  %vm6201_vm0 = vmmov %vm6197_vm1 }
 0x4cd   : > { %vm6203_vm4 = vmmov %vm6199_vm6 }
 0x4ce   : > { %v2243_v11 = vsel %vm546_vm12, %v2240_v22, %v2242_v24  ;;  %v2304_v59 = vsel %vm6188_vm3, %v5421_v61, %v2303_v40  ;;  %v2312_v49 = vsel %vm6190_vm8, %v2205_v58, %v2311_v8  ;;  %2483 = vmatpush.msra.mxu1 %v3488_v21  ;;  %v3525_v21 = vld [vmem:[%s6131_s3 + $0x860] sm:$0xff]  ;;  %vm6202_vm3 = vmmov %vm6200_vm5 }
 0x4cf   : > { %vm6204_vm8 = vmmov %vm6201_vm0 }
 0x4d0   : > { %2256 = vrot.lane.b32.xlu0 %v2243_v11, %s3915_s20  ;;  %v5464_v10 = vld [vmem:[#allocation2 + $0x40] sm:$0xff]  ;;  %v3487_v11 = vld [vmem:[%s6131_s3 + $0x730] sm:$0xff] }
 0x4d1   : > { %2305 = vrot.lane.b32.xlu1 %v2304_v59, %s3916_s21  ;;  %v2452_v51 = vrot.slane %v5464_v10, 3  ;;  %v2520_v55 = vrot.slane %v5464_v10, 1  ;;  %v2528_v7 = vrot.slane %v5464_v10, 2  ;;  %2484 = vmatpush.msra.mxu1 %v3487_v11  ;;  %v3454_v59 = vld [vmem:[%s6131_s3 + $0x628] sm:$0xff] }
 0x4d2   : > { %2217 = vrot.lane.b32.xlu2 %v2206_v60, %s3917_s22  ;;  %v3486_v60 = vld [vmem:[%s6131_s3 + $0x728] sm:$0xff] }
 0x4d3   : > { %v2453_v30 = vsel %vm546_vm12, %v2242_v24, %v2452_v51  ;;  %v2617_v39 = vsel %vm546_vm12, %v2452_v51, %v2616_v4  ;;  %v2521_v63 = vsel %vm6191_vm9, %v2303_v40, %v2520_v55  ;;  %v2529_v22 = vsel %vm6192_vm10, %v2311_v8, %v2528_v7  ;;  %2485 = vmatpush.msra.mxu1 %v3486_v60  ;;  %vm6205_vm9 = vmmov %vm6203_vm4 }
 0x4d4   : > { %v3794_v54 = vpack.i.bf16 %v2617_v39, %v2452_v51  ;;  %v3784_v9 = vpack.i.bf16 %v2520_v55, %v2521_v63  ;;  %v3789_v25 = vpack.i.bf16 %v2528_v7, %v2529_v22  ;;  %v2685_v19 = vsel %vm6193_vm14, %v2520_v55, %v2684_v27  ;;  %v3483_v51 = vld [vmem:[%s6131_s3 + $0x710] sm:$0xff]  ;;  %v3510_v55 = vld [vmem:[%s6131_s3 + $0x7e8] sm:$0xff]  ;;  %v3449_v39 = vld [vmem:[%s6131_s3 + $0x600] sm:$0xff] }
 0x4d5   : > { %2486 = vmatpush.msra.mxu1 %v3485_v26  ;;  %3592 = vmatpush.msra.mxu2 %v3510_v55  ;;  %v3481_v63 = vld [vmem:[%s6131_s3 + $0x700] sm:$0xff]  ;;  %vm6206_vm10 = vmmov %vm6202_vm3 }
 0x4d6   : > { %vm6207_vm14 = vmmov %vm6201_vm0 }
 0x4d7   : > { %2487 = vmatpush.msra.mxu1 %v3484_v35  ;;  %3593 = vmatpush.msra.mxu2 %v3509_v50 }
 0x4d8   : > { %2319 = vrot.lane.b32.xlu0 %v2242_v24, %s3915_s20  ;;  %v3456_v24 = vld [vmem:[%s6131_s3 + $0x638] sm:$0xff] }
 0x4d9   : > { %2307 = vrot.lane.b32.xlu1 %v2303_v40, %s3916_s21  ;;  %v3471_v40 = vld [vmem:[%s6131_s3 + $0x6b0] sm:$0xff]  ;;  %2488 = vmatpush.msra.mxu1 %v3483_v51 }
 0x4da   : > { %2313 = vrot.lane.b32.xlu2 %v2312_v49, %s3917_s22  ;;  %2384 = vmatpush.msra.mxu3 %v3471_v40  ;;  %v3453_v49 = vld [vmem:[%s6131_s3 + $0x620] sm:$0xff]  ;;  %v3542_v40 = vld [vmem:[%s6131_s3 + $0x8e8] sm:$0xff] }
 0x4db   : > { %2489 = vmatpush.msra.mxu1 %v3482_v56  ;;  %v3521_v56 = vld [vmem:[%s6131_s3 + $0x840] sm:$0xff] }
 0x4dc   : > { %2385 = vmatpush.msra.mxu3 %v3470_v0 }
 0x4dd   : > { %2490 = vmatpush.msra.mxu1 %v3481_v63  ;;  %v3520_v63 = vld [vmem:[%s6131_s3 + $0x838] sm:$0xff] }
 0x4de   : > { %2386 = vmatpush.msra.mxu3 %v3469_v12 }
 0x4df   : > { %2570 = vmatpush.msrb.mxu1 %v3512_v1 }
 0x4e0   : > { %2219 = vrot.lane.b32.xlu0 %v2205_v58, %s3917_s22  ;;  %v3455_v58 = vld [vmem:[%s6131_s3 + $0x630] sm:$0xff] }
 0x4e1   : > { %2454 = vrot.lane.b32.xlu1 %v2453_v30, %s3915_s20  ;;  %v3468_v30 = vld [vmem:[%s6131_s3 + $0x698] sm:$0xff]  ;;  %2571 = vmatpush.msrb.mxu1 %v3511_v62 }
 0x4e2   : > { %2315 = vrot.lane.b32.xlu2 %v2311_v8, %s3917_s22  ;;  %v2692_v8 = vrot.slane %v5486_v16, 2  ;;  %2387 = vmatpush.msra.mxu3 %v3468_v30 }
 0x4e3   : > { %2572 = vmatpush.msrb.mxu1 %v3510_v55 }
 0x4e4   : > { %v2693_v13 = vsel %vm6194_vm13, %v2528_v7, %v2692_v8  ;;  %2388 = vmatpush.msra.mxu3 %v3467_v53  ;;  %v3528_v7 = vld [vmem:[%s6131_s3 + $0x878] sm:$0xff]  ;;  %v3539_v53 = vld [vmem:[%s6131_s3 + $0x8d0] sm:$0xff]  ;;  %vm6208_vm13 = vmmov %vm6203_vm4 }
 0x4e5   : > { %2573 = vmatpush.msrb.mxu1 %v3509_v50 }
 0x4e8   : > { %3795 = vrot.lane.b32.xlu0 %v3794_v54, %s3915_s20  ;;  %v3466_v54 = vld [vmem:[%s6131_s3 + $0x688] sm:$0xff] }
 0x4e9   : > { %3785 = vrot.lane.b32.xlu1 %v3784_v9, %s3916_s21  ;;  %v3508_v9 = vld [vmem:[%s6131_s3 + $0x7d8] sm:$0xff]  ;;  %2389 = vmatpush.msra.mxu3 %v3466_v54 }
 0x4ea   : > { %2185 = vrot.lane.b32.xlu2 %v5421_v61, %s3916_s21  ;;  %v3458_v61 = vld [vmem:[%s6131_s3 + $0x648] sm:$0xff]  ;;  %3594 = vmatpush.msra.mxu2 %v3508_v9 }
 0x4eb   : > { %2419 = vmatpush.msra.mxu0 %v3458_v61  ;;  %2390 = vmatpush.msra.mxu3 %v3465_v36  ;;  %v3544_v61 = vld [vmem:[%s6131_s3 + $0x8f8] sm:$0xff] }
 0x4ec   : > { %3595 = vmatpush.msra.mxu2 %v3507_v44  ;;  %2574 = vmatpush.msrb.mxu1 %v3508_v9 }
 0x4ed   : > { %2420 = vmatpush.msra.mxu0 %v3457_v52  ;;  %2639 = vmatpush.msrb.mxu3 %v3528_v7  ;;  %v3543_v52 = vld [vmem:[%s6131_s3 + $0x8f0] sm:$0xff] }
 0x4ee   : > { %3596 = vmatpush.msra.mxu2 %v3506_v45  ;;  %2575 = vmatpush.msrb.mxu1 %v3507_v44  ;;  %v3519_v7 = vld [vmem:[%s6131_s3 + $0x830] sm:$0xff] }
 0x4ef   : > { %2421 = vmatpush.msra.mxu0 %v3456_v24  ;;  %2640 = vmatpush.msrb.mxu3 %v3527_v31  ;;  %v3524_v24 = vld [vmem:[%s6131_s3 + $0x858] sm:$0xff]  ;;  %v3518_v31 = vld [vmem:[%s6131_s3 + $0x828] sm:$0xff] }
 0x4f0   : > { %2688 = vrot.lane.b32.xlu0 %v2684_v27, %s3916_s21  ;;  %3597 = vmatpush.msra.mxu2 %v3505_v28  ;;  %v3499_v27 = vld [vmem:[%s6131_s3 + $0x790] sm:$0xff] }
 0x4f1   : > { %2686 = vrot.lane.b32.xlu1 %v2685_v19, %s3916_s21  ;;  %2422 = vmatpush.msra.mxu0 %v3455_v58  ;;  %v3497_v19 = vld [vmem:[%s6131_s3 + $0x780] sm:$0xff]  ;;  %v3523_v58 = vld [vmem:[%s6131_s3 + $0x850] sm:$0xff] }
 0x4f2   : > { %3790 = vrot.lane.b32.xlu2 %v3789_v25, %s3917_s22  ;;  %3598 = vmatpush.msra.mxu2 %v3504_v47  ;;  %v3498_v25 = vld [vmem:[%s6131_s3 + $0x788] sm:$0xff] }
 0x4f3   : > { %2423 = vmatpush.msra.mxu0 %v3454_v59  ;;  %2576 = vmatpush.msrb.mxu1 %v3506_v45  ;;  %v3541_v59 = vld [vmem:[%s6131_s3 + $0x8e0] sm:$0xff] }
 0x4f4   : > { %3599 = vmatpush.msra.mxu2 %v3503_v48  ;;  %2641 = vmatpush.msrb.mxu3 %v3526_v42 }
 0x4f5   : > { %2424 = vmatpush.msra.mxu0 %v3453_v49  ;;  %2577 = vmatpush.msrb.mxu1 %v3505_v28  ;;  %v3538_v28 = vld [vmem:[%s6131_s3 + $0x8c8] sm:$0xff] }
 0x4f6   : > { %3600 = vmatpush.msra.mxu2 %v3502_v5  ;;  %2642 = vmatpush.msrb.mxu3 %v3525_v21  ;;  %v3535_v21 = vld [vmem:[%s6131_s3 + $0x8b0] sm:$0xff] }
 0x4f7   : > { %2425 = vmatpush.msra.mxu0 %v3452_v14  ;;  %2578 = vmatpush.msrb.mxu1 %v3504_v47  ;;  %v3537_v47 = vld [vmem:[%s6131_s3 + $0x8c0] sm:$0xff] }
 0x4f8   : > { %3601 = vmatpush.msra.mxu2 %v3501_v3  ;;  %2643 = vmatpush.msrb.mxu3 %v3524_v24  ;;  %v3517_v24 = vld [vmem:[%s6131_s3 + $0x820] sm:$0xff] }
 0x4f9   : > { %2696 = vrot.lane.b32.xlu1 %v2692_v8, %s3917_s22  ;;  %2426 = vmatpush.msra.mxu0 %v3451_v15 }
 0x4fa   : > { %2694 = vrot.lane.b32.xlu2 %v2693_v13, %s3917_s22  ;;  %3602 = vmatpush.msra.mxu2 %v3500_v43 }
 0x4fb   : > { %2579 = vmatpush.msrb.mxu1 %v3503_v48  ;;  %2644 = vmatpush.msrb.mxu3 %v3523_v58 }
 0x4fc   : > { %3603 = vmatpush.msra.mxu2 %v3499_v27 }
 0x4fd   : > { %2580 = vmatpush.msrb.mxu1 %v3502_v5 }
 0x4fe   : > { %3604 = vmatpush.msra.mxu2 %v3498_v25 }
 0x4ff   : > { %2581 = vmatpush.msrb.mxu1 %v3501_v3  ;;  %v3536_v3 = vld [vmem:[%s6131_s3 + $0x8b8] sm:$0xff] }
 0x500   : > { %3605 = vmatpush.msra.mxu2 %v3497_v19 }
 0x501   : > { %2582 = vmatpush.msrb.mxu1 %v3500_v43 }
 0x502   : > { %2700 = vrot.lane.b32.xlu2 %v2616_v4, %s3915_s20  ;;  %v3450_v4 = vld [vmem:[%s6131_s3 + $0x608] sm:$0xff] }
 0x503   : > { %2427 = vmatpush.msra.mxu0 %v3450_v4  ;;  %2583 = vmatpush.msrb.mxu1 %v3499_v27 }
 0x505   : > { %2428 = vmatpush.msra.mxu0 %v3449_v39  ;;  %2584 = vmatpush.msrb.mxu1 %v3498_v25 }
 0x506   : > { %v3761_v22 = vpop.permute.xlu2 %3760 }
 0x507   : > { %2734 = vmatpush.msrb.mxu0 %v3544_v61  ;;  %v3763_v8 = vunpack.i.h.bf16 %v3761_v22  ;;  %v3762_v49 = vunpack.i.l.bf16 %v3761_v22  ;;  %2585 = vmatpush.msrb.mxu1 %v3497_v19  ;;  %v3534_v19 = vld [vmem:[%s6131_s3 + $0x8a8] sm:$0xff] }
 0x509   : > { %2735 = vmatpush.msrb.mxu0 %v3543_v52 }
 0x50b   : > { %2736 = vmatpush.msrb.mxu0 %v3542_v40 }
 0x50d   : > { %2737 = vmatpush.msrb.mxu0 %v3541_v59  ;;  %v3516_v59 = vld [vmem:[%s6131_s3 + $0x818] sm:$0xff] }
 0x513   : > { %v5708_v11 = vpop.permute.xlu2 %3775 }
 0x514   : > { %v3777_v45 = vunpack.i.l.bf16 %v5708_v11 }
 0x51e   : > { %v3766_v60 = vpop.permute.xlu0 %3765 }
 0x51f   : > { %v3756_v0 = vpop.permute.xlu1 %3755  ;;  %v3768_v35 = vunpack.i.h.bf16 %v3766_v60  ;;  %v3767_v12 = vunpack.i.l.bf16 %v3766_v60 }
 0x520   : > { %v3758_v26 = vunpack.i.h.bf16 %v3756_v0  ;;  %v3757_v1 = vunpack.i.l.bf16 %v3756_v0 }
 0x522   : > { %v2266_v13 = vsel %vm421_vm2, %v5328_v38, %v3758_v26  ;;  %v2265_v14 = vsel %vm421_vm2, %v5344_v29, %v3757_v1  ;;  %v3522_v38 = vld [vmem:[%s6131_s3 + $0x848] sm:$0xff]  ;;  %v3540_v29 = vld [vmem:[%s6131_s3 + $0x8d8] sm:$0xff]  ;;  %v3531_v1 = vld [vmem:[%s6131_s3 + $0x890] sm:$0xff] }
 0x523   : > { %v2272_v62 = vsel %vm6195_vm15, %v2265_v14, %v3762_v49  ;;  %v2273_v15 = vsel %vm6196_vm11, %v2266_v13, %v3763_v8  ;;  %2645 = vmatpush.msrb.mxu3 %v3522_v38  ;;  %2738 = vmatpush.msrb.mxu0 %v3540_v29  ;;  %v3532_v26 = vld [vmem:[%s6131_s3 + $0x898] sm:$0xff]  ;;  %v3530_v14 = vld [vmem:[%s6131_s3 + $0x888] sm:$0xff]  ;;  %vm6209_vm15 = vmmov %vm6202_vm3 }
 0x524   : > { %v2279_v51 = vsel %vm6197_vm1, %v2272_v62, %v3767_v12  ;;  %v2280_v30 = vsel %vm6198_vm7, %v2273_v15, %v3768_v35  ;;  %v5733_v50 = vpop.permute.xlu2 %3780  ;;  %v3515_v62 = vld [vmem:[%s6131_s3 + $0x810] sm:$0xff]  ;;  %vm6210_vm11 = vmmov %vm6201_vm0 }
 0x525   : > { %v2353_v55 = vrot.slane %v2279_v51, 4  ;;  %2429 = vmatmul.f32.vlgmr.msra.gmra.mxu0 %v2279_v51  ;;  %v2354_v4 = vrot.slane %v2280_v30, 4  ;;  %2491 = vmatmul.f32.vlgmr.msra.gmra.mxu1 %v2280_v30  ;;  %v3782_v60 = vunpack.i.l.bf16 %v5733_v50  ;;  %v3783_v15 = vunpack.i.h.bf16 %v5733_v50  ;;  %vm6211_vm1 = vmmov %vm6202_vm3 }
 0x526   : > { %2739 = vmatpush.msrb.mxu0 %v3539_v53  ;;  %v2249_v54 = vpop.permute.xlu0 %2248  ;;  %2646 = vmatpush.msrb.mxu3 %v3521_v56  ;;  %v3513_v56 = vld [vmem:[%s6131_s3 + $0x800] sm:$0xff]  ;;  %vm6212_vm7 = vmmov %vm6203_vm4 }
 0x527   : > { %v2355_v39 = vsel %vm6199_vm6, %v2353_v55, %v2354_v4  ;;  %v2269_v8 = vsel %vm421_vm2, %v5373_v33, %v3782_v60  ;;  %v2270_v38 = vsel %vm421_vm2, %v5387_v18, %v3783_v15  ;;  %vm6213_vm6 = vmmov %vm6201_vm0 }
 0x528   : > { %2391 = vmatmul.f32.vlgmr.msra.gmra.mxu3 %v2355_v39  ;;  %2740 = vmatpush.msrb.mxu0 %v3538_v28 }
 0x529   : > { %2647 = vmatpush.msrb.mxu3 %v3520_v63 }
 0x52a   : > { %2741 = vmatpush.msrb.mxu0 %v3537_v47 }
 0x52b   : > { %v3771_v9 = vpop.permute.xlu1 %3770  ;;  %2648 = vmatpush.msrb.mxu3 %v3519_v7 }
 0x52c   : > { %v3773_v36 = vunpack.i.h.bf16 %v3771_v9  ;;  %v3772_v44 = vunpack.i.l.bf16 %v3771_v9  ;;  %v2218_v22 = vpop.permute.xlu2 %2217  ;;  %2742 = vmatpush.msrb.mxu0 %v3536_v3 }
 0x52d   : > { %2432 = vmatmul.f32.gmra.mxu0 %v2280_v30  ;;  %2649 = vmatpush.msrb.mxu3 %v3518_v31  ;;  %v3529_v30 = vld [vmem:[%s6131_s3 + $0x880] sm:$0xff]  ;;  %v2277_v29 = vsel %vm6209_vm15, %v2270_v38, %v2218_v22 }
 0x52e   : > { %v2267_v48 = vsel %vm421_vm2, %v5333_v57, %v3772_v44  ;;  %v2268_v42 = vsel %vm421_vm2, %v5362_v34, %v3773_v36  ;;  %v3778_v57 = vunpack.i.h.bf16 %v5708_v11  ;;  %2743 = vmatpush.msrb.mxu0 %v3535_v21  ;;  %v3533_v11 = vld [vmem:[%s6131_s3 + $0x8a0] sm:$0xff] }
 0x52f   : > { %v2274_v5 = vsel %vm6200_vm5, %v2267_v48, %v3777_v45  ;;  %2650 = vmatpush.msrb.mxu3 %v3517_v24  ;;  %vm6214_vm5 = vmmov %vm6203_vm4 }
 0x530   : > { %v5759_v43 = vsel %vm6201_vm0, %v2274_v5, %v2249_v54  ;;  %v2275_v25 = vsel %vm6202_vm3, %v2268_v42, %v3778_v57  ;;  %2744 = vmatpush.msrb.mxu0 %v3534_v19  ;;  %vm6215_vm0 = vmmov %vm6211_vm1 }
 0x531   : > { %2494 = vmatmul.f32.gmra.mxu1 %v5759_v43  ;;  %v2216_v61 = vpop.permute.xlu0 %2215  ;;  %v2356_v27 = vrot.slane %v5759_v43, 4  ;;  %2651 = vmatpush.msrb.mxu3 %v3516_v59  ;;  %vm6216_vm3 = vmmov %vm6215_vm0 }
 0x532   : > { %2745 = vmatpush.msrb.mxu0 %v3533_v11  ;;  %v2276_v35 = vsel %vm6206_vm10, %v2269_v8, %v2216_v61  ;;  %vm6220_vm10 = vmmov %vm6214_vm5 }
 0x533   : > { %v2251_v52 = vpop.permute.xlu1 %2250  ;;  %v5771_v34 = vsel %vm6203_vm4, %v2354_v4, %v2356_v27  ;;  %2652 = vmatpush.msrb.mxu3 %v3515_v62  ;;  %v3514_v4 = vld [vmem:[%s6131_s3 + $0x808] sm:$0xff]  ;;  %vm6217_vm4 = vmmov %vm6213_vm6 }
 0x534   : > { %v5780_v40 = vsel %vm6204_vm8, %v2275_v25, %v2251_v52  ;;  %2394 = vmatmul.f32.gmra.mxu3 %v5771_v34  ;;  %2746 = vmatpush.msrb.mxu0 %v3532_v26  ;;  %v2314_v12 = vpop.permute.xlu2 %2313  ;;  %vm6218_vm8 = vmmov %vm6217_vm4 }
 0x535   : > { %2435 = vmatmul.f32.gmra.mxu0 %v5759_v43  ;;  %v2358_v58 = vrot.slane %v5780_v40, 4  ;;  %2653 = vmatpush.msrb.mxu3 %v3514_v4  ;;  %vm6223_vm15 = vmmov %vm6215_vm0 }
 0x536   : > { %2747 = vmatpush.msrb.mxu0 %v3531_v1 }
 0x537   : > { %v5793_v0 = vsel %vm6205_vm9, %v2356_v27, %v2358_v58  ;;  %2654 = vmatpush.msrb.mxu3 %v3513_v56  ;;  %vm6219_vm9 = vmmov %vm6217_vm4 }
 0x538   : > { %2589 = vmatmul.f32.vlgmr.msra.gmra.mxu2 %v5793_v0  ;;  %2748 = vmatpush.msrb.mxu0 %v3530_v14 }
 0x539   : > { %2497 = vmatmul.f32.gmra.mxu1 %v5780_v40 }
 0x53a   : > { %v2255_v49 = vpop.permute.xlu0 %2254  ;;  %2749 = vmatpush.msrb.mxu0 %v3529_v30 }
 0x53b   : > { %v2253_v13 = vpop.permute.xlu1 %2252  ;;  %v5837_v53 = vsel %vm6210_vm11, %v2277_v29, %v2255_v49  ;;  %vm6224_vm11 = vmmov %vm6214_vm5 }
 0x53c   : > { %v5814_v51 = vsel %vm6207_vm14, %v2276_v35, %v2253_v13  ;;  %2397 = vmatmul.f32.gmra.mxu3 %v5793_v0  ;;  %v2362_v63 = vrot.slane %v5837_v53, 4  ;;  %v2316_v54 = vpop.permute.xlu2 %2315  ;;  %vm6221_vm14 = vmmov %vm6215_vm0 }
 0x53d   : > { %2438 = vmatmul.f32.gmra.mxu0 %v5780_v40  ;;  %v2360_v33 = vrot.slane %v5814_v51, 4 }
 0x53f   : > { %v5823_v55 = vsel %vm6208_vm13, %v2358_v58, %v2360_v33  ;;  %v2363_v36 = vsel %vm6212_vm7, %v2360_v33, %v2362_v63  ;;  %vm6222_vm13 = vmmov %vm6217_vm4 }
 0x540   : > { %2592 = vmatmul.f32.gmra.mxu2 %v5823_v55  ;;  %vm6226_vm7 = vmmov %vm6214_vm5 }
 0x541   : > { %2500 = vmatmul.f32.gmra.mxu1 %v5814_v51 }
 0x542   : > { %v2257_v50 = vpop.permute.xlu0 %2256 }
 0x543   : > { %v2306_v39 = vpop.permute.xlu1 %2305 }
 0x544   : > { %v2322_v18 = vsel %vm421_vm2, %v5414_v37, %v2306_v39  ;;  %2400 = vmatmul.f32.gmra.mxu3 %v5823_v55  ;;  %v2186_v48 = vpop.permute.xlu2 %2185 }
 0x545   : > { %2441 = vmatmul.f32.gmra.mxu0 %v5814_v51  ;;  %v2324_v9 = vsel %vm6211_vm1, %v2322_v18, %v2314_v12  ;;  %v2271_v3 = vsel %vm421_vm2, %v5414_v37, %v2186_v48  ;;  %vm6225_vm1 = vmmov %vm6217_vm4 }
 0x546   : > { %v5847_v44 = vsel %vm6213_vm6, %v2324_v9, %v2257_v50  ;;  %vm6227_vm6 = vmmov %vm6215_vm0 }
 0x547   : > { %v2364_v47 = vrot.slane %v5847_v44, 4 }
 0x548   : > { %2595 = vmatmul.f32.gmra.mxu2 %v2363_v36 }
 0x549   : > { %2503 = vmatmul.f32.gmra.mxu1 %v5837_v53  ;;  %v2365_v31 = vsel %vm6214_vm5, %v2362_v63, %v2364_v47  ;;  %vm6228_vm5 = vmmov %vm6225_vm1 }
 0x54a   : > { %v2320_v45 = vpop.permute.xlu0 %2319 }
 0x54b   : > { %v2308_v28 = vpop.permute.xlu1 %2307 }
 0x54c   : > { %2403 = vmatmul.f32.gmra.mxu3 %v2363_v36  ;;  %v2323_v7 = vsel %vm421_vm2, %v5439_v32, %v2308_v28  ;;  %v3791_v25 = vpop.permute.xlu2 %3790 }
 0x54d   : > { %2444 = vmatmul.f32.gmra.mxu0 %v5837_v53  ;;  %v2325_v5 = vsel %vm6215_vm0, %v2323_v7, %v2316_v54  ;;  %v3792_v11 = vunpack.i.l.bf16 %v3791_v25  ;;  %v3793_v26 = vunpack.i.h.bf16 %v3791_v25  ;;  %v3555_v25 = vld [vmem:[%s6133_s5 + $0x50] sm:$0xff] }
 0x54e   : > { %v2327_v27 = vsel %vm6218_vm8, %v2325_v5, %v2320_v45 }
 0x54f   : > { %v2366_v21 = vrot.slane %v2327_v27, 4 }
 0x550   : > { %2598 = vmatmul.f32.gmra.mxu2 %v2365_v31 }
 0x551   : > { %2506 = vmatmul.f32.gmra.mxu1 %v5847_v44  ;;  %v2367_v24 = vsel %vm6220_vm10, %v2364_v47, %v2366_v21 }
 0x552   : > { %v2220_v42 = vpop.permute.xlu0 %2219 }
 0x553   : > { %v2278_v57 = vsel %vm6216_vm3, %v2271_v3, %v2220_v42  ;;  %v2455_v22 = vpop.permute.xlu1 %2454  ;;  %vm6229_vm3 = vmmov %vm6226_vm7 }
 0x554   : > { %2406 = vmatmul.f32.gmra.mxu3 %v2365_v31  ;;  %v2285_v61 = vsel %vm6217_vm4, %v2278_v57, %v2257_v50  ;;  %v2457_v52 = vsel %vm6219_vm9, %v2325_v5, %v2455_v22  ;;  %v2695_v33 = vpop.permute.xlu2 %2694  ;;  %vm6230_vm4 = vmmov %vm6225_vm1 }
 0x555   : > { %2447 = vmatmul.f32.gmra.mxu0 %v2285_v61  ;;  %vm6231_vm8 = vmmov %vm6229_vm3 }
 0x556   : > { %vm6232_vm9 = vmmov %vm6225_vm1 }
 0x559   : > { %2509 = vmatmul.f32.gmra.mxu1 %v2457_v52  ;;  %v3556_v52 = vld [vmem:[%s6133_s5 + $0x58] sm:$0xff] }
 0x55a   : > { %v3796_v1 = vpop.permute.xlu0 %3795  ;;  %2871 = vmatpush.msra.mxu1 %v3556_v52 }
 0x55b   : > { %v3786_v19 = vpop.permute.xlu1 %3785  ;;  %v3797_v13 = vunpack.i.l.bf16 %v3796_v1  ;;  %v3798_v30 = vunpack.i.h.bf16 %v3796_v1 }
 0x55c   : > { %v3788_v58 = vunpack.i.h.bf16 %v3786_v19  ;;  %v3787_v37 = vunpack.i.l.bf16 %v3786_v19  ;;  %2409 = vmatmul.f32.gmra.mxu3 %v2367_v24  ;;  %v2701_v56 = vpop.permute.xlu2 %2700  ;;  %2872 = vmatpush.msra.mxu1 %v3555_v25 }
 0x55d   : > { %2750 = vmatmul.f32.vlgmr.msrb.gmra.mxu0 %v5793_v0 }
 0x55e   : > { %v2540_v59 = vsel %vm421_vm2, %v5464_v10, %v3788_v58  ;;  %v2539_v60 = vsel %vm421_vm2, %v5439_v32, %v3787_v37  ;;  %v3554_v58 = vld [vmem:[%s6133_s5 + $0x48] sm:$0xff] }
 0x55f   : > { %v2541_v8 = vsel %vm6221_vm14, %v2539_v60, %v3792_v11  ;;  %v2542_v35 = vsel %vm6223_vm15, %v2540_v59, %v3793_v26  ;;  %2873 = vmatpush.msra.mxu1 %v3554_v58  ;;  %v3553_v11 = vld [vmem:[%s6133_s5 + $0x40] sm:$0xff] }
 0x560   : > { %v2543_v49 = vsel %vm6222_vm13, %v2541_v8, %v2455_v22  ;;  %v2544_v14 = vsel %vm6225_vm1, %v2542_v35, %v3797_v13  ;;  %v2621_v18 = vsel %vm6232_vm9, %v2542_v35, %v3798_v30  ;;  %v5922_v13 = vld [vmem:[%s6132_s4 + $0x2] ss:$0 sm:$0xff] }
 0x561   : > { %2586 = vmatmul.f32.vlgmr.msrb.gmra.mxu1 %v5771_v34  ;;  %v2564_v12 = vrot.slane %v2543_v49, 4  ;;  %v2566_v32 = vrot.slane %v2544_v14, 4 }
 0x562   : > { %v2689_v4 = vpop.permute.xlu0 %2688  ;;  %2874 = vmatpush.msra.mxu1 %v3553_v11 }
 0x563   : > { %v2565_v0 = vsel %vm6224_vm11, %v2364_v47, %v2564_v12  ;;  %v2567_v62 = vsel %vm6226_vm7, %v2564_v12, %v2566_v32  ;;  %v2687_v15 = vpop.permute.xlu1 %2686  ;;  %v2704_v29 = vsel %vm421_vm2, %v5486_v16, %v2689_v4 }
 0x564   : > { %2601 = vmatmul.f32.gmra.mxu2 %v2565_v0  ;;  %2655 = vmatmul.f32.vlgmr.msrb.gmra.mxu3 %v5759_v43  ;;  %v2703_v34 = vsel %vm421_vm2, %v5464_v10, %v2687_v15 }
 0x565   : > { %2753 = vmatmul.f32.gmra.mxu0 %v5823_v55  ;;  %v2705_v43 = vsel %vm6227_vm6, %v2703_v34, %v2695_v33 }
 0x566   : > { %v2707_v55 = vsel %vm6228_vm5, %v2705_v43, %v3798_v30 }
 0x56b   : > { %v2697_v38 = vpop.permute.xlu1 %2696 }
 0x56c   : > { %2604 = vmatmul.f32.gmra.mxu2 %v2567_v62  ;;  %2658 = vmatmul.f32.gmra.mxu3 %v5780_v40  ;;  %v2728_v40 = vrot.slane %v2707_v55, 4 }
 0x56d   : > { %2756 = vmatmul.f32.gmra.mxu0 %v2363_v36 }
 0x56e   : > { %v2729_v10 = vsel %vm6229_vm3, %v2564_v12, %v2728_v40  ;;  %vm6233_vm3 = vcmask 1045504  }
 0x574   : > { %2661 = vmatmul.f32.gmra.mxu3 %v5814_v51  ;;  %v2706_v51 = vsel %vm6215_vm0, %v2704_v29, %v2697_v38 }
 0x575   : > { %2759 = vmatmul.f32.gmra.mxu0 %v2365_v31  ;;  %v2708_v50 = vsel %vm6230_vm4, %v2706_v51, %v2701_v56  ;;  %vm6234_vm4 = vmmov %vm6233_vm3 }
 0x57c   : > { %2664 = vmatmul.f32.gmra.mxu3 %v5837_v53  ;;  %v2730_v53 = vrot.slane %v2708_v50, 4 }
 0x57d   : > { %2762 = vmatmul.f32.gmra.mxu0 %v2565_v0 }
 0x57e   : > { %v2731_v39 = vsel %vm6231_vm8, %v2728_v40, %v2730_v53  ;;  %vm6235_vm8 = vcmask 1046528  }
 0x57f   : > { %vm6236_vm9 = vmmov %vm6235_vm8 }
 0x584   : > { %2667 = vmatmul.f32.gmra.mxu3 %v5847_v44 }
 0x585   : > { %2765 = vmatmul.f32.gmra.mxu0 %v2729_v10 }
 0x58c   : > { %2670 = vmatmul.f32.gmra.mxu3 %v2543_v49 }
 0x58d   : > { %2768 = vmatmul.f32.gmra.mxu0 %v2731_v39 }
 0x594   : > { %2673 = vmatmul.f32.gmra.mxu3 %v2621_v18 }
 0x5a2   : > { %v2430_v63 = vpop.f32.mrf.mxu0  ;;  %v2492_v16 = vpop.f32.mrf.mxu1 }
 0x5aa   : > { %v2433_v54 = vpop.f32.mrf.mxu0 }
 0x5ab   : > { %v2392_v36 = vpop.f32.mrf.mxu3 }
 0x5ac   : > { %v2431_v37 = vadd.f32 %v2430_v63, %v2392_v36 }
 0x5ae   : > { %v2495_v9 = vpop.f32.mrf.mxu1  ;;  %v2513_v26 = vadd.f32 %v2492_v16, %v2431_v37 }
 0x5b2   : > { %v2436_v45 = vpop.f32.mrf.mxu0 }
 0x5b6   : > { %v2498_v44 = vpop.f32.mrf.mxu1 }
 0x5b7   : > { %v2395_v28 = vpop.f32.mrf.mxu3 }
 0x5b8   : > { %v2434_v1 = vadd.f32 %v2433_v54, %v2395_v28 }
 0x5ba   : > { %v2439_v47 = vpop.f32.mrf.mxu0  ;;  %v2514_v0 = vadd.f32 %v2495_v9, %v2434_v1 }
 0x5bb   : > { %v2590_v59 = vpop.f32.mrf.mxu2 }
 0x5bc   : > { %v2609_v15 = vadd.f32 %v2590_v59, %v2514_v0 }
 0x5be   : > { %v2501_v7 = vpop.f32.mrf.mxu1 }
 0x5bf   : > { %v2398_v48 = vpop.f32.mrf.mxu3 }
 0x5c0   : > { %v2437_v34 = vadd.f32 %v2436_v45, %v2398_v48 }
 0x5c2   : > { %v2442_v31 = vpop.f32.mrf.mxu0  ;;  %v2515_v38 = vadd.f32 %v2498_v44, %v2437_v34 }
 0x5c3   : > { %v2593_v62 = vpop.f32.mrf.mxu2 }
 0x5c4   : > { %v2610_v51 = vadd.f32 %v2593_v62, %v2515_v38 }
 0x5c6   : > { %v5893_v5 = vpop.f32.mrf.mxu1 }
 0x5c7   : > { %v2401_v3 = vpop.f32.mrf.mxu3 }
 0x5c8   : > { %v2440_v56 = vadd.f32 %v2439_v47, %v2401_v3 }
 0x5ca   : > { %v5895_v42 = vpop.f32.mrf.mxu0  ;;  %v2516_v54 = vadd.f32 %v2501_v7, %v2440_v56 }
 0x5cb   : > { %v2596_v50 = vpop.f32.mrf.mxu2 }
 0x5cc   : > { %v2611_v28 = vadd.f32 %v2596_v50, %v2516_v54 }
 0x5ce   : > { %v5897_v57 = vpop.f32.mrf.mxu1 }
 0x5cf   : > { %v2404_v22 = vpop.f32.mrf.mxu3 }
 0x5d0   : > { %v2443_v48 = vadd.f32 %v2442_v31, %v2404_v22 }
 0x5d2   : > { %v5899_v61 = vpop.f32.mrf.mxu0  ;;  %v2517_v7 = vadd.f32 %v5893_v5, %v2443_v48 }
 0x5d3   : > { %v2599_v58 = vpop.f32.mrf.mxu2 }
 0x5d4   : > { %v2612_v1 = vadd.f32 %v2599_v58, %v2517_v7 }
 0x5d6   : > { %v5903_v21 = vpop.f32.mrf.mxu1 }
 0x5d7   : > { %v5901_v27 = vpop.f32.mrf.mxu3 }
 0x5da   : > { %v2751_v19 = vpop.f32.mrf.mxu0 }
 0x5de   : > { %v2587_v60 = vpop.f32.mrf.mxu1 }
 0x5df   : > { %v5911_v24 = vpop.f32.mrf.mxu3  ;;  %v2608_v8 = vadd.f32 %v2587_v60, %v2513_v26 }
 0x5e2   : > { %v2754_v49 = vpop.f32.mrf.mxu0 }
 0x5e7   : > { %v2656_v35 = vpop.f32.mrf.mxu3  ;;  %v2602_v0 = vpop.f32.mrf.mxu2 }
 0x5e8   : > { %v2677_v12 = vadd.f32 %v2656_v35, %v2608_v8 }
 0x5ea   : > { %v2772_v14 = vadd.f32 %v2751_v19, %v2677_v12  ;;  %v2757_v4 = vpop.f32.mrf.mxu0 }
 0x5ec   : > { %v2784_v32 = vadd.f32 %v5922_v13, %v2772_v14 }
 0x5ee   : > { %v2798_v33 = vmin.f32 %v2784_v32, 0.0  ;;  %vm2791_vm10 = vcmp.gt.f32.partialorder %v2784_v32, 0.0 }
 0x5ef   : > { %v2659_v43 = vpop.f32.mrf.mxu3 }
 0x5f0   : > { %v2805_v30 = vmul.f32 1.442695, %v2798_v33  ;;  %v2678_v55 = vadd.f32 %v2659_v43, %v2609_v15 }
 0x5f2   : > { %3878 = vpow2.f32 %v2805_v30  ;;  %v2773_v40 = vadd.f32 %v2754_v49, %v2678_v55  ;;  %v2760_v36 = vpop.f32.mrf.mxu0  ;;  %v2446_v49 = vadd.f32 %v5895_v42, %v5901_v27  ;;  %v2449_v42 = vadd.f32 %v5899_v61, %v5911_v24 }
 0x5f4   : > { %v2785_v29 = vadd.f32 %v5922_v13, %v2773_v40  ;;  %v2518_v62 = vadd.f32 %v5897_v57, %v2446_v49 }
 0x5f6   : > { %v2799_v10 = vmin.f32 %v2785_v29, 0.0  ;;  %vm2792_vm14 = vcmp.gt.f32.partialorder %v2785_v29, 0.0  ;;  %v2613_v34 = vadd.f32 %v2602_v0, %v2518_v62 }
 0x5f7   : > { %v2662_v53 = vpop.f32.mrf.mxu3 }
 0x5f8   : > { %v3879_v39 = vpop.eup %3878  ;;  %v2807_v18 = vmul.f32 1.442695, %v2799_v10  ;;  %v2679_v63 = vadd.f32 %v2662_v53, %v2610_v51  ;;  %v2519_v51 = vadd.f32 %v5903_v21, %v2449_v42 }
 0x5f9   : > { %v3546_v16 = vadd.f32 -1.0, %v3879_v39 }
 0x5fa   : > { %v2774_v9 = vadd.f32 %v2757_v4, %v2679_v63  ;;  %3880 = vpow2.f32 %v2807_v18  ;;  %v2763_v26 = vpop.f32.mrf.mxu0 }
 0x5fb   : > { %v2826_v45 = vsel %vm2791_vm10, %v2784_v32, %v3546_v16 }
 0x5fc   : > { %v2786_v44 = vadd.f32 %v5922_v13, %v2774_v9  ;;  %3557 = vmatmul.msk.f32.vlgmr.msra.gmra.mxu1 %vm421_vm2, %v2826_v45 }
 0x5fe   : > { %v2800_v47 = vmin.f32 %v2786_v44, 0.0  ;;  %vm2793_vm13 = vcmp.gt.f32.partialorder %v2786_v44, 0.0 }
 0x5ff   : > { %v2665_v3 = vpop.f32.mrf.mxu3 }
 0x600   : > { %v3881_v52 = vpop.eup %3880  ;;  %v2809_v25 = vmul.f32 1.442695, %v2800_v47  ;;  %v2680_v19 = vadd.f32 %v2665_v3, %v2611_v28 }
 0x601   : > { %v3547_v37 = vadd.f32 -1.0, %v3881_v52 }
 0x602   : > { %v2775_v11 = vadd.f32 %v2760_v36, %v2680_v19  ;;  %3882 = vpow2.f32 %v2809_v25  ;;  %v2766_v43 = vpop.f32.mrf.mxu0 }
 0x603   : > { %v2827_v59 = vsel %vm2792_vm14, %v2785_v29, %v3547_v37  ;;  %v2605_v29 = vpop.f32.mrf.mxu2  ;;  %vm6237_vm14 = vmmov %vm6233_vm3 }
 0x604   : > { %v2787_v60 = vadd.f32 %v5922_v13, %v2775_v11  ;;  %3558 = vmatmul.msk.f32.gmra.mxu1 %vm421_vm2, %v2827_v59  ;;  %v2614_v10 = vadd.f32 %v2605_v29, %v2519_v51 }
 0x606   : > { %v2801_v31 = vmin.f32 %v2787_v60, 0.0  ;;  %vm2794_vm15 = vcmp.gt.f32.partialorder %v2787_v60, 0.0 }
 0x607   : > { %v2668_v22 = vpop.f32.mrf.mxu3 }
 0x608   : > { %v3883_v8 = vpop.eup %3882  ;;  %v2811_v35 = vmul.f32 1.442695, %v2801_v31  ;;  %v2681_v12 = vadd.f32 %v2668_v22, %v2612_v1 }
 0x609   : > { %v3548_v5 = vadd.f32 -1.0, %v3883_v8 }
 0x60a   : > { %v2776_v14 = vadd.f32 %v2763_v26, %v2681_v12  ;;  %3884 = vpow2.f32 %v2811_v35  ;;  %v2769_v24 = vpop.f32.mrf.mxu0 }
 0x60b   : > { %v2828_v32 = vsel %vm2793_vm13, %v2786_v44, %v3548_v5 }
 0x60c   : > { %v2788_v15 = vadd.f32 %v5922_v13, %v2776_v14  ;;  %3559 = vmatmul.msk.f32.gmra.mxu1 %vm421_vm2, %v2828_v32 }
 0x60e   : > { %v2802_v33 = vmin.f32 %v2788_v15, 0.0  ;;  %vm2795_vm11 = vcmp.gt.f32.partialorder %v2788_v15, 0.0 }
 0x60f   : > { %v2671_v30 = vpop.f32.mrf.mxu3 }
 0x610   : > { %v3885_v55 = vpop.eup %3884  ;;  %v2813_v27 = vmul.f32 1.442695, %v2802_v33  ;;  %v2682_v4 = vadd.f32 %v2671_v30, %v2613_v34 }
 0x611   : > { %v3549_v38 = vadd.f32 -1.0, %v3885_v55 }
 0x612   : > { %v2777_v40 = vadd.f32 %v2766_v43, %v2682_v4  ;;  %3886 = vpow2.f32 %v2813_v27 }
 0x613   : > { %v2829_v57 = vsel %vm2794_vm15, %v2787_v60, %v3549_v38  ;;  %vm6238_vm15 = vmmov %vm6235_vm8 }
 0x614   : > { %v2789_v56 = vadd.f32 %v5922_v13, %v2777_v40  ;;  %3560 = vmatmul.msk.f32.gmra.mxu1 %vm421_vm2, %v2829_v57 }
 0x616   : > { %v2803_v50 = vmin.f32 %v2789_v56, 0.0  ;;  %vm2796_vm1 = vcmp.gt.f32.partialorder %v2789_v56, 0.0 }
 0x617   : > { %v2674_v53 = vpop.f32.mrf.mxu3 }
 0x618   : > { %v3887_v39 = vpop.eup %3886  ;;  %v2815_v18 = vmul.f32 1.442695, %v2803_v50  ;;  %v2683_v61 = vadd.f32 %v2674_v53, %v2614_v10 }
 0x619   : > { %v3550_v63 = vadd.f32 -1.0, %v3887_v39 }
 0x61a   : > { %v2778_v16 = vadd.f32 %v2769_v24, %v2683_v61  ;;  %3888 = vpow2.f32 %v2815_v18 }
 0x61b   : > { %v2830_v54 = vsel %vm2795_vm11, %v2788_v15, %v3550_v63  ;;  %vm6239_vm11 = vmmov %vm6235_vm8 }
 0x61c   : > { %v2790_v9 = vadd.f32 %v5922_v13, %v2778_v16  ;;  %3561 = vmatmul.msk.f32.gmra.mxu1 %vm421_vm2, %v2830_v54  ;;  %v5948_v13 = vld [vmem:[%s6134_s6 + $0x2] ss:$0 sm:$0xff] }
 0x61e   : > { %v2804_v21 = vmin.f32 %v2790_v9, 0.0  ;;  %vm2797_vm7 = vcmp.gt.f32.partialorder %v2790_v9, 0.0 }
 0x620   : > { %v3889_v36 = vpop.eup %3888  ;;  %v2817_v45 = vmul.f32 1.442695, %v2804_v21 }
 0x621   : > { %v3551_v44 = vadd.f32 -1.0, %v3889_v36 }
 0x622   : > { %3890 = vpow2.f32 %v2817_v45 }
 0x623   : > { %v2831_v28 = vsel %vm2796_vm1, %v2789_v56, %v3551_v44 }
 0x624   : > { %3562 = vmatmul.msk.f32.gmra.mxu1 %vm421_vm2, %v2831_v28 }
 0x628   : > { %v3891_v48 = vpop.eup %3890 }
 0x629   : > { %v3552_v47 = vadd.f32 -1.0, %v3891_v48 }
 0x62b   : > { %v2832_v3 = vsel %vm2797_vm7, %v2790_v9, %v3552_v47  ;;  %vm6240_vm7 = vmmov %vm6233_vm3 }
 0x62c   : > { %3563 = vmatmul.msk.f32.gmra.mxu1 %vm421_vm2, %v2832_v3 }
 0x679   : > { %v2876_v52 = vpop.f32.mrf.mxu1 }
 0x67a   : > { %v2897_v25 = vadd.f32 %v2876_v52, %v5297_v20 }
 0x67c   : > { %v2909_v19 = vadd.f32 %v5948_v13, %v2897_v25 }
 0x67e   : > { %v2923_v58 = vmin.f32 %v2909_v19, 0.0  ;;  %vm2916_vm6 = vcmp.gt.f32.partialorder %v2909_v19, 0.0 }
 0x680   : > { %v2930_v37 = vmul.f32 1.442695, %v2923_v58 }
 0x681   : > { %v2879_v7 = vpop.f32.mrf.mxu1 }
 0x682   : > { %v2898_v11 = vadd.f32 %v2879_v7, %v5317_v41  ;;  %3892 = vpow2.f32 %v2930_v37 }
 0x684   : > { %v2910_v59 = vadd.f32 %v5948_v13, %v2898_v11 }
 0x686   : > { %v2924_v60 = vmin.f32 %v2910_v59, 0.0  ;;  %vm2917_vm5 = vcmp.gt.f32.partialorder %v2910_v59, 0.0 }
 0x688   : > { %v2932_v26 = vmul.f32 1.442695, %v2924_v60  ;;  %v3893_v31 = vpop.eup %3892 }
 0x689   : > { %v2882_v1 = vpop.f32.mrf.mxu1  ;;  %v3565_v20 = vadd.f32 -1.0, %v3893_v31 }
 0x68a   : > { %3894 = vpow2.f32 %v2932_v26  ;;  %v2899_v22 = vadd.f32 %v2882_v1, %v5331_v6 }
 0x68b   : > { %v5956_v0 = vsel %vm2916_vm6, %v2909_v19, %v3565_v20  ;;  %vm6241_vm6 = vmmov %vm6235_vm8 }
 0x68c   : > { %v2911_v8 = vadd.f32 %v5948_v13, %v2899_v22  ;;  %v3033_v6 = vrot.slane %v5956_v0, 3  ;;  %v2999_v40 = vrot.slane %v5956_v0, 2  ;;  %v2965_v51 = vrot.slane %v5956_v0, 1 }
 0x68e   : > { %v2925_v49 = vmin.f32 %v2911_v8, 0.0  ;;  %vm2918_vm0 = vcmp.gt.f32.partialorder %v2911_v8, 0.0 }
 0x690   : > { %v3895_v35 = vpop.eup %3894  ;;  %v2934_v12 = vmul.f32 1.442695, %v2925_v49 }
 0x691   : > { %v3566_v41 = vadd.f32 -1.0, %v3895_v35  ;;  %v2885_v5 = vpop.f32.mrf.mxu1  ;;  %v3103_v35 = vld [vmem:[%s6135_s7 + $0x78] sm:$0xff] }
 0x692   : > { %3896 = vpow2.f32 %v2934_v12  ;;  %v2900_v14 = vadd.f32 %v2885_v5, %v5355_v2  ;;  %v3102_v12 = vld [vmem:[%s6135_s7 + $0x70] sm:$0xff]  ;;  %3108 = vmatpush.msrb.mxu2 %v3103_v35  ;;  %v3101_v5 = vld [vmem:[%s6135_s7 + $0x68] sm:$0xff] }
 0x693   : > { %v5959_v32 = vsel %vm2917_vm5, %v2910_v59, %v3566_v41 }
 0x694   : > { %v2912_v62 = vadd.f32 %v5948_v13, %v2900_v14  ;;  %v3034_v15 = vrot.slane %v5959_v32, 3  ;;  %v3000_v27 = vrot.slane %v5959_v32, 2  ;;  %v2966_v4 = vrot.slane %v5959_v32, 1  ;;  %3109 = vmatpush.msrb.mxu2 %v3102_v12 }
 0x696   : > { %v2926_v34 = vmin.f32 %v2912_v62, 0.0  ;;  %v3035_v33 = vsel %vm546_vm12, %v3033_v6, %v3034_v15  ;;  %v3001_v10 = vsel %vm6233_vm3, %v2999_v40, %v3000_v27  ;;  %vm2919_vm10 = vcmp.gt.f32.partialorder %v2912_v62, 0.0  ;;  %3110 = vmatpush.msrb.mxu2 %v3101_v5 }
 0x697   : > { %3046 = vrot.lane.b32.xlu2 %v3035_v33, %s3915_s20 }
 0x698   : > { %v3897_v43 = vpop.eup %3896  ;;  %v2936_v30 = vmul.f32 1.442695, %v2926_v34 }
 0x699   : > { %v3567_v55 = vadd.f32 -1.0, %v3897_v43  ;;  %v2888_v42 = vpop.f32.mrf.mxu1 }
 0x69a   : > { %3898 = vpow2.f32 %v2936_v30  ;;  %v2901_v2 = vadd.f32 %v2888_v42, %v5370_v17  ;;  %v2967_v17 = vsel %vm6235_vm8, %v2965_v51, %v2966_v4  ;;  %vm6246_vm8 = vcmask 785408  }
 0x69b   : > { %v5969_v38 = vsel %vm2918_vm0, %v2911_v8, %v3567_v55  ;;  %vm6242_vm0 = vmmov %vm6233_vm3 }
 0x69c   : > { %v2913_v29 = vadd.f32 %v5948_v13, %v2901_v2  ;;  %v3002_v57 = vrot.slane %v5969_v38, 2  ;;  %v2968_v56 = vrot.slane %v5969_v38, 1  ;;  %v3036_v44 = vrot.slane %v5969_v38, 3  ;;  %vm6243_vm3 = vmmov %vm6241_vm6 }
 0x69e   : > { %v2927_v50 = vmin.f32 %v2913_v29, 0.0  ;;  %v3003_v53 = vsel %vm6234_vm4, %v3000_v27, %v3002_v57  ;;  %v2969_v39 = vsel %vm6236_vm9, %v2966_v4, %v2968_v56  ;;  %v3037_v52 = vsel %vm546_vm12, %v3034_v15, %v3036_v44  ;;  %vm6244_vm4 = vmmov %vm6242_vm0 }
 0x69f   : > { %v3804_v18 = vpack.i.bf16 %v3003_v53, %v3001_v10  ;;  %v3799_v61 = vpack.i.bf16 %v2969_v39, %v2967_v17  ;;  %vm2920_vm13 = vcmp.gt.f32.partialorder %v2913_v29, 0.0  ;;  %v3099_v10 = vld [vmem:[%s6135_s7 + $0x58] sm:$0xff]  ;;  %v3097_v53 = vld [vmem:[%s6135_s7 + $0x48] sm:$0xff]  ;;  %v3096_v17 = vld [vmem:[%s6135_s7 + $0x40] sm:$0xff] }
 0x6a0   : > { %v3899_v24 = vpop.eup %3898  ;;  %v2938_v63 = vmul.f32 1.442695, %v2927_v50  ;;  %v3098_v50 = vld [vmem:[%s6135_s7 + $0x50] sm:$0xff]  ;;  %v3095_v39 = vld [vmem:[%s6135_s7 + $0x38] sm:$0xff] }
 0x6a1   : > { %v3568_v16 = vadd.f32 -1.0, %v3899_v24  ;;  %3805 = vrot.lane.b32.xlu1 %v3804_v18, %s3917_s22  ;;  %3800 = vrot.lane.b32.xlu0 %v3799_v61, %s3916_s21  ;;  %v2891_v54 = vpop.f32.mrf.mxu1  ;;  %v3094_v18 = vld [vmem:[%s6135_s7 + $0x30] sm:$0xff]  ;;  %v3093_v61 = vld [vmem:[%s6135_s7 + $0x28] sm:$0xff] }
 0x6a2   : > { %3900 = vpow2.f32 %v2938_v63  ;;  %v2902_v9 = vadd.f32 %v2891_v54, %v5389_v46  ;;  %v3092_v24 = vld [vmem:[%s6135_s7 + $0x20] sm:$0xff]  ;;  %v3091_v63 = vld [vmem:[%s6135_s7 + $0x18] sm:$0xff]  ;;  %v3089_v54 = vld [vmem:[%s6135_s7 + $0x8] sm:$0xff] }
 0x6a3   : > { %v5983_v21 = vsel %vm2919_vm10, %v2912_v62, %v3568_v16  ;;  %v3090_v16 = vld [vmem:[%s6135_s7 + $0x10] sm:$0xff]  ;;  %vm6248_vm10 = vmmov %vm6246_vm8 }
 0x6a4   : > { %v2914_v36 = vadd.f32 %v5948_v13, %v2902_v9  ;;  %v3004_v45 = vrot.slane %v5983_v21, 2  ;;  %v2970_v58 = vrot.slane %v5983_v21, 1  ;;  %v3038_v11 = vrot.slane %v5983_v21, 3  ;;  %v3088_v9 = vld [vmem:[%s6135_s7] sm:$0xff] }
 0x6a6   : > { %v2928_v28 = vmin.f32 %v2914_v36, 0.0  ;;  %v3005_v48 = vsel %vm6237_vm14, %v3002_v57, %v3004_v45  ;;  %v2971_v31 = vsel %vm6238_vm15, %v2968_v56, %v2970_v58  ;;  %vm2921_vm1 = vcmp.gt.f32.partialorder %v2914_v36, 0.0  ;;  %v3100_v56 = vld [vmem:[%s6135_s7 + $0x60] sm:$0xff] }
 0x6a7   : > { %3016 = vrot.lane.b32.xlu2 %v3005_v48, %s3917_s22  ;;  %3111 = vmatpush.msrb.mxu2 %v3100_v56 }
 0x6a8   : > { %v3901_v47 = vpop.eup %3900  ;;  %v2940_v3 = vmul.f32 1.442695, %v2928_v28 }
 0x6a9   : > { %v3569_v25 = vadd.f32 -1.0, %v3901_v47  ;;  %3048 = vrot.lane.b32.xlu0 %v3037_v52, %s3915_s20  ;;  %v2894_v46 = vpop.f32.mrf.mxu1  ;;  %3112 = vmatpush.msrb.mxu2 %v3099_v10 }
 0x6aa   : > { %3902 = vpow2.f32 %v2940_v3  ;;  %v2903_v19 = vadd.f32 %v2894_v46, %v5409_v23 }
 0x6ab   : > { %v5994_v37 = vsel %vm2920_vm13, %v2913_v29, %v3569_v25  ;;  %3113 = vmatpush.msrb.mxu2 %v3098_v50  ;;  %vm6250_vm13 = vmmov %vm6246_vm8 }
 0x6ac   : > { %v2915_v7 = vadd.f32 %v5948_v13, %v2903_v19  ;;  %v3040_v59 = vrot.slane %v5994_v37, 3  ;;  %v2972_v60 = vrot.slane %v5994_v37, 1  ;;  %v3039_v13 = vsel %vm546_vm12, %v3036_v44, %v3038_v11 }
 0x6ad   : > { %v3006_v62 = vrot.slane %v5994_v37, 2  ;;  %3114 = vmatpush.msrb.mxu2 %v3097_v53 }
 0x6ae   : > { %v2929_v26 = vmin.f32 %v2915_v7, 0.0  ;;  %v3041_v1 = vsel %vm546_vm12, %v3038_v11, %v3040_v59  ;;  %v2973_v22 = vsel %vm6239_vm11, %v2970_v58, %v2972_v60  ;;  %vm2922_vm5 = vcmp.gt.f32.partialorder %v2915_v7, 0.0  ;;  %vm6252_vm11 = vmmov %vm6246_vm8 }
 0x6af   : > { %3052 = vrot.lane.b32.xlu2 %v3041_v1, %s3915_s20  ;;  %v3809_v23 = vpack.i.bf16 %v2973_v22, %v2971_v31  ;;  %v3007_v33 = vsel %vm6240_vm7, %v3004_v45, %v3006_v62  ;;  %3115 = vmatpush.msrb.mxu2 %v3096_v17  ;;  %vm6254_vm7 = vmmov %vm6246_vm8 }
 0x6b0   : > { %v3903_v8 = vpop.eup %3902  ;;  %v2942_v20 = vmul.f32 1.442695, %v2929_v26 }
 0x6b1   : > { %v3570_v49 = vadd.f32 -1.0, %v3903_v8  ;;  %3050 = vrot.lane.b32.xlu0 %v3039_v13, %s3915_s20  ;;  %3810 = vrot.lane.b32.xlu1 %v3809_v23, %s3916_s21 }
 0x6b2   : > { %3904 = vpow2.f32 %v2942_v20  ;;  %3116 = vmatpush.msrb.mxu2 %v3095_v39 }
 0x6b3   : > { %v6013_v41 = vsel %vm2921_vm1, %v2914_v36, %v3570_v49 }
 0x6b4   : > { %v3042_v14 = vrot.slane %v6013_v41, 3  ;;  %v2974_v6 = vrot.slane %v6013_v41, 1  ;;  %v3008_v27 = vrot.slane %v6013_v41, 2  ;;  %3117 = vmatpush.msrb.mxu2 %v3094_v18 }
 0x6b6   : > { %v3043_v15 = vsel %vm546_vm12, %v3040_v59, %v3042_v14  ;;  %v2975_v43 = vsel %vm6241_vm6, %v2972_v60, %v2974_v6  ;;  %v3009_v40 = vsel %vm6242_vm0, %v3006_v62, %v3008_v27  ;;  %3118 = vmatpush.msrb.mxu2 %v3093_v61 }
 0x6b7   : > { %3054 = vrot.lane.b32.xlu2 %v3043_v15, %s3915_s20 }
 0x6b8   : > { %v3905_v34 = vpop.eup %3904  ;;  %3119 = vmatpush.msrb.mxu2 %v3092_v24 }
 0x6b9   : > { %v3571_v30 = vadd.f32 -1.0, %v3905_v34  ;;  %3018 = vrot.lane.b32.xlu1 %v3007_v33, %s3917_s22  ;;  %2986 = vrot.lane.b32.xlu0 %v2975_v43, %s3916_s21 }
 0x6ba   : > { %3120 = vmatpush.msrb.mxu2 %v3091_v63 }
 0x6bb   : > { %v6027_v55 = vsel %vm2922_vm5, %v2915_v7, %v3571_v30  ;;  %vm6256_vm5 = vmmov %vm6254_vm7 }
 0x6bc   : > { %v3044_v42 = vrot.slane %v6027_v55, 3  ;;  %v2976_v2 = vrot.slane %v6027_v55, 1  ;;  %v3010_v57 = vrot.slane %v6027_v55, 2  ;;  %3121 = vmatpush.msrb.mxu2 %v3090_v16 }
 0x6be   : > { %v3045_v4 = vsel %vm546_vm12, %v3042_v14, %v3044_v42  ;;  %v2977_v29 = vsel %vm6243_vm3, %v2974_v6, %v2976_v2  ;;  %v3011_v51 = vsel %vm6244_vm4, %v3008_v27, %v3010_v57  ;;  %3122 = vmatpush.msrb.mxu2 %v3089_v54  ;;  %vm6245_vm12 = vcmask 523264   ;;  %vm6258_vm3 = vmmov %vm6256_vm5 }
 0x6bf   : > { %3056 = vrot.lane.b32.xlu2 %v3045_v4, %s3915_s20  ;;  %vm6247_vm9 = vmmov %vm6245_vm12  ;;  %vm3146_vm4 = vcmask 64512  }
 0x6c0   : > { %3123 = vmatpush.msrb.mxu2 %v3088_v9  ;;  %vm6249_vm14 = vmmov %vm6247_vm9 }
 0x6c1   : > { %3020 = vrot.lane.b32.xlu1 %v3009_v40, %s3917_s22  ;;  %2988 = vrot.lane.b32.xlu0 %v2977_v29, %s3916_s21  ;;  %vm6251_vm15 = vmmov %vm6247_vm9 }
 0x6c2   : > { %vm6253_vm1 = vmmov %vm6247_vm9 }
 0x6c3   : > { %vm6255_vm6 = vmmov %vm6253_vm1 }
 0x6c4   : > { %vm6257_vm0 = vmmov %vm6253_vm1 }
 0x6c7   : > { %3058 = vrot.lane.b32.xlu2 %v3044_v42, %s3915_s20 }
 0x6c9   : > { %3022 = vrot.lane.b32.xlu1 %v3011_v51, %s3917_s22  ;;  %2990 = vrot.lane.b32.xlu0 %v2976_v2, %s3916_s21 }
 0x6d1   : > { %3024 = vrot.lane.b32.xlu1 %v3010_v57, %s3917_s22 }
 0x6f1   : > { %v3047_v47 = vpop.permute.xlu2 %3046 }
 0x701   : > { %v3017_v7 = vpop.permute.xlu2 %3016 }
 0x709   : > { %v3053_v8 = vpop.permute.xlu2 %3052 }
 0x711   : > { %v3055_v12 = vpop.permute.xlu2 %3054 }
 0x713   : > { %v3806_v36 = vpop.permute.xlu1 %3805  ;;  %v3801_v45 = vpop.permute.xlu0 %3800 }
 0x714   : > { %v3807_v44 = vunpack.i.l.bf16 %v3806_v36  ;;  %v3802_v28 = vunpack.i.l.bf16 %v3801_v45  ;;  %v3803_v52 = vunpack.i.h.bf16 %v3801_v45  ;;  %v3808_v46 = vunpack.i.h.bf16 %v3806_v36 }
 0x716   : > { %v3067_v48 = vsel %vm421_vm2, %v5956_v0, %v3802_v28  ;;  %v3068_v58 = vsel %vm421_vm2, %v5959_v32, %v3803_v52 }
 0x717   : > { %v3074_v3 = vsel %vm6245_vm12, %v3067_v48, %v3807_v44  ;;  %v3075_v11 = vsel %vm6247_vm9, %v3068_v58, %v3808_v46 }
 0x718   : > { %v3081_v25 = vsel %vm6246_vm8, %v3074_v3, %v3047_v47 }
 0x719   : > { %3124 = vmatmul.f32.vlgmr.msrb.gmra.mxu2 %v3081_v25  ;;  %v3057_v34 = vpop.permute.xlu2 %3056 }
 0x71b   : > { %v3049_v19 = vpop.permute.xlu0 %3048 }
 0x71c   : > { %v3082_v59 = vsel %vm6248_vm10, %v3075_v11, %v3049_v19 }
 0x721   : > { %3127 = vmatmul.f32.gmra.mxu2 %v3082_v59  ;;  %v3059_v2 = vpop.permute.xlu2 %3058 }
 0x723   : > { %v3811_v60 = vpop.permute.xlu1 %3810  ;;  %v3051_v0 = vpop.permute.xlu0 %3050 }
 0x724   : > { %v3812_v26 = vunpack.i.l.bf16 %v3811_v60  ;;  %v3813_v22 = vunpack.i.h.bf16 %v3811_v60 }
 0x726   : > { %v3069_v1 = vsel %vm421_vm2, %v5969_v38, %v3812_v26  ;;  %v3070_v20 = vsel %vm421_vm2, %v5983_v21, %v3813_v22 }
 0x727   : > { %v3076_v31 = vsel %vm6249_vm14, %v3069_v1, %v3017_v7 }
 0x728   : > { %v3083_v23 = vsel %vm6250_vm13, %v3076_v31, %v3051_v0 }
 0x729   : > { %3130 = vmatmul.f32.gmra.mxu2 %v3083_v23 }
 0x72b   : > { %v3019_v32 = vpop.permute.xlu1 %3018  ;;  %v2987_v49 = vpop.permute.xlu0 %2986 }
 0x72c   : > { %v3077_v13 = vsel %vm6251_vm15, %v3070_v20, %v3019_v32  ;;  %v3071_v38 = vsel %vm421_vm2, %v5994_v37, %v2987_v49 }
 0x72d   : > { %v3084_v35 = vsel %vm6252_vm11, %v3077_v13, %v3053_v8 }
 0x731   : > { %3133 = vmatmul.f32.gmra.mxu2 %v3084_v35 }
 0x733   : > { %v3021_v5 = vpop.permute.xlu1 %3020  ;;  %v2989_v62 = vpop.permute.xlu0 %2988 }
 0x734   : > { %v3078_v14 = vsel %vm6253_vm1, %v3071_v38, %v3021_v5  ;;  %v3072_v21 = vsel %vm421_vm2, %v6013_v41, %v2989_v62  ;;  %v3821_v41 = vld [vmem:[%s6136_s8] ss:$0 sm:$0xff] }
 0x735   : > { %v3085_v6 = vsel %vm6254_vm7, %v3078_v14, %v3055_v12 }
 0x739   : > { %3136 = vmatmul.f32.gmra.mxu2 %v3085_v6 }
 0x73b   : > { %v3023_v15 = vpop.permute.xlu1 %3022  ;;  %v2991_v30 = vpop.permute.xlu0 %2990 }
 0x73c   : > { %v3079_v33 = vsel %vm6255_vm6, %v3072_v21, %v3023_v15  ;;  %v3073_v37 = vsel %vm421_vm2, %v6027_v55, %v2991_v30  ;;  %vm3153_vm2 = vcmask 59392  }
 0x73d   : > { %v3086_v43 = vsel %vm6256_vm5, %v3079_v33, %v3057_v34 }
 0x741   : > { %3139 = vmatmul.f32.gmra.mxu2 %v3086_v43 }
 0x743   : > { %v3025_v42 = vpop.permute.xlu1 %3024 }
 0x744   : > { %v3080_v27 = vsel %vm6257_vm0, %v3073_v37, %v3025_v42 }
 0x745   : > { %v3087_v4 = vsel %vm6258_vm3, %v3080_v27, %v3059_v2 }
 0x749   : > { %3142 = vmatmul.f32.gmra.mxu2 %v3087_v4 }
 0x79c   : > { %v3125_v40 = vpop.f32.mrf.mxu2 }
 0x79d   : > { %v3126_v29 = vadd.f32 %v3821_v41, %v3125_v40 }
 0x79f   : > { %3147 = vst.msk [vmem:[%s332_s17] sm:$0xff] %vm3146_vm4, %v3126_v29 }
 0x7a4   : > { %v3128_v55 = vpop.f32.mrf.mxu2 }
 0x7a5   : > { %v3129_v57 = vadd.f32 %v3821_v41, %v3128_v55 }
 0x7a7   : > { %3148 = vst.msk [vmem:[%s332_s17 + $0x8] sm:$0xff] %vm3146_vm4, %v3129_v57 }
 0x7ac   : > { %v3131_v51 = vpop.f32.mrf.mxu2 }
 0x7ad   : > { %v3132_v56 = vadd.f32 %v3821_v41, %v3131_v51 }
 0x7af   : > { %3149 = vst.msk [vmem:[%s332_s17 + $0x10] sm:$0xff] %vm3146_vm4, %v3132_v56 }
 0x7b4   : > { %v3134_v10 = vpop.f32.mrf.mxu2 }
 0x7b5   : > { %v3135_v50 = vadd.f32 %v3821_v41, %v3134_v10 }
 0x7b7   : > { %3150 = vst.msk [vmem:[%s332_s17 + $0x18] sm:$0xff] %vm3146_vm4, %v3135_v50 }
 0x7bc   : > { %v3137_v53 = vpop.f32.mrf.mxu2 }
 0x7bd   : > { %v3138_v17 = vadd.f32 %v3821_v41, %v3137_v53 }
 0x7bf   : > { %3151 = vst.msk [vmem:[%s332_s17 + $0x20] sm:$0xff] %vm3146_vm4, %v3138_v17 }
 0x7c4   : > { %v3140_v39 = vpop.f32.mrf.mxu2 }
 0x7c5   : > { %v3141_v18 = vadd.f32 %v3821_v41, %v3140_v39 }
 0x7c7   : > { %3152 = vst.msk [vmem:[%s332_s17 + $0x28] sm:$0xff] %vm3146_vm4, %v3141_v18 }
 0x7cc   : > { %v3143_v61 = vpop.f32.mrf.mxu2 }
 0x7cd   : > { %v3144_v24 = vadd.f32 %v3821_v41, %v3143_v61 }
 0x7cf   : > { %3154 = vst.msk [vmem:[%s332_s17 + $0x30] sm:$0x7] %vm3153_vm2, %v3144_v24 }
 0x7d0 PF: > { %s19_s30 = sadd.s32 1, %s3912_s30  }
 0x7d1   : > { %p16_p4 = scmp.ge.s32.totalorder %s19_s30, 4  }
 0x7d3   :  { %18 = sbr.rel (!%p16_p4) target bundleno = 1 (0x1), region = 109 }

</bundles_post_ra>
